<compile_context>
chip_gen: v6e
topology: v6e:2x2x1
jax: 0.10.0
libtpu: 0.0.40
codegen_flags: <defaults>
</compile_context>

<pallas_src>
import functools

import jax
import jax.numpy as jnp
from jax import lax
from jax.experimental import pallas as pl
from jax.experimental.pallas import tpu as pltpu

EPS = 1e-5       # torch.nn.LayerNorm default eps
LANE = 128       # TPU vreg lane width


def _round_up(x, m):
    return ((x + m - 1) // m) * m


def _pad2d(a, rows, cols):
    """Zero-pad a 2-D array up to (rows, cols)."""
    if a.shape == (rows, cols):
        return a
    out = jnp.zeros((rows, cols), a.dtype)
    return out.at[: a.shape[0], : a.shape[1]].set(a)


def _pad_gate_cols(a, rows, half_real, half_pad):
    """Pad an array whose columns are [half1 | half2] (SimpleGate layout) into
    [half1 | 0...][half2 | 0...] so the gate split stays lane-aligned."""
    if half_real == half_pad and a.shape[0] == rows:
        return a
    out = jnp.zeros((rows, 2 * half_pad), a.dtype)
    out = out.at[: a.shape[0], :half_real].set(a[:, :half_real])
    out = out.at[: a.shape[0], half_pad:half_pad + half_real].set(a[:, half_real:])
    return out


def _layernorm_rows(x2d, w_row, b_row, n_real):
    """LayerNorm over the lane (channel) axis, one-pass biased statistics.
    Padded lanes hold zeros and have zero weight/bias, so they stay zero."""
    inv = 1.0 / float(n_real)
    mean = jnp.sum(x2d, axis=-1, keepdims=True) * inv
    meansq = jnp.sum(x2d * x2d, axis=-1, keepdims=True) * inv
    var = jnp.maximum(meansq - mean * mean, 0.0)   # clamp: one-pass var can dip < 0
    return (x2d - mean) * lax.rsqrt(var + EPS) * w_row + b_row


def _vmem_limit_bytes():
    """Generation-aware VMEM cap: ~50 MiB on 64 MiB parts (v7x), ~100 MiB on
    128 MiB parts (v5e/v6e); conservative fallback if the query fails."""
    try:
        phys = int(pltpu.get_tpu_info().vmem_capacity_bytes)
    except Exception:
        phys = 64 * 2**20
    return min(int(phys * 0.78), 100 * 2**20)


def _pick_tile_rows(H, per_row_bytes, budget_bytes, halo=0):
    """Largest divisor of H whose live working set fits the budget."""
    best = 1
    for th in range(1, H + 1):
        if H % th == 0 and (th + halo) * per_row_bytes <= budget_bytes:
            best = th
    return best


def nafblock_pallas_nhwc(x, p, *, tile_rows=None, tile_rows2=None,
                         matmul_dtype=jnp.bfloat16, stage_dtype=jnp.bfloat16,
                         lane_multiple=LANE):
    """NAFBlock forward on an NHWC tensor (channels on TPU lanes)."""
    N, H, W, C = x.shape
    dwc = p['w1'].shape[1]            # dw_channel  (= 2*C by default)
    ffn = p['w4'].shape[1]            # ffn_channel (= 2*C by default)
    dwh, ffh = dwc // 2, ffn // 2

    Cp = _round_up(C, lane_multiple)
    DHp = _round_up(dwh, lane_multiple)    # padded SimpleGate half (branch 1)
    FHp = _round_up(ffh, lane_multiple)    # padded SimpleGate half (branch 2)
    dwc_p, ffn_p = 2 * DHp, 2 * FHp

    vmem_limit = _vmem_limit_bytes()
    budget = vmem_limit // 2          # headroom for double-buffering + scratch

    per_row1 = W * 4 * (3 * Cp + 5 * dwc_p + 2 * DHp)
    per_row2 = W * 4 * (7 * Cp + 2 * DHp + 2 * ffn_p)
    TH = tile_rows if tile_rows is not None else _pick_tile_rows(H, per_row1, budget, halo=2)
    TH2 = tile_rows2 if tile_rows2 is not None else _pick_tile_rows(H, per_row2, budget)
    if H % TH != 0:
        raise ValueError(f"tile_rows={TH} must divide H={H}")
    if H % TH2 != 0:
        raise ValueError(f"tile_rows2={TH2} must divide H={H}")
    T, T2 = H // TH, H // TH2

    f32 = jnp.float32
    # ---- lane-pad parameters, fold beta/gamma, pre-cast matmul operands ----
    ln1w = _pad2d(p['ln1w'].astype(f32), 1, Cp)
    ln1b = _pad2d(p['ln1b'].astype(f32), 1, Cp)
    ln2w = _pad2d(p['ln2w'].astype(f32), 1, Cp)
    ln2b = _pad2d(p['ln2b'].astype(f32), 1, Cp)
    w1 = _pad_gate_cols(p['w1'].astype(f32), Cp, dwh, DHp).astype(matmul_dtype)
    b1 = _pad_gate_cols(p['b1'].astype(f32), 1, dwh, DHp)
    k2 = _pad_gate_cols(p['k2'].astype(f32), 9, dwh, DHp)
    b2 = _pad_gate_cols(p['b2'].astype(f32), 1, dwh, DHp)
    # y = x + (conv3(g*s)) * beta  ==  x + (g*s) @ (w3*beta) + b3*beta
    w3 = _pad2d((p['w3'] * p['beta']).astype(f32), DHp, Cp).astype(matmul_dtype)
    b3 = _pad2d((p['b3'] * p['beta']).astype(f32), 1, Cp)
    w4 = _pad_gate_cols(p['w4'].astype(f32), Cp, ffh, FHp).astype(matmul_dtype)
    b4 = _pad_gate_cols(p['b4'].astype(f32), 1, ffh, FHp)
    w5 = _pad2d((p['w5'] * p['gamma']).astype(f32), FHp, Cp).astype(matmul_dtype)
    b5 = _pad2d((p['b5'] * p['gamma']).astype(f32), 1, Cp)
    wsca = _pad2d(p['wsca'].astype(f32), DHp, DHp)   # used only in XLA glue
    bsca = _pad2d(p['bsca'].astype(f32), 1, DHp)

    # Static column masks for the depthwise-conv W boundary (zero the column
    # wrapped around by pltpu.roll); dense over lanes so the in-kernel multiply
    # only broadcasts along the (free) major row axis.
    colv = jnp.arange(W, dtype=jnp.int32)
    cmask_l = jnp.broadcast_to((colv > 0).astype(f32)[None, :, None], (1, W, dwc_p))
    cmask_r = jnp.broadcast_to((colv < W - 1).astype(f32)[None, :, None], (1, W, dwc_p))

    xp = x if Cp == C else jnp.pad(x, ((0, 0), (0, 0), (0, 0), (0, Cp - C)))

    def mm(a, b):   # MXU matmul; f32 accumulation (weights are pre-cast)
        return jnp.dot(a.astype(matmul_dtype), b.astype(matmul_dtype),
                       preferred_element_type=jnp.float32)

    def fullspec(a):                       # whole-array (parameter) block
        nd = a.ndim
        return pl.BlockSpec(a.shape, lambda n, t, _nd=nd: (0,) * _nd)

    stage_bytes = jnp.dtype(stage_dtype).itemsize
    x_bytes = jnp.dtype(x.dtype).itemsize

    # ------------------------------------------------------------------ #
    # Phase 1: LN1 -> conv1 -> depthwise 3x3 -> SimpleGate, per row tile. #
    # ------------------------------------------------------------------ #
    def phase1_kernel(xc_ref, xt_ref, xb_ref,
                      ln1w_ref, ln1b_ref, w1_ref, b1_ref, k2_ref, b2_ref,
                      cml_ref, cmr_ref, g_ref, pool_ref):
        t = pl.program_id(1)

        # LN1 + conv1 (1x1 conv == matmul over channels) on the centre rows.
        xc2d = xc_ref[...].astype(jnp.float32).reshape(TH * W, Cp)
        xcn = _layernorm_rows(xc2d, ln1w_ref[...], ln1b_ref[...], C)
        h1c = (mm(xcn, w1_ref[...]) + b1_ref[...]).reshape(TH, W, dwc_p)

        # Same for the two halo rows; halo rows outside the image must
        # contribute 0 to conv2 (the zero padding applies to conv1's *output*),
        # so gate them with scalars instead of a full-size iota/where mask.
        xh2d = jnp.concatenate([xt_ref[...], xb_ref[...]],
                               axis=0).astype(jnp.float32).reshape(2 * W, Cp)
        xhn = _layernorm_rows(xh2d, ln1w_ref[...], ln1b_ref[...], C)
        h1h = (mm(xhn, w1_ref[...]) + b1_ref[...]).reshape(2, W, dwc_p)
        top_keep = (t > 0).astype(jnp.float32)
        bot_keep = (t < pl.num_programs(1) - 1).astype(jnp.float32)
        h1 = jnp.concatenate([h1h[0:1] * top_keep, h1c, h1h[1:2] * bot_keep],
                             axis=0)                        # (TH+2, W, dwc_p)

        # Depthwise 3x3: W shifts on the XLU (pltpu.roll) + static column
        # masks, H shifts as cheap major-axis slices; f32 accumulation.
        h1_m = pltpu.roll(h1, shift=1, axis=1) * cml_ref[...]       # h1[:, j-1]
        h1_p = pltpu.roll(h1, shift=W - 1, axis=1) * cmr_ref[...]   # h1[:, j+1]
        taps = (h1_m, h1, h1_p)
        k2v = k2_ref[...]                                   # (9, dwc_p)
        acc = None
        for di in range(3):
            for dj in range(3):
                idx = di * 3 + dj
                kk = k2v[idx:idx + 1, :].reshape(1, 1, dwc_p)
                term = taps[dj][di:di + TH, :, :] * kk
                acc = term if acc is None else acc + term
        h2 = acc + b2_ref[...].reshape(1, 1, dwc_p)

        # SimpleGate (lane-aligned split at DHp)
        g = h2[:, :, :DHp] * h2[:, :, DHp:]
        g_ref[...] = g.astype(g_ref.dtype)

        # per-tile partial sum for the SCA global average pool (kept in f32)
        pool_ref[...] = jnp.sum(g.reshape(TH * W, DHp), axis=0, keepdims=True)

    param1 = [ln1w, ln1b, w1, b1, k2, b2, cmask_l, cmask_r]
    param1_bytes = sum(int(a.size) * jnp.dtype(a.dtype).itemsize for a in param1)

    flops1 = int(N * (2 * (H + 2 * T) * W * Cp * dwc_p      # conv1 (+halo rows)
                      + 18 * H * W * dwc_p                  # 9-tap dw conv
                      + 10 * (H + 2 * T) * W * Cp           # LN elementwise
                      + 2 * H * W * DHp))                   # gate + pool
    bytes1 = int(N * ((H + 2 * T) * W * Cp * x_bytes
                      + H * W * DHp * stage_bytes + T * DHp * 4) + param1_bytes)

    in_specs1 = [
        pl.BlockSpec((None, TH, W, Cp), lambda n, t: (n, t, 0, 0)),
        pl.BlockSpec((None, 1, W, Cp),
                     lambda n, t: (n, jnp.maximum(t * TH - 1, 0), 0, 0)),
        pl.BlockSpec((None, 1, W, Cp),
                     lambda n, t: (n, jnp.minimum(t * TH + TH, H - 1), 0, 0)),
    ] + [fullspec(a) for a in param1]

    g_staged, pool_parts = pl.pallas_call(
        phase1_kernel,
        grid=(N, T),
        in_specs=in_specs1,
        out_specs=(pl.BlockSpec((None, TH, W, DHp), lambda n, t: (n, t, 0, 0)),
                   pl.BlockSpec((None, None, 1, DHp), lambda n, t: (n, t, 0, 0))),
        out_shape=(jax.ShapeDtypeStruct((N, H, W, DHp), stage_dtype),
                   jax.ShapeDtypeStruct((N, T, 1, DHp), jnp.float32)),
        compiler_params=pltpu.CompilerParams(
            dimension_semantics=("parallel", "parallel"),
            vmem_limit_bytes=vmem_limit),
        cost_estimate=pl.CostEstimate(flops=flops1,
                                      transcendentals=int(N * (H + 2 * T) * W),
                                      bytes_accessed=bytes1),
    )(xp, xp, xp, *param1)

    # ---- inter-phase glue: global average pool + SCA projection (tiny) ----
    pooled = pool_parts.reshape(N, T, DHp).sum(axis=1) * (1.0 / float(H * W))
    s = pooled @ wsca + bsca                      # (N, DHp), f32
    s3 = s[:, :, None]                            # (N, DHp, 1): row scale for w3

    # ------------------------------------------------------------------ #
    # Phase 2: conv3(+SCA,beta) -> residual -> LN2 -> conv4 -> gate ->    #
    #          conv5(+gamma) -> residual, per row tile.                   #
    # ------------------------------------------------------------------ #
    def phase2_kernel(xc_ref, gc_ref, s_ref,
                      w3_ref, b3_ref, ln2w_ref, ln2b_ref,
                      w4_ref, b4_ref, w5_ref, b5_ref, o_ref):
        x2d = xc_ref[...].astype(jnp.float32).reshape(TH2 * W, Cp)
        g2d = gc_ref[...].reshape(TH2 * W, DHp)   # stays in staging dtype

        # SCA channel scale folded into conv3's rows: (g*s)@w3 == g@(diag(s)@w3)
        w3_eff = w3_ref[...] * s_ref[...]          # (DHp, Cp) * (DHp, 1)
        y2d = x2d + mm(g2d, w3_eff) + b3_ref[...]  # beta already folded in
        # dropout1 is Identity (drop_out_rate == 0.0)

        yn = _layernorm_rows(y2d, ln2w_ref[...], ln2b_ref[...], C)
        h4 = mm(yn, w4_ref[...]) + b4_ref[...]
        gg = h4[:, :FHp] * h4[:, FHp:]             # SimpleGate
        out = y2d + mm(gg, w5_ref[...]) + b5_ref[...]   # gamma already folded in
        # dropout2 is Identity (drop_out_rate == 0.0)
        o_ref[...] = out.reshape(TH2, W, Cp).astype(o_ref.dtype)

    param2 = [w3, b3, ln2w, ln2b, w4, b4, w5, b5]
    param2_bytes = sum(int(a.size) * jnp.dtype(a.dtype).itemsize for a in param2)

    flops2 = int(N * H * W * (2 * DHp * Cp + 2 * Cp * ffn_p + 2 * FHp * Cp
                              + 10 * Cp + 2 * FHp))
    bytes2 = int(N * H * W * (2 * Cp * x_bytes + DHp * stage_bytes)
                 + N * DHp * 4 + param2_bytes)

    in_specs2 = [
        pl.BlockSpec((None, TH2, W, Cp), lambda n, t: (n, t, 0, 0)),
        pl.BlockSpec((None, TH2, W, DHp), lambda n, t: (n, t, 0, 0)),
        pl.BlockSpec((None, DHp, 1), lambda n, t: (n, 0, 0)),
    ] + [fullspec(a) for a in param2]

    out_p = pl.pallas_call(
        phase2_kernel,
        grid=(N, T2),
        in_specs=in_specs2,
        out_specs=pl.BlockSpec((None, TH2, W, Cp), lambda n, t: (n, t, 0, 0)),
        out_shape=jax.ShapeDtypeStruct((N, H, W, Cp), x.dtype),
        compiler_params=pltpu.CompilerParams(
            dimension_semantics=("parallel", "parallel"),
            vmem_limit_bytes=vmem_limit),
        cost_estimate=pl.CostEstimate(flops=flops2,
                                      transcendentals=int(N * H * W),
                                      bytes_accessed=bytes2),
    )(xp, g_staged, s3, *param2)

    return out_p if Cp == C else out_p[..., :C]


def nafblock_pallas(x_nchw, p, *, tile_rows=None, tile_rows2=None,
                    matmul_dtype=jnp.bfloat16, stage_dtype=jnp.bfloat16):
    """NCHW adapter matching the PyTorch module's layout.  Prefer calling
    nafblock_pallas_nhwc directly from an NHWC pipeline (no layout transposes
    and no trailing un-pad slice of the whole tensor)."""
    x = jnp.transpose(x_nchw, (0, 2, 3, 1))
    out = nafblock_pallas_nhwc(x, p, tile_rows=tile_rows, tile_rows2=tile_rows2,
                               matmul_dtype=matmul_dtype, stage_dtype=stage_dtype)
    return jnp.transpose(out, (0, 3, 1, 2))


def init_params(key, c, dw_expand=2, ffn_expand=2):
    dwc = c * dw_expand
    ffn = c * ffn_expand
    dwh, ffh = dwc // 2, ffn // 2
    ks = jax.random.split(key, 12)
    f = lambda k, shape, scale=0.2: jax.random.normal(k, shape, jnp.float32) * scale
    return dict(
        w1=f(ks[0], (c, dwc)),     b1=f(ks[1], (1, dwc), 0.05),
        k2=f(ks[2], (9, dwc)),     b2=f(ks[3], (1, dwc), 0.05),
        wsca=f(ks[4], (dwh, dwh)), bsca=f(ks[5], (1, dwh), 0.05),
        w3=f(ks[6], (dwh, c)),     b3=f(ks[7], (1, c), 0.05),
        w4=f(ks[8], (c, ffn)),     b4=f(ks[9], (1, ffn), 0.05),
        w5=f(ks[10], (ffh, c)),    b5=f(ks[11], (1, c), 0.05),
        ln1w=jnp.ones((1, c), jnp.float32), ln1b=jnp.zeros((1, c), jnp.float32),
        ln2w=jnp.ones((1, c), jnp.float32), ln2b=jnp.zeros((1, c), jnp.float32),
        # PyTorch initializes beta/gamma to zeros; nonzero values here so the
        # residual-scaling path is actually exercised numerically.
        beta=jnp.full((1, c), 0.5, jnp.float32),
        gamma=jnp.full((1, c), 0.25, jnp.float32),
    )


def nafblock_ref(x_nchw, p):
    # Pure-JAX reference mirroring the PyTorch forward (for sanity checking).
    x = jnp.transpose(x_nchw, (0, 2, 3, 1)).astype(jnp.float32)
    N, H, W, c = x.shape
    dwh = p['w1'].shape[1] // 2
    ffh = p['w4'].shape[1] // 2

    def ln(t, w, b):
        m = jnp.mean(t, -1, keepdims=True)
        v = jnp.mean((t - m) ** 2, -1, keepdims=True)
        return (t - m) / jnp.sqrt(v + EPS) * w[0] + b[0]

    xn = ln(x, p['ln1w'], p['ln1b'])
    h1 = xn @ p['w1'] + p['b1'][0]
    hpad = jnp.pad(h1, ((0, 0), (1, 1), (1, 1), (0, 0)))
    acc = jnp.zeros_like(h1)
    for di in range(3):
        for dj in range(3):
            acc = acc + hpad[:, di:di + H, dj:dj + W, :] * p['k2'][di * 3 + dj]
    h2 = acc + p['b2'][0]
    g = h2[..., :dwh] * h2[..., dwh:]
    pooled = jnp.mean(g, axis=(1, 2), keepdims=True)
    s = pooled @ p['wsca'] + p['bsca'][0]
    g = g * s
    h3 = g @ p['w3'] + p['b3'][0]
    y = x + h3 * p['beta'][0]
    yn = ln(y, p['ln2w'], p['ln2b'])
    h4 = yn @ p['w4'] + p['b4'][0]
    gg = h4[..., :ffh] * h4[..., ffh:]
    h5 = gg @ p['w5'] + p['b5'][0]
    out = y + h5 * p['gamma'][0]
    return jnp.transpose(out, (0, 3, 1, 2))


if __name__ == "__main__":
    key = jax.random.PRNGKey(0)
    kx, kp = jax.random.split(key)
    N, C, H, W = 2, 4, 16, 16
    x_nchw = jax.random.normal(kx, (N, C, H, W), jnp.float32)
    params = init_params(kp, C)

    ref_nchw = nafblock_ref(x_nchw, params)

    # (a) all-f32 path through the NCHW adapter (PyTorch-layout interface).
    #     tile_rows=8 -> two phase-1 row tiles (exercises the halo gating),
    #     tile_rows2=4 -> four phase-2 tiles (exercises the decoupled tiling).
    f32_fn = jax.jit(functools.partial(nafblock_pallas, tile_rows=8, tile_rows2=4,
                                       matmul_dtype=jnp.float32,
                                       stage_dtype=jnp.float32))
    out_f32 = jax.block_until_ready(f32_fn(x_nchw, params))
    if not jnp.allclose(out_f32, ref_nchw, atol=1e-2, rtol=1e-2):
        raise AssertionError("f32 Pallas NAFBlock mismatch vs JAX reference")

    # (b) default fast path: bf16 MXU operands + bf16 staged activation,
    #     NHWC-native entry (no layout transposes).
    x_nhwc = jnp.transpose(x_nchw, (0, 2, 3, 1))
    fast_fn = jax.jit(functools.partial(nafblock_pallas_nhwc, tile_rows=8))
    out_fast = jax.block_until_ready(fast_fn(x_nhwc, params))
    ref_nhwc = jnp.transpose(ref_nchw, (0, 2, 3, 1))
    if not jnp.allclose(out_fast, ref_nhwc, atol=5e-2, rtol=5e-2):
        raise AssertionError("bf16 Pallas NAFBlock mismatch vs JAX reference")

    print("KERNEL_OK")
</pallas_src>

<mosaic_0001>
module attributes {stable_mosaic.version = 11 : i64} {
  func.func @phase1_kernel(%arg0: i32, %arg1: i32, %arg2: memref<1x8x16x128xf32, #tpu.memory_space<vmem>>, %arg3: memref<1x1x16x128xf32, #tpu.memory_space<vmem>>, %arg4: memref<1x1x16x128xf32, #tpu.memory_space<vmem>>, %arg5: memref<1x128xf32, #tpu.memory_space<vmem>>, %arg6: memref<1x128xf32, #tpu.memory_space<vmem>>, %arg7: memref<128x256xf32, #tpu.memory_space<vmem>>, %arg8: memref<1x256xf32, #tpu.memory_space<vmem>>, %arg9: memref<9x256xf32, #tpu.memory_space<vmem>>, %arg10: memref<1x256xf32, #tpu.memory_space<vmem>>, %arg11: memref<1x16x256xf32, #tpu.memory_space<vmem>>, %arg12: memref<1x16x256xf32, #tpu.memory_space<vmem>>, %arg13: memref<1x8x16x128xf32, #tpu.memory_space<vmem>>, %arg14: memref<1x1x1x128xf32, #tpu.memory_space<vmem>>) attributes {dimension_semantics = [#tpu.dimension_semantics<parallel>, #tpu.dimension_semantics<parallel>], iteration_bounds = array<i64: 2, 2>, scalar_prefetch = 0 : i64, scratch_operands = 0 : i64, tpu.core_type = #tpu.core_type<tc>, window_params = [{transform_indices = @transform_0, window_bounds = array<i64: 1, 8, 16, 128>}, {transform_indices = @transform_1, window_bounds = array<i64: 1, 1, 16, 128>}, {transform_indices = @transform_2, window_bounds = array<i64: 1, 1, 16, 128>}, {pipeline_mode = #tpu.pipeline_mode<synchronous>, transform_indices = @transform_3, window_bounds = array<i64: 1, 128>}, {pipeline_mode = #tpu.pipeline_mode<synchronous>, transform_indices = @transform_4, window_bounds = array<i64: 1, 128>}, {pipeline_mode = #tpu.pipeline_mode<synchronous>, transform_indices = @transform_5, window_bounds = array<i64: 128, 256>}, {pipeline_mode = #tpu.pipeline_mode<synchronous>, transform_indices = @transform_6, window_bounds = array<i64: 1, 256>}, {pipeline_mode = #tpu.pipeline_mode<synchronous>, transform_indices = @transform_7, window_bounds = array<i64: 9, 256>}, {pipeline_mode = #tpu.pipeline_mode<synchronous>, transform_indices = @transform_8, window_bounds = array<i64: 1, 256>}, {pipeline_mode = #tpu.pipeline_mode<synchronous>, transform_indices = @transform_9, window_bounds = array<i64: 1, 16, 256>}, {pipeline_mode = #tpu.pipeline_mode<synchronous>, transform_indices = @transform_10, window_bounds = array<i64: 1, 16, 256>}, {transform_indices = @transform_11, window_bounds = array<i64: 1, 8, 16, 128>}, {transform_indices = @transform_12, window_bounds = array<i64: 1, 1, 1, 128>}]} {
    %c0 = arith.constant 0 : index
    %c0_0 = arith.constant 0 : index
    %c0_1 = arith.constant 0 : index
    %c0_2 = arith.constant 0 : index
    %0 = vector.load %arg2[%c0, %c0_0, %c0_1, %c0_2] : memref<1x8x16x128xf32, #tpu.memory_space<vmem>>, vector<1x8x16x128xf32>
    %1 = vector.shape_cast %0 : vector<1x8x16x128xf32> to vector<8x16x128xf32>
    %2 = vector.shape_cast %1 : vector<8x16x128xf32> to vector<128x128xf32>
    %c0_3 = arith.constant 0 : index
    %c0_4 = arith.constant 0 : index
    %3 = vector.load %arg5[%c0_3, %c0_4] : memref<1x128xf32, #tpu.memory_space<vmem>>, vector<1x128xf32>
    %c0_5 = arith.constant 0 : index
    %c0_6 = arith.constant 0 : index
    %4 = vector.load %arg6[%c0_5, %c0_6] : memref<1x128xf32, #tpu.memory_space<vmem>>, vector<1x128xf32>
    %cst = arith.constant dense<0.000000e+00> : vector<128xf32>
    %5 = vector.multi_reduction <add>, %2, %cst [1] : vector<128x128xf32> to vector<128xf32>
    %6 = vector.shape_cast %5 : vector<128xf32> to vector<128x1xf32>
    %cst_7 = arith.constant 2.500000e-01 : f32
    %7 = vector.broadcast %cst_7 : f32 to vector<128x1xf32>
    %8 = arith.mulf %6, %7 : vector<128x1xf32>
    %9 = arith.mulf %2, %2 : vector<128x128xf32>
    %cst_8 = arith.constant dense<0.000000e+00> : vector<128xf32>
    %10 = vector.multi_reduction <add>, %9, %cst_8 [1] : vector<128x128xf32> to vector<128xf32>
    %11 = vector.shape_cast %10 : vector<128xf32> to vector<128x1xf32>
    %cst_9 = arith.constant 2.500000e-01 : f32
    %12 = vector.broadcast %cst_9 : f32 to vector<128x1xf32>
    %13 = arith.mulf %11, %12 : vector<128x1xf32>
    %14 = arith.mulf %8, %8 : vector<128x1xf32>
    %15 = arith.subf %13, %14 : vector<128x1xf32>
    %cst_10 = arith.constant 0.000000e+00 : f32
    %16 = vector.broadcast %cst_10 : f32 to vector<128x1xf32>
    %17 = arith.maximumf %15, %16 : vector<128x1xf32>
    %18 = vector.broadcast %8 : vector<128x1xf32> to vector<128x128xf32>
    %19 = arith.subf %2, %18 : vector<128x128xf32>
    %cst_11 = arith.constant 9.99999974E-6 : f32
    %20 = vector.broadcast %cst_11 : f32 to vector<128x1xf32>
    %21 = arith.addf %17, %20 : vector<128x1xf32>
    %22 = math.rsqrt %21 : vector<128x1xf32>
    %23 = vector.broadcast %22 : vector<128x1xf32> to vector<128x128xf32>
    %24 = arith.mulf %19, %23 : vector<128x128xf32>
    %25 = vector.broadcast %3 : vector<1x128xf32> to vector<128x128xf32>
    %26 = arith.mulf %24, %25 : vector<128x128xf32>
    %27 = vector.broadcast %4 : vector<1x128xf32> to vector<128x128xf32>
    %28 = arith.addf %26, %27 : vector<128x128xf32>
    %c0_12 = arith.constant 0 : index
    %c0_13 = arith.constant 0 : index
    %29 = vector.load %arg7[%c0_12, %c0_13] : memref<128x256xf32, #tpu.memory_space<vmem>>, vector<128x256xf32>
    %cst_14 = arith.constant dense<0.000000e+00> : vector<128x256xf32>
    %30 = tpu.matmul %28, %29, %cst_14 {dimension_numbers = #tpu.dot_dimension_numbers<[1], [0], [0], [1], [0, 0, 1, 1], [], []>} : vector<128x128xf32>, vector<128x256xf32>, vector<128x256xf32> -> vector<128x256xf32>
    %c0_15 = arith.constant 0 : index
    %c0_16 = arith.constant 0 : index
    %31 = vector.load %arg8[%c0_15, %c0_16] : memref<1x256xf32, #tpu.memory_space<vmem>>, vector<1x256xf32>
    %32 = vector.broadcast %31 : vector<1x256xf32> to vector<128x256xf32>
    %33 = arith.addf %30, %32 : vector<128x256xf32>
    %34 = vector.shape_cast %33 : vector<128x256xf32> to vector<8x16x256xf32>
    %c0_17 = arith.constant 0 : index
    %c0_18 = arith.constant 0 : index
    %c0_19 = arith.constant 0 : index
    %c0_20 = arith.constant 0 : index
    %35 = vector.load %arg3[%c0_17, %c0_18, %c0_19, %c0_20] : memref<1x1x16x128xf32, #tpu.memory_space<vmem>>, vector<1x1x16x128xf32>
    %36 = vector.shape_cast %35 : vector<1x1x16x128xf32> to vector<1x16x128xf32>
    %c0_21 = arith.constant 0 : index
    %c0_22 = arith.constant 0 : index
    %c0_23 = arith.constant 0 : index
    %c0_24 = arith.constant 0 : index
    %37 = vector.load %arg4[%c0_21, %c0_22, %c0_23, %c0_24] : memref<1x1x16x128xf32, #tpu.memory_space<vmem>>, vector<1x1x16x128xf32>
    %38 = vector.shape_cast %37 : vector<1x1x16x128xf32> to vector<1x16x128xf32>
    %39 = tpu.concatenate %36, %38 in 0 : vector<1x16x128xf32>, vector<1x16x128xf32> -> vector<2x16x128xf32>
    %40 = vector.shape_cast %39 : vector<2x16x128xf32> to vector<32x128xf32>
    %c0_25 = arith.constant 0 : index
    %c0_26 = arith.constant 0 : index
    %41 = vector.load %arg5[%c0_25, %c0_26] : memref<1x128xf32, #tpu.memory_space<vmem>>, vector<1x128xf32>
    %c0_27 = arith.constant 0 : index
    %c0_28 = arith.constant 0 : index
    %42 = vector.load %arg6[%c0_27, %c0_28] : memref<1x128xf32, #tpu.memory_space<vmem>>, vector<1x128xf32>
    %cst_29 = arith.constant dense<0.000000e+00> : vector<32xf32>
    %43 = vector.multi_reduction <add>, %40, %cst_29 [1] : vector<32x128xf32> to vector<32xf32>
    %44 = vector.shape_cast %43 : vector<32xf32> to vector<32x1xf32>
    %cst_30 = arith.constant 2.500000e-01 : f32
    %45 = vector.broadcast %cst_30 : f32 to vector<32x1xf32>
    %46 = arith.mulf %44, %45 : vector<32x1xf32>
    %47 = arith.mulf %40, %40 : vector<32x128xf32>
    %cst_31 = arith.constant dense<0.000000e+00> : vector<32xf32>
    %48 = vector.multi_reduction <add>, %47, %cst_31 [1] : vector<32x128xf32> to vector<32xf32>
    %49 = vector.shape_cast %48 : vector<32xf32> to vector<32x1xf32>
    %cst_32 = arith.constant 2.500000e-01 : f32
    %50 = vector.broadcast %cst_32 : f32 to vector<32x1xf32>
    %51 = arith.mulf %49, %50 : vector<32x1xf32>
    %52 = arith.mulf %46, %46 : vector<32x1xf32>
    %53 = arith.subf %51, %52 : vector<32x1xf32>
    %cst_33 = arith.constant 0.000000e+00 : f32
    %54 = vector.broadcast %cst_33 : f32 to vector<32x1xf32>
    %55 = arith.maximumf %53, %54 : vector<32x1xf32>
    %56 = vector.broadcast %46 : vector<32x1xf32> to vector<32x128xf32>
    %57 = arith.subf %40, %56 : vector<32x128xf32>
    %cst_34 = arith.constant 9.99999974E-6 : f32
    %58 = vector.broadcast %cst_34 : f32 to vector<32x1xf32>
    %59 = arith.addf %55, %58 : vector<32x1xf32>
    %60 = math.rsqrt %59 : vector<32x1xf32>
    %61 = vector.broadcast %60 : vector<32x1xf32> to vector<32x128xf32>
    %62 = arith.mulf %57, %61 : vector<32x128xf32>
    %63 = vector.broadcast %41 : vector<1x128xf32> to vector<32x128xf32>
    %64 = arith.mulf %62, %63 : vector<32x128xf32>
    %65 = vector.broadcast %42 : vector<1x128xf32> to vector<32x128xf32>
    %66 = arith.addf %64, %65 : vector<32x128xf32>
    %c0_35 = arith.constant 0 : index
    %c0_36 = arith.constant 0 : index
    %67 = vector.load %arg7[%c0_35, %c0_36] : memref<128x256xf32, #tpu.memory_space<vmem>>, vector<128x256xf32>
    %cst_37 = arith.constant dense<0.000000e+00> : vector<32x256xf32>
    %68 = tpu.matmul %66, %67, %cst_37 {dimension_numbers = #tpu.dot_dimension_numbers<[1], [0], [0], [1], [0, 0, 1, 1], [], []>} : vector<32x128xf32>, vector<128x256xf32>, vector<32x256xf32> -> vector<32x256xf32>
    %c0_38 = arith.constant 0 : index
    %c0_39 = arith.constant 0 : index
    %69 = vector.load %arg8[%c0_38, %c0_39] : memref<1x256xf32, #tpu.memory_space<vmem>>, vector<1x256xf32>
    %70 = vector.broadcast %69 : vector<1x256xf32> to vector<32x256xf32>
    %71 = arith.addf %68, %70 : vector<32x256xf32>
    %72 = vector.shape_cast %71 : vector<32x256xf32> to vector<2x16x256xf32>
    %c0_i32 = arith.constant 0 : i32
    %73 = arith.cmpi sgt, %arg1, %c0_i32 : i32
    %74 = arith.extui %73 : i1 to i32
    %75 = arith.sitofp %74 : i32 to f32
    %c1_i32 = arith.constant 1 : i32
    %76 = arith.cmpi slt, %arg1, %c1_i32 : i32
    %77 = arith.extui %76 : i1 to i32
    %78 = arith.sitofp %77 : i32 to f32
    %79 = vector.extract_strided_slice %72 {offsets = [0, 0, 0], sizes = [1, 16, 256], strides = [1, 1, 1]} : vector<2x16x256xf32> to vector<1x16x256xf32>
    %80 = vector.broadcast %75 : f32 to vector<1x16x256xf32>
    %81 = arith.mulf %79, %80 : vector<1x16x256xf32>
    %82 = vector.extract_strided_slice %72 {offsets = [1, 0, 0], sizes = [1, 16, 256], strides = [1, 1, 1]} : vector<2x16x256xf32> to vector<1x16x256xf32>
    %83 = vector.broadcast %78 : f32 to vector<1x16x256xf32>
    %84 = arith.mulf %82, %83 : vector<1x16x256xf32>
    %85 = tpu.concatenate %81, %34, %84 in 0 : vector<1x16x256xf32>, vector<8x16x256xf32>, vector<1x16x256xf32> -> vector<10x16x256xf32>
    %c1_i32_40 = arith.constant 1 : i32
    %86 = tpu.dynamic_rotate %85 by %c1_i32_40 dim 1 : vector<10x16x256xf32>, i32 -> vector<10x16x256xf32>
    %c0_41 = arith.constant 0 : index
    %c0_42 = arith.constant 0 : index
    %c0_43 = arith.constant 0 : index
    %87 = vector.load %arg11[%c0_41, %c0_42, %c0_43] : memref<1x16x256xf32, #tpu.memory_space<vmem>>, vector<1x16x256xf32>
    %88 = vector.broadcast %87 : vector<1x16x256xf32> to vector<10x16x256xf32>
    %89 = arith.mulf %86, %88 : vector<10x16x256xf32>
    %c15_i32 = arith.constant 15 : i32
    %90 = tpu.dynamic_rotate %85 by %c15_i32 dim 1 : vector<10x16x256xf32>, i32 -> vector<10x16x256xf32>
    %c0_44 = arith.constant 0 : index
    %c0_45 = arith.constant 0 : index
    %c0_46 = arith.constant 0 : index
    %91 = vector.load %arg12[%c0_44, %c0_45, %c0_46] : memref<1x16x256xf32, #tpu.memory_space<vmem>>, vector<1x16x256xf32>
    %92 = vector.broadcast %91 : vector<1x16x256xf32> to vector<10x16x256xf32>
    %93 = arith.mulf %90, %92 : vector<10x16x256xf32>
    %c0_47 = arith.constant 0 : index
    %c0_48 = arith.constant 0 : index
    %94 = vector.load %arg9[%c0_47, %c0_48] : memref<9x256xf32, #tpu.memory_space<vmem>>, vector<9x256xf32>
    %95 = vector.extract_strided_slice %94 {offsets = [0, 0], sizes = [1, 256], strides = [1, 1]} : vector<9x256xf32> to vector<1x256xf32>
    %96 = vector.shape_cast %95 : vector<1x256xf32> to vector<1x1x256xf32>
    %97 = vector.extract_strided_slice %89 {offsets = [0, 0, 0], sizes = [8, 16, 256], strides = [1, 1, 1]} : vector<10x16x256xf32> to vector<8x16x256xf32>
    %98 = vector.broadcast %96 : vector<1x1x256xf32> to vector<8x16x256xf32>
    %99 = arith.mulf %97, %98 : vector<8x16x256xf32>
    %100 = vector.extract_strided_slice %94 {offsets = [1, 0], sizes = [1, 256], strides = [1, 1]} : vector<9x256xf32> to vector<1x256xf32>
    %101 = vector.shape_cast %100 : vector<1x256xf32> to vector<1x1x256xf32>
    %102 = vector.extract_strided_slice %85 {offsets = [0, 0, 0], sizes = [8, 16, 256], strides = [1, 1, 1]} : vector<10x16x256xf32> to vector<8x16x256xf32>
    %103 = vector.broadcast %101 : vector<1x1x256xf32> to vector<8x16x256xf32>
    %104 = arith.mulf %102, %103 : vector<8x16x256xf32>
    %105 = arith.addf %99, %104 : vector<8x16x256xf32>
    %106 = vector.extract_strided_slice %94 {offsets = [2, 0], sizes = [1, 256], strides = [1, 1]} : vector<9x256xf32> to vector<1x256xf32>
    %107 = vector.shape_cast %106 : vector<1x256xf32> to vector<1x1x256xf32>
    %108 = vector.extract_strided_slice %93 {offsets = [0, 0, 0], sizes = [8, 16, 256], strides = [1, 1, 1]} : vector<10x16x256xf32> to vector<8x16x256xf32>
    %109 = vector.broadcast %107 : vector<1x1x256xf32> to vector<8x16x256xf32>
    %110 = arith.mulf %108, %109 : vector<8x16x256xf32>
    %111 = arith.addf %105, %110 : vector<8x16x256xf32>
    %112 = vector.extract_strided_slice %94 {offsets = [3, 0], sizes = [1, 256], strides = [1, 1]} : vector<9x256xf32> to vector<1x256xf32>
    %113 = vector.shape_cast %112 : vector<1x256xf32> to vector<1x1x256xf32>
    %114 = vector.extract_strided_slice %89 {offsets = [1, 0, 0], sizes = [8, 16, 256], strides = [1, 1, 1]} : vector<10x16x256xf32> to vector<8x16x256xf32>
    %115 = vector.broadcast %113 : vector<1x1x256xf32> to vector<8x16x256xf32>
    %116 = arith.mulf %114, %115 : vector<8x16x256xf32>
    %117 = arith.addf %111, %116 : vector<8x16x256xf32>
    %118 = vector.extract_strided_slice %94 {offsets = [4, 0], sizes = [1, 256], strides = [1, 1]} : vector<9x256xf32> to vector<1x256xf32>
    %119 = vector.shape_cast %118 : vector<1x256xf32> to vector<1x1x256xf32>
    %120 = vector.extract_strided_slice %85 {offsets = [1, 0, 0], sizes = [8, 16, 256], strides = [1, 1, 1]} : vector<10x16x256xf32> to vector<8x16x256xf32>
    %121 = vector.broadcast %119 : vector<1x1x256xf32> to vector<8x16x256xf32>
    %122 = arith.mulf %120, %121 : vector<8x16x256xf32>
    %123 = arith.addf %117, %122 : vector<8x16x256xf32>
    %124 = vector.extract_strided_slice %94 {offsets = [5, 0], sizes = [1, 256], strides = [1, 1]} : vector<9x256xf32> to vector<1x256xf32>
    %125 = vector.shape_cast %124 : vector<1x256xf32> to vector<1x1x256xf32>
    %126 = vector.extract_strided_slice %93 {offsets = [1, 0, 0], sizes = [8, 16, 256], strides = [1, 1, 1]} : vector<10x16x256xf32> to vector<8x16x256xf32>
    %127 = vector.broadcast %125 : vector<1x1x256xf32> to vector<8x16x256xf32>
    %128 = arith.mulf %126, %127 : vector<8x16x256xf32>
    %129 = arith.addf %123, %128 : vector<8x16x256xf32>
    %130 = vector.extract_strided_slice %94 {offsets = [6, 0], sizes = [1, 256], strides = [1, 1]} : vector<9x256xf32> to vector<1x256xf32>
    %131 = vector.shape_cast %130 : vector<1x256xf32> to vector<1x1x256xf32>
    %132 = vector.extract_strided_slice %89 {offsets = [2, 0, 0], sizes = [8, 16, 256], strides = [1, 1, 1]} : vector<10x16x256xf32> to vector<8x16x256xf32>
    %133 = vector.broadcast %131 : vector<1x1x256xf32> to vector<8x16x256xf32>
    %134 = arith.mulf %132, %133 : vector<8x16x256xf32>
    %135 = arith.addf %129, %134 : vector<8x16x256xf32>
    %136 = vector.extract_strided_slice %94 {offsets = [7, 0], sizes = [1, 256], strides = [1, 1]} : vector<9x256xf32> to vector<1x256xf32>
    %137 = vector.shape_cast %136 : vector<1x256xf32> to vector<1x1x256xf32>
    %138 = vector.extract_strided_slice %85 {offsets = [2, 0, 0], sizes = [8, 16, 256], strides = [1, 1, 1]} : vector<10x16x256xf32> to vector<8x16x256xf32>
    %139 = vector.broadcast %137 : vector<1x1x256xf32> to vector<8x16x256xf32>
    %140 = arith.mulf %138, %139 : vector<8x16x256xf32>
    %141 = arith.addf %135, %140 : vector<8x16x256xf32>
    %142 = vector.extract_strided_slice %94 {offsets = [8, 0], sizes = [1, 256], strides = [1, 1]} : vector<9x256xf32> to vector<1x256xf32>
    %143 = vector.shape_cast %142 : vector<1x256xf32> to vector<1x1x256xf32>
    %144 = vector.extract_strided_slice %93 {offsets = [2, 0, 0], sizes = [8, 16, 256], strides = [1, 1, 1]} : vector<10x16x256xf32> to vector<8x16x256xf32>
    %145 = vector.broadcast %143 : vector<1x1x256xf32> to vector<8x16x256xf32>
    %146 = arith.mulf %144, %145 : vector<8x16x256xf32>
    %147 = arith.addf %141, %146 : vector<8x16x256xf32>
    %c0_49 = arith.constant 0 : index
    %c0_50 = arith.constant 0 : index
    %148 = vector.load %arg10[%c0_49, %c0_50] : memref<1x256xf32, #tpu.memory_space<vmem>>, vector<1x256xf32>
    %149 = vector.shape_cast %148 : vector<1x256xf32> to vector<1x1x256xf32>
    %150 = vector.broadcast %149 : vector<1x1x256xf32> to vector<8x16x256xf32>
    %151 = arith.addf %147, %150 : vector<8x16x256xf32>
    %152 = vector.extract_strided_slice %151 {offsets = [0, 0, 0], sizes = [8, 16, 128], strides = [1, 1, 1]} : vector<8x16x256xf32> to vector<8x16x128xf32>
    %153 = vector.extract_strided_slice %151 {offsets = [0, 0, 128], sizes = [8, 16, 128], strides = [1, 1, 1]} : vector<8x16x256xf32> to vector<8x16x128xf32>
    %154 = arith.mulf %152, %153 : vector<8x16x128xf32>
    %c0_51 = arith.constant 0 : index
    %c0_52 = arith.constant 0 : index
    %c0_53 = arith.constant 0 : index
    %c0_54 = arith.constant 0 : index
    %155 = vector.load %arg13[%c0_51, %c0_52, %c0_53, %c0_54] : memref<1x8x16x128xf32, #tpu.memory_space<vmem>>, vector<1x8x16x128xf32>
    %156 = vector.shape_cast %155 : vector<1x8x16x128xf32> to vector<8x16x128xf32>
    %157 = vector.shape_cast %154 : vector<8x16x128xf32> to vector<1x8x16x128xf32>
    tpu.vector_store %arg13[%c0_51, %c0_52, %c0_53, %c0_54], %157 {strides = array<i32>} : memref<1x8x16x128xf32, #tpu.memory_space<vmem>>, vector<1x8x16x128xf32>,
    %158 = vector.shape_cast %154 : vector<8x16x128xf32> to vector<128x128xf32>
    %cst_55 = arith.constant dense<0.000000e+00> : vector<128xf32>
    %159 = vector.multi_reduction <add>, %158, %cst_55 [0] : vector<128x128xf32> to vector<128xf32>
    %160 = vector.shape_cast %159 : vector<128xf32> to vector<1x128xf32>
    %c0_56 = arith.constant 0 : index
    %c0_57 = arith.constant 0 : index
    %c0_58 = arith.constant 0 : index
    %c0_59 = arith.constant 0 : index
    %161 = vector.load %arg14[%c0_56, %c0_57, %c0_58, %c0_59] : memref<1x1x1x128xf32, #tpu.memory_space<vmem>>, vector<1x1x1x128xf32>
    %162 = vector.shape_cast %161 : vector<1x1x1x128xf32> to vector<1x128xf32>
    %163 = vector.shape_cast %160 : vector<1x128xf32> to vector<1x1x1x128xf32>
    tpu.vector_store %arg14[%c0_56, %c0_57, %c0_58, %c0_59], %163 {strides = array<i32>} : memref<1x1x1x128xf32, #tpu.memory_space<vmem>>, vector<1x1x1x128xf32>,
    return
  }
  func.func @transform_0(%arg0: i32, %arg1: i32) -> (i32, i32, i32, i32) {
    %c0_i32 = arith.constant 0 : i32
    %c0_i32_0 = arith.constant 0 : i32
    %c0_i32_1 = arith.constant 0 : i32
    return %arg0, %arg1, %c0_i32, %c0_i32_0 : i32, i32, i32, i32
  }
  func.func @transform_1(%arg0: i32, %arg1: i32) -> (i32, i32, i32, i32) {
    %c8_i32 = arith.constant 8 : i32
    %0 = arith.muli %arg1, %c8_i32 : i32
    %c1_i32 = arith.constant 1 : i32
    %1 = arith.subi %0, %c1_i32 : i32
    %c0_i32 = arith.constant 0 : i32
    %2 = arith.maxsi %1, %c0_i32 : i32
    %c0_i32_0 = arith.constant 0 : i32
    %c0_i32_1 = arith.constant 0 : i32
    %c0_i32_2 = arith.constant 0 : i32
    return %arg0, %2, %c0_i32_0, %c0_i32_1 : i32, i32, i32, i32
  }
  func.func @transform_2(%arg0: i32, %arg1: i32) -> (i32, i32, i32, i32) {
    %c8_i32 = arith.constant 8 : i32
    %0 = arith.muli %arg1, %c8_i32 : i32
    %c8_i32_0 = arith.constant 8 : i32
    %1 = arith.addi %0, %c8_i32_0 : i32
    %c15_i32 = arith.constant 15 : i32
    %2 = arith.minsi %1, %c15_i32 : i32
    %c0_i32 = arith.constant 0 : i32
    %c0_i32_1 = arith.constant 0 : i32
    %c0_i32_2 = arith.constant 0 : i32
    return %arg0, %2, %c0_i32, %c0_i32_1 : i32, i32, i32, i32
  }
  func.func @transform_3(%arg0: i32, %arg1: i32) -> (i32, i32) {
    %c0_i32 = arith.constant 0 : i32
    %c0_i32_0 = arith.constant 0 : i32
    %c0_i32_1 = arith.constant 0 : i32
    return %c0_i32, %c0_i32_0 : i32, i32
  }
  func.func @transform_4(%arg0: i32, %arg1: i32) -> (i32, i32) {
    %c0_i32 = arith.constant 0 : i32
    %c0_i32_0 = arith.constant 0 : i32
    %c0_i32_1 = arith.constant 0 : i32
    return %c0_i32, %c0_i32_0 : i32, i32
  }
  func.func @transform_5(%arg0: i32, %arg1: i32) -> (i32, i32) {
    %c0_i32 = arith.constant 0 : i32
    %c0_i32_0 = arith.constant 0 : i32
    %c0_i32_1 = arith.constant 0 : i32
    return %c0_i32, %c0_i32_0 : i32, i32
  }
  func.func @transform_6(%arg0: i32, %arg1: i32) -> (i32, i32) {
    %c0_i32 = arith.constant 0 : i32
    %c0_i32_0 = arith.constant 0 : i32
    %c0_i32_1 = arith.constant 0 : i32
    return %c0_i32, %c0_i32_0 : i32, i32
  }
  func.func @transform_7(%arg0: i32, %arg1: i32) -> (i32, i32) {
    %c0_i32 = arith.constant 0 : i32
    %c0_i32_0 = arith.constant 0 : i32
    %c0_i32_1 = arith.constant 0 : i32
    return %c0_i32, %c0_i32_0 : i32, i32
  }
  func.func @transform_8(%arg0: i32, %arg1: i32) -> (i32, i32) {
    %c0_i32 = arith.constant 0 : i32
    %c0_i32_0 = arith.constant 0 : i32
    %c0_i32_1 = arith.constant 0 : i32
    return %c0_i32, %c0_i32_0 : i32, i32
  }
  func.func @transform_9(%arg0: i32, %arg1: i32) -> (i32, i32, i32) {
    %c0_i32 = arith.constant 0 : i32
    %c0_i32_0 = arith.constant 0 : i32
    %c0_i32_1 = arith.constant 0 : i32
    %c0_i32_2 = arith.constant 0 : i32
    return %c0_i32, %c0_i32_0, %c0_i32_1 : i32, i32, i32
  }
  func.func @transform_10(%arg0: i32, %arg1: i32) -> (i32, i32, i32) {
    %c0_i32 = arith.constant 0 : i32
    %c0_i32_0 = arith.constant 0 : i32
    %c0_i32_1 = arith.constant 0 : i32
    %c0_i32_2 = arith.constant 0 : i32
    return %c0_i32, %c0_i32_0, %c0_i32_1 : i32, i32, i32
  }
  func.func @transform_11(%arg0: i32, %arg1: i32) -> (i32, i32, i32, i32) {
    %c0_i32 = arith.constant 0 : i32
    %c0_i32_0 = arith.constant 0 : i32
    %c0_i32_1 = arith.constant 0 : i32
    return %arg0, %arg1, %c0_i32, %c0_i32_0 : i32, i32, i32, i32
  }
  func.func @transform_12(%arg0: i32, %arg1: i32) -> (i32, i32, i32, i32) {
    %c0_i32 = arith.constant 0 : i32
    %c0_i32_0 = arith.constant 0 : i32
    %c0_i32_1 = arith.constant 0 : i32
    return %arg0, %arg1, %c0_i32, %c0_i32_0 : i32, i32, i32, i32
  }
}

module attributes {stable_mosaic.version = 11 : i64} {
  func.func @phase2_kernel(%arg0: i32, %arg1: i32, %arg2: memref<1x4x16x128xf32, #tpu.memory_space<vmem>>, %arg3: memref<1x4x16x128xf32, #tpu.memory_space<vmem>>, %arg4: memref<1x128x1xf32, #tpu.memory_space<vmem>>, %arg5: memref<128x128xf32, #tpu.memory_space<vmem>>, %arg6: memref<1x128xf32, #tpu.memory_space<vmem>>, %arg7: memref<1x128xf32, #tpu.memory_space<vmem>>, %arg8: memref<1x128xf32, #tpu.memory_space<vmem>>, %arg9: memref<128x256xf32, #tpu.memory_space<vmem>>, %arg10: memref<1x256xf32, #tpu.memory_space<vmem>>, %arg11: memref<128x128xf32, #tpu.memory_space<vmem>>, %arg12: memref<1x128xf32, #tpu.memory_space<vmem>>, %arg13: memref<1x4x16x128xf32, #tpu.memory_space<vmem>>) attributes {dimension_semantics = [#tpu.dimension_semantics<parallel>, #tpu.dimension_semantics<parallel>], iteration_bounds = array<i64: 2, 4>, scalar_prefetch = 0 : i64, scratch_operands = 0 : i64, tpu.core_type = #tpu.core_type<tc>, window_params = [{transform_indices = @transform_0, window_bounds = array<i64: 1, 4, 16, 128>}, {transform_indices = @transform_1, window_bounds = array<i64: 1, 4, 16, 128>}, {transform_indices = @transform_2, window_bounds = array<i64: 1, 128, 1>}, {pipeline_mode = #tpu.pipeline_mode<synchronous>, transform_indices = @transform_3, window_bounds = array<i64: 128, 128>}, {pipeline_mode = #tpu.pipeline_mode<synchronous>, transform_indices = @transform_4, window_bounds = array<i64: 1, 128>}, {pipeline_mode = #tpu.pipeline_mode<synchronous>, transform_indices = @transform_5, window_bounds = array<i64: 1, 128>}, {pipeline_mode = #tpu.pipeline_mode<synchronous>, transform_indices = @transform_6, window_bounds = array<i64: 1, 128>}, {pipeline_mode = #tpu.pipeline_mode<synchronous>, transform_indices = @transform_7, window_bounds = array<i64: 128, 256>}, {pipeline_mode = #tpu.pipeline_mode<synchronous>, transform_indices = @transform_8, window_bounds = array<i64: 1, 256>}, {pipeline_mode = #tpu.pipeline_mode<synchronous>, transform_indices = @transform_9, window_bounds = array<i64: 128, 128>}, {pipeline_mode = #tpu.pipeline_mode<synchronous>, transform_indices = @transform_10, window_bounds = array<i64: 1, 128>}, {transform_indices = @transform_11, window_bounds = array<i64: 1, 4, 16, 128>}]} {
    %c0 = arith.constant 0 : index
    %c0_0 = arith.constant 0 : index
    %c0_1 = arith.constant 0 : index
    %c0_2 = arith.constant 0 : index
    %0 = vector.load %arg2[%c0, %c0_0, %c0_1, %c0_2] : memref<1x4x16x128xf32, #tpu.memory_space<vmem>>, vector<1x4x16x128xf32>
    %1 = vector.shape_cast %0 : vector<1x4x16x128xf32> to vector<4x16x128xf32>
    %2 = vector.shape_cast %1 : vector<4x16x128xf32> to vector<64x128xf32>
    %c0_3 = arith.constant 0 : index
    %c0_4 = arith.constant 0 : index
    %c0_5 = arith.constant 0 : index
    %c0_6 = arith.constant 0 : index
    %3 = vector.load %arg3[%c0_3, %c0_4, %c0_5, %c0_6] : memref<1x4x16x128xf32, #tpu.memory_space<vmem>>, vector<1x4x16x128xf32>
    %4 = vector.shape_cast %3 : vector<1x4x16x128xf32> to vector<4x16x128xf32>
    %5 = vector.shape_cast %4 : vector<4x16x128xf32> to vector<64x128xf32>
    %c0_7 = arith.constant 0 : index
    %c0_8 = arith.constant 0 : index
    %6 = vector.load %arg5[%c0_7, %c0_8] : memref<128x128xf32, #tpu.memory_space<vmem>>, vector<128x128xf32>
    %c0_9 = arith.constant 0 : index
    %c0_10 = arith.constant 0 : index
    %c0_11 = arith.constant 0 : index
    %7 = vector.load %arg4[%c0_9, %c0_10, %c0_11] : memref<1x128x1xf32, #tpu.memory_space<vmem>>, vector<1x128x1xf32>
    %8 = vector.shape_cast %7 : vector<1x128x1xf32> to vector<128x1xf32>
    %9 = vector.broadcast %8 : vector<128x1xf32> to vector<128x128xf32>
    %10 = arith.mulf %6, %9 : vector<128x128xf32>
    %cst = arith.constant dense<0.000000e+00> : vector<64x128xf32>
    %11 = tpu.matmul %5, %10, %cst {dimension_numbers = #tpu.dot_dimension_numbers<[1], [0], [0], [1], [0, 0, 1, 1], [], []>} : vector<64x128xf32>, vector<128x128xf32>, vector<64x128xf32> -> vector<64x128xf32>
    %12 = arith.addf %2, %11 : vector<64x128xf32>
    %c0_12 = arith.constant 0 : index
    %c0_13 = arith.constant 0 : index
    %13 = vector.load %arg6[%c0_12, %c0_13] : memref<1x128xf32, #tpu.memory_space<vmem>>, vector<1x128xf32>
    %14 = vector.broadcast %13 : vector<1x128xf32> to vector<64x128xf32>
    %15 = arith.addf %12, %14 : vector<64x128xf32>
    %c0_14 = arith.constant 0 : index
    %c0_15 = arith.constant 0 : index
    %16 = vector.load %arg7[%c0_14, %c0_15] : memref<1x128xf32, #tpu.memory_space<vmem>>, vector<1x128xf32>
    %c0_16 = arith.constant 0 : index
    %c0_17 = arith.constant 0 : index
    %17 = vector.load %arg8[%c0_16, %c0_17] : memref<1x128xf32, #tpu.memory_space<vmem>>, vector<1x128xf32>
    %cst_18 = arith.constant dense<0.000000e+00> : vector<64xf32>
    %18 = vector.multi_reduction <add>, %15, %cst_18 [1] : vector<64x128xf32> to vector<64xf32>
    %19 = vector.shape_cast %18 : vector<64xf32> to vector<64x1xf32>
    %cst_19 = arith.constant 2.500000e-01 : f32
    %20 = vector.broadcast %cst_19 : f32 to vector<64x1xf32>
    %21 = arith.mulf %19, %20 : vector<64x1xf32>
    %22 = arith.mulf %15, %15 : vector<64x128xf32>
    %cst_20 = arith.constant dense<0.000000e+00> : vector<64xf32>
    %23 = vector.multi_reduction <add>, %22, %cst_20 [1] : vector<64x128xf32> to vector<64xf32>
    %24 = vector.shape_cast %23 : vector<64xf32> to vector<64x1xf32>
    %cst_21 = arith.constant 2.500000e-01 : f32
    %25 = vector.broadcast %cst_21 : f32 to vector<64x1xf32>
    %26 = arith.mulf %24, %25 : vector<64x1xf32>
    %27 = arith.mulf %21, %21 : vector<64x1xf32>
    %28 = arith.subf %26, %27 : vector<64x1xf32>
    %cst_22 = arith.constant 0.000000e+00 : f32
    %29 = vector.broadcast %cst_22 : f32 to vector<64x1xf32>
    %30 = arith.maximumf %28, %29 : vector<64x1xf32>
    %31 = vector.broadcast %21 : vector<64x1xf32> to vector<64x128xf32>
    %32 = arith.subf %15, %31 : vector<64x128xf32>
    %cst_23 = arith.constant 9.99999974E-6 : f32
    %33 = vector.broadcast %cst_23 : f32 to vector<64x1xf32>
    %34 = arith.addf %30, %33 : vector<64x1xf32>
    %35 = math.rsqrt %34 : vector<64x1xf32>
    %36 = vector.broadcast %35 : vector<64x1xf32> to vector<64x128xf32>
    %37 = arith.mulf %32, %36 : vector<64x128xf32>
    %38 = vector.broadcast %16 : vector<1x128xf32> to vector<64x128xf32>
    %39 = arith.mulf %37, %38 : vector<64x128xf32>
    %40 = vector.broadcast %17 : vector<1x128xf32> to vector<64x128xf32>
    %41 = arith.addf %39, %40 : vector<64x128xf32>
    %c0_24 = arith.constant 0 : index
    %c0_25 = arith.constant 0 : index
    %42 = vector.load %arg9[%c0_24, %c0_25] : memref<128x256xf32, #tpu.memory_space<vmem>>, vector<128x256xf32>
    %cst_26 = arith.constant dense<0.000000e+00> : vector<64x256xf32>
    %43 = tpu.matmul %41, %42, %cst_26 {dimension_numbers = #tpu.dot_dimension_numbers<[1], [0], [0], [1], [0, 0, 1, 1], [], []>} : vector<64x128xf32>, vector<128x256xf32>, vector<64x256xf32> -> vector<64x256xf32>
    %c0_27 = arith.constant 0 : index
    %c0_28 = arith.constant 0 : index
    %44 = vector.load %arg10[%c0_27, %c0_28] : memref<1x256xf32, #tpu.memory_space<vmem>>, vector<1x256xf32>
    %45 = vector.broadcast %44 : vector<1x256xf32> to vector<64x256xf32>
    %46 = arith.addf %43, %45 : vector<64x256xf32>
    %47 = vector.extract_strided_slice %46 {offsets = [0, 0], sizes = [64, 128], strides = [1, 1]} : vector<64x256xf32> to vector<64x128xf32>
    %48 = vector.extract_strided_slice %46 {offsets = [0, 128], sizes = [64, 128], strides = [1, 1]} : vector<64x256xf32> to vector<64x128xf32>
    %49 = arith.mulf %47, %48 : vector<64x128xf32>
    %c0_29 = arith.constant 0 : index
    %c0_30 = arith.constant 0 : index
    %50 = vector.load %arg11[%c0_29, %c0_30] : memref<128x128xf32, #tpu.memory_space<vmem>>, vector<128x128xf32>
    %cst_31 = arith.constant dense<0.000000e+00> : vector<64x128xf32>
    %51 = tpu.matmul %49, %50, %cst_31 {dimension_numbers = #tpu.dot_dimension_numbers<[1], [0], [0], [1], [0, 0, 1, 1], [], []>} : vector<64x128xf32>, vector<128x128xf32>, vector<64x128xf32> -> vector<64x128xf32>
    %52 = arith.addf %15, %51 : vector<64x128xf32>
    %c0_32 = arith.constant 0 : index
    %c0_33 = arith.constant 0 : index
    %53 = vector.load %arg12[%c0_32, %c0_33] : memref<1x128xf32, #tpu.memory_space<vmem>>, vector<1x128xf32>
    %54 = vector.broadcast %53 : vector<1x128xf32> to vector<64x128xf32>
    %55 = arith.addf %52, %54 : vector<64x128xf32>
    %56 = vector.shape_cast %55 : vector<64x128xf32> to vector<4x16x128xf32>
    %c0_34 = arith.constant 0 : index
    %c0_35 = arith.constant 0 : index
    %c0_36 = arith.constant 0 : index
    %c0_37 = arith.constant 0 : index
    %57 = vector.load %arg13[%c0_34, %c0_35, %c0_36, %c0_37] : memref<1x4x16x128xf32, #tpu.memory_space<vmem>>, vector<1x4x16x128xf32>
    %58 = vector.shape_cast %57 : vector<1x4x16x128xf32> to vector<4x16x128xf32>
    %59 = vector.shape_cast %56 : vector<4x16x128xf32> to vector<1x4x16x128xf32>
    tpu.vector_store %arg13[%c0_34, %c0_35, %c0_36, %c0_37], %59 {strides = array<i32>} : memref<1x4x16x128xf32, #tpu.memory_space<vmem>>, vector<1x4x16x128xf32>,
    return
  }
  func.func @transform_0(%arg0: i32, %arg1: i32) -> (i32, i32, i32, i32) {
    %c0_i32 = arith.constant 0 : i32
    %c0_i32_0 = arith.constant 0 : i32
    %c0_i32_1 = arith.constant 0 : i32
    return %arg0, %arg1, %c0_i32, %c0_i32_0 : i32, i32, i32, i32
  }
  func.func @transform_1(%arg0: i32, %arg1: i32) -> (i32, i32, i32, i32) {
    %c0_i32 = arith.constant 0 : i32
    %c0_i32_0 = arith.constant 0 : i32
    %c0_i32_1 = arith.constant 0 : i32
    return %arg0, %arg1, %c0_i32, %c0_i32_0 : i32, i32, i32, i32
  }
  func.func @transform_2(%arg0: i32, %arg1: i32) -> (i32, i32, i32) {
    %c0_i32 = arith.constant 0 : i32
    %c0_i32_0 = arith.constant 0 : i32
    %c0_i32_1 = arith.constant 0 : i32
    return %arg0, %c0_i32, %c0_i32_0 : i32, i32, i32
  }
  func.func @transform_3(%arg0: i32, %arg1: i32) -> (i32, i32) {
    %c0_i32 = arith.constant 0 : i32
    %c0_i32_0 = arith.constant 0 : i32
    %c0_i32_1 = arith.constant 0 : i32
    return %c0_i32, %c0_i32_0 : i32, i32
  }
  func.func @transform_4(%arg0: i32, %arg1: i32) -> (i32, i32) {
    %c0_i32 = arith.constant 0 : i32
    %c0_i32_0 = arith.constant 0 : i32
    %c0_i32_1 = arith.constant 0 : i32
    return %c0_i32, %c0_i32_0 : i32, i32
  }
  func.func @transform_5(%arg0: i32, %arg1: i32) -> (i32, i32) {
    %c0_i32 = arith.constant 0 : i32
    %c0_i32_0 = arith.constant 0 : i32
    %c0_i32_1 = arith.constant 0 : i32
    return %c0_i32, %c0_i32_0 : i32, i32
  }
  func.func @transform_6(%arg0: i32, %arg1: i32) -> (i32, i32) {
    %c0_i32 = arith.constant 0 : i32
    %c0_i32_0 = arith.constant 0 : i32
    %c0_i32_1 = arith.constant 0 : i32
    return %c0_i32, %c0_i32_0 : i32, i32
  }
  func.func @transform_7(%arg0: i32, %arg1: i32) -> (i32, i32) {
    %c0_i32 = arith.constant 0 : i32
    %c0_i32_0 = arith.constant 0 : i32
    %c0_i32_1 = arith.constant 0 : i32
    return %c0_i32, %c0_i32_0 : i32, i32
  }
  func.func @transform_8(%arg0: i32, %arg1: i32) -> (i32, i32) {
    %c0_i32 = arith.constant 0 : i32
    %c0_i32_0 = arith.constant 0 : i32
    %c0_i32_1 = arith.constant 0 : i32
    return %c0_i32, %c0_i32_0 : i32, i32
  }
  func.func @transform_9(%arg0: i32, %arg1: i32) -> (i32, i32) {
    %c0_i32 = arith.constant 0 : i32
    %c0_i32_0 = arith.constant 0 : i32
    %c0_i32_1 = arith.constant 0 : i32
    return %c0_i32, %c0_i32_0 : i32, i32
  }
  func.func @transform_10(%arg0: i32, %arg1: i32) -> (i32, i32) {
    %c0_i32 = arith.constant 0 : i32
    %c0_i32_0 = arith.constant 0 : i32
    %c0_i32_1 = arith.constant 0 : i32
    return %c0_i32, %c0_i32_0 : i32, i32
  }
  func.func @transform_11(%arg0: i32, %arg1: i32) -> (i32, i32, i32, i32) {
    %c0_i32 = arith.constant 0 : i32
    %c0_i32_0 = arith.constant 0 : i32
    %c0_i32_1 = arith.constant 0 : i32
    return %arg0, %arg1, %c0_i32, %c0_i32_0 : i32, i32, i32, i32
  }
}

</mosaic_0001>

<bundles_post_ra>
// kernel: nafblock_pallas.3
= control target key start
LH: loop header
LB: loop body
LE: loop exit
PB: predicated region body
PF: predicated region fallthrough
CT: control target
= control target key end

     0   :  { %s1709_s17 = smov 0   ;;  %s1711_s18 = smov 0   ;;  %s2212_s0 = inlined_call_operand.vmem [shape: f32[2,16,16,128], index: 0, kind: input, shape index: {}]   ;;  %s2213_s1 = inlined_call_operand.vmem [shape: f32[2,16,16,128], index: 1, kind: input, shape index: {}]   ;;  %s2214_s2 = inlined_call_operand.vmem [shape: f32[2,128,1], index: 2, kind: input, shape index: {}]   ;;  %s2215_s3 = inlined_call_operand.vmem [shape: f32[128,128], index: 3, kind: input, shape index: {}]   ;;  %s2216_s4 = inlined_call_operand.vmem [shape: f32[1,128], index: 4, kind: input, shape index: {}]   ;;  %s2217_s5 = inlined_call_operand.vmem [shape: f32[1,128], index: 5, kind: input, shape index: {}]   ;;  %s2218_s6 = inlined_call_operand.vmem [shape: f32[1,128], index: 6, kind: input, shape index: {}]   ;;  %s2219_s7 = inlined_call_operand.vmem [shape: f32[128,256], index: 7, kind: input, shape index: {}]   ;;  %s2220_s8 = inlined_call_operand.vmem [shape: f32[1,256], index: 8, kind: input, shape index: {}]   ;;  %s2221_s9 = inlined_call_operand.vmem [shape: f32[128,128], index: 9, kind: input, shape index: {}]   ;;  %s2222_s10 = inlined_call_operand.vmem [shape: f32[1,128], index: 10, kind: input, shape index: {}]   ;;  %s2223_s11 = inlined_call_operand.vmem [shape: f32[2,16,16,128], index: 11, kind: output, shape index: {}]  }
   0x1   :  { %s1713_s19 = smov 0   ;;  %s1715_s20 = smov 0  }
   0x2   :  { %s1717_s21 = smov 0  }
   0x3 LB: > { %s30_s22 = sadd.s32 1, %s1637_s19  ;;  %s33_s23 = sadd.s32 1, %s1641_s20  ;;  %s1645_s21 = sphi %s1717_s21, %s21_s21   ;;  %s1641_s20 = sphi %s1715_s20, %s2227_s20   ;;  %s1637_s19 = sphi %s1713_s19, %s2226_s19   ;;  %s1633_s18 = sphi %s1711_s18, %s2225_s18   ;;  %s1629_s17 = sphi %s1709_s17, %s2224_s17  }
   0x4   : > { %p31_p0 = scmp.ge.s32.totalorder %s30_s22, 4  ;;  %p1357_p1 = scmp.ge.s32.totalorder %s1645_s21, 1 }
   0x5   : > { %p387_p2 = scmp.lt.s32.totalorder %s1645_s21, 9 }
   0x6   : > { %s2229_s22 = smov (%p31_p0, %s30_s22), 0  ;;  %s2231_s23 = smov (!%p31_p0, %s33_s23), %s1641_s20 }
   0x7   : > { %p388_p3 = pnand %p1357_p1, %p387_p2  ;;  %p35_p4 = scmp.ge.s32.totalorder %s2231_s23, 2 }
   0x8   : > { %p453_p5 = scmp.lt.s32.totalorder (!%p388_p3), %s1633_s18, 1  ;;  %s1358_s28 = sshll.u32 (!%p388_p3), %s1629_s17, 2 }
   0x9   : > { %s2233_s23 = smov (%p35_p4, %s2231_s23), 0  ;;  %391 = sbr.rel (%p388_p3) target bundleno = 974 (0x3ce), region = 64 }
   0xa   : > { %p455_p6 = scmp.lt.s32.totalorder (!%p388_p3), %s1358_s28, 15 }
   0xe   : > { %v1647_v0 = vmov 0   ;;  %s2235_s18 = smov (!%p453_p5, %s1633_s18), 1  ;;  %s2237_s28 = smov (!%p455_p6, %s1358_s28), 15  ;;  %v521_v18 = vld [vmem:[%s2215_s3 + $0x78] sm:$0xff]  ;;  %v520_v22 = vld [vmem:[%s2215_s3 + $0x70] sm:$0xff]  ;;  %v519_v23 = vld [vmem:[%s2215_s3 + $0x68] sm:$0xff] }
   0xf   : > { %1590 = vset.pattern.permute.xlu1 %v1647_v0  ;;  %1589 = vset.pattern.permute.xlu0 %v1647_v0  ;;  %s1378_s24 = sshll.u32 %s2235_s18, 7  ;;  %s1359_s29 = sshll.u32 %s2237_s28, 1  ;;  %v518_v27 = vld [vmem:[%s2215_s3 + $0x60] sm:$0xff]  ;;  %v517_v29 = vld [vmem:[%s2215_s3 + $0x58] sm:$0xff]  ;;  %v516_v33 = vld [vmem:[%s2215_s3 + $0x50] sm:$0xff] }
  0x10   : > { %s1747_s27 = scalar_lea.vmem %s2214_s2, %s1378_s24  ;;  %s1360_s30 = sshll.u32 %s2235_s18, 5  ;;  %v515_v35 = vld [vmem:[%s2215_s3 + $0x48] sm:$0xff]  ;;  %v514_v39 = vld [vmem:[%s2215_s3 + $0x40] sm:$0xff]  ;;  %v513_v41 = vld [vmem:[%s2215_s3 + $0x38] sm:$0xff] }
  0x11   : > { %v537_v1 = vld [vmem:[%s1747_s27 + $0x78] sm:$0xff]  ;;  %v535_v2 = vld [vmem:[%s1747_s27 + $0x68] sm:$0xff]  ;;  %v536_v3 = vld [vmem:[%s1747_s27 + $0x70] sm:$0xff]  ;;  %s459_s12 = sadd.s32 %s1360_s30, %s1359_s29 }
  0x12   : > { %615 = vperm.xlu0 %1589, %v537_v1   ;;  %605 = vperm.xlu1 %1590, %v535_v2   ;;  %v534_v4 = vld [vmem:[%s1747_s27 + $0x60] sm:$0xff]  ;;  %v533_v5 = vld [vmem:[%s1747_s27 + $0x58] sm:$0xff]  ;;  %v532_v6 = vld [vmem:[%s1747_s27 + $0x50] sm:$0xff]  ;;  %s1767_s13 = sshll.u32 %s459_s12, 3 }
  0x13   : > { %v531_v7 = vld [vmem:[%s1747_s27 + $0x48] sm:$0xff]  ;;  %v530_v8 = vld [vmem:[%s1747_s27 + $0x40] sm:$0xff]  ;;  %v529_v9 = vld [vmem:[%s1747_s27 + $0x38] sm:$0xff]  ;;  %s1773_s16 = scalar_lea.vmem %s2213_s1, %s1767_s13  ;;  %s1841_s18 = scalar_lea.vmem %s2212_s0, %s1767_s13 }
  0x14   : > { %v528_v10 = vld [vmem:[%s1747_s27 + $0x30] sm:$0xff]  ;;  %v527_v11 = vld [vmem:[%s1747_s27 + $0x28] sm:$0xff]  ;;  %v526_v12 = vld [vmem:[%s1747_s27 + $0x20] sm:$0xff]  ;;  %s488_s25 = scalar_lea.vmem %s2223_s11, %s1767_s13 }
  0x15   : > { %v525_v13 = vld [vmem:[%s1747_s27 + $0x18] sm:$0xff]  ;;  %v524_v14 = vld [vmem:[%s1747_s27 + $0x10] sm:$0xff]  ;;  %v523_v15 = vld [vmem:[%s1747_s27 + $0x8] sm:$0xff] }
  0x16   : > { %610 = vperm.xlu0 %1589, %v536_v3   ;;  %600 = vperm.xlu1 %1590, %v534_v4   ;;  %v522_v16 = vld [vmem:[%s1747_s27] sm:$0xff]  ;;  %v512_v45 = vld [vmem:[%s2215_s3 + $0x30] sm:$0xff]  ;;  %v511_v47 = vld [vmem:[%s2215_s3 + $0x28] sm:$0xff] }
  0x17   : > { %v498_v17 = vld [vmem:[%s1773_s16] sm:$0xff]  ;;  %v509_v53 = vld [vmem:[%s2215_s3 + $0x18] sm:$0xff]  ;;  %v508_v57 = vld [vmem:[%s2215_s3 + $0x10] sm:$0xff] }
  0x18   : > { %1459 = vmatprep.mubr.f32.mxu0 %v498_v17  ;;  %v510_v51 = vld [vmem:[%s2215_s3 + $0x20] sm:$0xff]  ;;  %v507_v59 = vld [vmem:[%s2215_s3 + $0x8] sm:$0xff]  ;;  %v500_v3 = vld [vmem:[%s1773_s16 + $0x10] sm:$0xff] }
  0x19   : > { %v506_v62 = vld [vmem:[%s2215_s3] sm:$0xff]  ;;  %v499_v2 = vld [vmem:[%s1773_s16 + $0x8] sm:$0xff]  ;;  %v501_v4 = vld [vmem:[%s1773_s16 + $0x18] sm:$0xff] }
  0x1a   : > { %595 = vperm.xlu0 %1589, %v533_v5   ;;  %590 = vperm.xlu1 %1590, %v532_v6   ;;  %v502_v5 = vld [vmem:[%s1773_s16 + $0x20] sm:$0xff]  ;;  %v503_v6 = vld [vmem:[%s1773_s16 + $0x28] sm:$0xff] }
  0x1e   : > { %585 = vperm.xlu0 %1589, %v531_v7   ;;  %580 = vperm.xlu1 %1590, %v530_v8   ;;  %v504_v7 = vld [vmem:[%s1773_s16 + $0x30] sm:$0xff]  ;;  %v505_v8 = vld [vmem:[%s1773_s16 + $0x38] sm:$0xff] }
  0x22   : > { %575 = vperm.xlu0 %1589, %v529_v9   ;;  %570 = vperm.xlu1 %1590, %v528_v10   ;;  %v935_v9 = vld [vmem:[%s2219_s7 + $0xf8] sm:$0xff]  ;;  %v934_v10 = vld [vmem:[%s2219_s7 + $0xf0] sm:$0xff] }
  0x23   : > { %948 = vmatprep.subr.mxu1 %v935_v9  ;;  %v912_v9 = vld [vmem:[%s2219_s7 + $0x40] sm:$0xff] }
  0x24   : > { %949 = vmatpush1.msra.mxu1 %v934_v10  ;;  %v911_v10 = vld [vmem:[%s2219_s7 + $0x38] sm:$0xff] }
  0x26   : > { %565 = vperm.xlu0 %1589, %v527_v11   ;;  %560 = vperm.xlu1 %1590, %v526_v12   ;;  %v490_v12 = vld [vmem:[%s1841_s18] sm:$0xff] }
  0x2a   : > { %555 = vperm.xlu0 %1589, %v525_v13   ;;  %550 = vperm.xlu1 %1590, %v524_v14   ;;  %v491_v13 = vld [vmem:[%s1841_s18 + $0x8] sm:$0xff] }
  0x2e   : > { %545 = vperm.xlu0 %1589, %v523_v15   ;;  %540 = vperm.xlu1 %1590, %v522_v16   ;;  %v1848_v16 = vld [vmem:[%s2216_s4] ss:$0 sm:$0xff] }
  0x8d   : > { %v616_v19 = vpop.permute.xlu0 %615  ;;  %v606_v20 = vpop.permute.xlu1 %605 }
  0x8e   : > { %v633_v21 = vmul.f32 %v616_v19, %v521_v18  ;;  %v631_v28 = vmul.f32 %v606_v20, %v519_v23  ;;  %v492_v18 = vld [vmem:[%s1841_s18 + $0x10] sm:$0xff] }
  0x90   : > { %1427 = vmatprep.subr.mxu0 %v633_v21 }
  0x91   : > { %1428 = vmatpush3.msra.mxu0 %v633_v21  ;;  %v611_v24 = vpop.permute.xlu0 %610  ;;  %v601_v25 = vpop.permute.xlu1 %600 }
  0x92   : > { %v632_v26 = vmul.f32 %v611_v24, %v520_v22  ;;  %v630_v32 = vmul.f32 %v601_v25, %v518_v27  ;;  %v493_v24 = vld [vmem:[%s1841_s18 + $0x18] sm:$0xff] }
  0x94   : > { %1429 = vmatprep.subr.mxu0 %v632_v26 }
  0x95   : > { %1430 = vmatpush3.msra.mxu0 %v632_v26  ;;  %v596_v30 = vpop.permute.xlu0 %595  ;;  %v591_v31 = vpop.permute.xlu1 %590 }
  0x96   : > { %1431 = vmatprep.subr.mxu0 %v631_v28  ;;  %v629_v34 = vmul.f32 %v596_v30, %v517_v29  ;;  %v628_v38 = vmul.f32 %v591_v31, %v516_v33 }
  0x97   : > { %1432 = vmatpush3.msra.mxu0 %v631_v28  ;;  %v494_v28 = vld [vmem:[%s1841_s18 + $0x20] sm:$0xff] }
  0x98   : > { %1433 = vmatprep.subr.mxu0 %v630_v32 }
  0x99   : > { %1434 = vmatpush3.msra.mxu0 %v630_v32  ;;  %v586_v36 = vpop.permute.xlu0 %585  ;;  %v581_v37 = vpop.permute.xlu1 %580 }
  0x9a   : > { %1435 = vmatprep.subr.mxu0 %v629_v34  ;;  %v627_v40 = vmul.f32 %v586_v36, %v515_v35  ;;  %v626_v44 = vmul.f32 %v581_v37, %v514_v39  ;;  %v495_v35 = vld [vmem:[%s1841_s18 + $0x28] sm:$0xff]  ;;  %v932_v39 = vld [vmem:[%s2219_s7 + $0xe0] sm:$0xff] }
  0x9b   : > { %1436 = vmatpush3.msra.mxu0 %v629_v34  ;;  %v933_v36 = vld [vmem:[%s2219_s7 + $0xe8] sm:$0xff] }
  0x9c   : > { %1437 = vmatprep.subr.mxu0 %v628_v38  ;;  %950 = vmatprep.subr.mxu1 %v933_v36 }
  0x9d   : > { %1438 = vmatpush3.msra.mxu0 %v628_v38  ;;  %v576_v42 = vpop.permute.xlu0 %575  ;;  %v571_v43 = vpop.permute.xlu1 %570  ;;  %951 = vmatpush1.msra.mxu1 %v932_v39 }
  0x9e   : > { %1439 = vmatprep.subr.mxu0 %v627_v40  ;;  %v625_v46 = vmul.f32 %v576_v42, %v513_v41  ;;  %v624_v50 = vmul.f32 %v571_v43, %v512_v45  ;;  %v931_v42 = vld [vmem:[%s2219_s7 + $0xd8] sm:$0xff]  ;;  %v929_v45 = vld [vmem:[%s2219_s7 + $0xc8] sm:$0xff] }
  0x9f   : > { %1440 = vmatpush3.msra.mxu0 %v627_v40  ;;  %v496_v40 = vld [vmem:[%s1841_s18 + $0x30] sm:$0xff]  ;;  %952 = vmatprep.subr.mxu1 %v931_v42 }
  0xa0   : > { %1441 = vmatprep.subr.mxu0 %v626_v44 }
  0xa1   : > { %1442 = vmatpush3.msra.mxu0 %v626_v44  ;;  %v566_v48 = vpop.permute.xlu0 %565  ;;  %v561_v49 = vpop.permute.xlu1 %560  ;;  %v930_v44 = vld [vmem:[%s2219_s7 + $0xd0] sm:$0xff] }
  0xa2   : > { %1443 = vmatprep.subr.mxu0 %v625_v46  ;;  %v623_v52 = vmul.f32 %v566_v48, %v511_v47  ;;  %v622_v56 = vmul.f32 %v561_v49, %v510_v51  ;;  %953 = vmatpush1.msra.mxu1 %v930_v44  ;;  %v928_v48 = vld [vmem:[%s2219_s7 + $0xc0] sm:$0xff]  ;;  %v927_v49 = vld [vmem:[%s2219_s7 + $0xb8] sm:$0xff]  ;;  %v926_v51 = vld [vmem:[%s2219_s7 + $0xb0] sm:$0xff] }
  0xa3   : > { %1444 = vmatpush3.msra.mxu0 %v625_v46  ;;  %954 = vmatprep.subr.mxu1 %v929_v45 }
  0xa4   : > { %1445 = vmatprep.subr.mxu0 %v624_v50  ;;  %955 = vmatpush1.msra.mxu1 %v928_v48 }
  0xa5   : > { %1446 = vmatpush3.msra.mxu0 %v624_v50  ;;  %v556_v54 = vpop.permute.xlu0 %555  ;;  %v551_v55 = vpop.permute.xlu1 %550  ;;  %956 = vmatprep.subr.mxu1 %v927_v49 }
  0xa6   : > { %1447 = vmatprep.subr.mxu0 %v623_v52  ;;  %v621_v58 = vmul.f32 %v556_v54, %v509_v53  ;;  %v620_v61 = vmul.f32 %v551_v55, %v508_v57  ;;  %957 = vmatpush1.msra.mxu1 %v926_v51  ;;  %v925_v53 = vld [vmem:[%s2219_s7 + $0xa8] sm:$0xff]  ;;  %v923_v57 = vld [vmem:[%s2219_s7 + $0x98] sm:$0xff] }
  0xa7   : > { %1448 = vmatpush3.msra.mxu0 %v623_v52  ;;  %v497_v52 = vld [vmem:[%s1841_s18 + $0x38] sm:$0xff]  ;;  %958 = vmatprep.subr.mxu1 %v925_v53 }
  0xa8   : > { %1449 = vmatprep.subr.mxu0 %v622_v56 }
  0xa9   : > { %1450 = vmatpush3.msra.mxu0 %v622_v56  ;;  %v546_v60 = vpop.permute.xlu0 %545  ;;  %v541_v63 = vpop.permute.xlu1 %540  ;;  %v924_v56 = vld [vmem:[%s2219_s7 + $0xa0] sm:$0xff] }
  0xaa   : > { %1451 = vmatprep.subr.mxu0 %v621_v58  ;;  %v619_v0 = vmul.f32 %v546_v60, %v507_v59  ;;  %v618_v1 = vmul.f32 %v541_v63, %v506_v62  ;;  %959 = vmatpush1.msra.mxu1 %v924_v56  ;;  %v922_v59 = vld [vmem:[%s2219_s7 + $0x90] sm:$0xff]  ;;  %v921_v60 = vld [vmem:[%s2219_s7 + $0x88] sm:$0xff]  ;;  %v920_v62 = vld [vmem:[%s2219_s7 + $0x80] sm:$0xff] }
  0xab   : > { %1452 = vmatpush3.msra.mxu0 %v621_v58  ;;  %960 = vmatprep.subr.mxu1 %v923_v57  ;;  %v919_v63 = vld [vmem:[%s2219_s7 + $0x78] sm:$0xff] }
  0xac   : > { %1453 = vmatprep.subr.mxu0 %v620_v61  ;;  %961 = vmatpush1.msra.mxu1 %v922_v59 }
  0xad   : > { %1454 = vmatpush3.msra.mxu0 %v620_v61  ;;  %962 = vmatprep.subr.mxu1 %v921_v60 }
  0xae   : > { %1455 = vmatprep.subr.mxu0 %v619_v0  ;;  %963 = vmatpush1.msra.mxu1 %v920_v62 }
  0xaf   : > { %1456 = vmatpush3.msra.mxu0 %v619_v0  ;;  %964 = vmatprep.subr.mxu1 %v919_v63 }
  0xb0   : > { %1457 = vmatprep.subr.mxu0 %v618_v1 }
  0xb1   : > { %1458 = vmatpush3.msra.mxu0 %v618_v1  ;;  %v918_v1 = vld [vmem:[%s2219_s7 + $0x70] sm:$0xff] }
  0xb2   : > { %1460 = vmatmul.mubr.f32.vlgmr.msra.gmra.mxu0 %v499_v2  ;;  %965 = vmatpush1.msra.mxu1 %v918_v1 }
  0xb3   : > { %1462 = vmatprep.mubr.f32.mxu0 %v500_v3  ;;  %v917_v3 = vld [vmem:[%s2219_s7 + $0x68] sm:$0xff] }
  0xb4   : > { %966 = vmatprep.subr.mxu1 %v917_v3 }
  0xb6   : > { %1463 = vmatmul.mubr.f32.gmra.mxu0 %v501_v4  ;;  %v916_v4 = vld [vmem:[%s2219_s7 + $0x60] sm:$0xff] }
  0xb7   : > { %1465 = vmatprep.mubr.f32.mxu0 %v502_v5  ;;  %967 = vmatpush1.msra.mxu1 %v916_v4  ;;  %v915_v5 = vld [vmem:[%s2219_s7 + $0x58] sm:$0xff] }
  0xb8   : > { %968 = vmatprep.subr.mxu1 %v915_v5 }
  0xba   : > { %1466 = vmatmul.mubr.f32.gmra.mxu0 %v503_v6  ;;  %v914_v6 = vld [vmem:[%s2219_s7 + $0x50] sm:$0xff] }
  0xbb   : > { %1468 = vmatprep.mubr.f32.mxu0 %v504_v7  ;;  %969 = vmatpush1.msra.mxu1 %v914_v6 }
  0xbe   : > { %1469 = vmatmul.mubr.f32.gmra.mxu0 %v505_v8  ;;  %v913_v8 = vld [vmem:[%s2219_s7 + $0x48] sm:$0xff] }
  0xbf   : > { %970 = vmatprep.subr.mxu1 %v913_v8 }
  0xc0   : > { %971 = vmatpush1.msra.mxu1 %v912_v9 }
  0xc1   : > { %972 = vmatprep.subr.mxu1 %v911_v10 }
 0x172   : > { %v1461_v11 = vpop.f32.mrf.mxu0 }
 0x173   : > { %v740_v19 = vadd.f32 %v1461_v11, %v491_v13  ;;  %v910_v11 = vld [vmem:[%s2219_s7 + $0x30] sm:$0xff]  ;;  %v908_v13 = vld [vmem:[%s2219_s7 + $0x20] sm:$0xff] }
 0x174   : > { %v700_v14 = vpop.f32.mrf.mxu0  ;;  %973 = vmatpush1.msra.mxu1 %v910_v11 }
 0x175   : > { %v739_v15 = vadd.f32 %v700_v14, %v490_v12  ;;  %v1859_v26 = vadd.f32 %v1848_v16, %v740_v19  ;;  %v909_v12 = vld [vmem:[%s2219_s7 + $0x28] sm:$0xff]  ;;  %v907_v14 = vld [vmem:[%s2219_s7 + $0x18] sm:$0xff] }
 0x176   : > { %v1464_v17 = vpop.f32.mrf.mxu0  ;;  %974 = vmatprep.subr.mxu1 %v909_v12  ;;  %v1998_v19 = vld [vmem:[%s2221_s9 + $0x78] sm:$0xff] }
 0x177   : > { %v1852_v20 = vadd.f32 %v1848_v16, %v739_v15  ;;  %v742_v30 = vadd.f32 %v1464_v17, %v493_v24  ;;  %v789_v31 = vmul.f32 %v1859_v26, %v1859_v26  ;;  %975 = vmatpush1.msra.mxu1 %v908_v13  ;;  %v906_v15 = vld [vmem:[%s2219_s7 + $0x10] sm:$0xff]  ;;  %v904_v17 = vld [vmem:[%s2219_s7] sm:$0xff]  ;;  %1471 = vmatprep.subr.mxu0 %v1998_v19  ;;  %v2025_v24 = vld [vmem:[%s2221_s9 + $0x58] sm:$0xff] }
 0x178   : > { %v710_v21 = vpop.f32.mrf.mxu0  ;;  %976 = vmatprep.subr.mxu1 %v907_v14  ;;  %1472 = vmatpush3.msra.mxu0 %v1998_v19 }
 0x179   : > { %764 = vadd.xlane.f32.xlu0 %v1852_v20  ;;  %v741_v22 = vadd.f32 %v710_v21, %v492_v18  ;;  %v788_v23 = vmul.f32 %v1852_v20, %v1852_v20  ;;  %v1870_v34 = vadd.f32 %v1848_v16, %v742_v30  ;;  %977 = vmatpush1.msra.mxu1 %v906_v15  ;;  %v1648_v18 = vmov 0.0   ;;  %v2003_v21 = vld [vmem:[%s2221_s9 + $0x70] sm:$0xff]  ;;  %v2053_v30 = vld [vmem:[%s2221_s9 + $0x38] sm:$0xff] }
 0x17a   : > { %v1467_v25 = vpop.f32.mrf.mxu0  ;;  %1012 = vmatprep.mubr.f32.mxu1 %v1648_v18  ;;  %1473 = vmatprep.subr.mxu0 %v2003_v21 }
 0x17b   : > { %v1862_v27 = vadd.f32 %v1848_v16, %v741_v22  ;;  %796 = vadd.xlane.f32.xlu1 %v788_v23  ;;  %v744_v43 = vadd.f32 %v1467_v25, %v495_v35  ;;  %v791_v46 = vmul.f32 %v1870_v34, %v1870_v34  ;;  %v2011_v22 = vld [vmem:[%s2221_s9 + $0x68] sm:$0xff]  ;;  %1474 = vmatpush3.msra.mxu0 %v2003_v21  ;;  %v2018_v23 = vld [vmem:[%s2221_s9 + $0x60] sm:$0xff]  ;;  %v2032_v25 = vld [vmem:[%s2221_s9 + $0x50] sm:$0xff] }
 0x17c   : > { %v720_v29 = vpop.f32.mrf.mxu0  ;;  %1475 = vmatprep.subr.mxu0 %v2011_v22 }
 0x17d   : > { %766 = vadd.xlane.f32.xlu0 %v1859_v26  ;;  %v743_v32 = vadd.f32 %v720_v29, %v494_v28  ;;  %v790_v38 = vmul.f32 %v1862_v27, %v1862_v27  ;;  %v1905_v50 = vadd.f32 %v1848_v16, %v744_v43  ;;  %1476 = vmatpush3.msra.mxu0 %v2011_v22  ;;  %v2039_v28 = vld [vmem:[%s2221_s9 + $0x48] sm:$0xff]  ;;  %v2046_v29 = vld [vmem:[%s2221_s9 + $0x40] sm:$0xff] }
 0x17e   : > { %v1470_v33 = vpop.f32.mrf.mxu0  ;;  %1477 = vmatprep.subr.mxu0 %v2018_v23 }
 0x17f   : > { %768 = vadd.xlane.f32.xlu1 %v1862_v27  ;;  %v1877_v37 = vadd.f32 %v1848_v16, %v743_v32  ;;  %v746_v58 = vadd.f32 %v1470_v33, %v497_v52  ;;  %v793_v61 = vmul.f32 %v1905_v50, %v1905_v50  ;;  %1478 = vmatpush3.msra.mxu0 %v2018_v23 }
 0x180   : > { %v730_v41 = vpop.f32.mrf.mxu0  ;;  %1479 = vmatprep.subr.mxu0 %v2025_v24 }
 0x181   : > { %798 = vadd.xlane.f32.xlu0 %v789_v31  ;;  %v745_v47 = vadd.f32 %v730_v41, %v496_v40  ;;  %v792_v55 = vmul.f32 %v1877_v37, %v1877_v37  ;;  %v1942_v0 = vadd.f32 %v1848_v16, %v746_v58  ;;  %1480 = vmatpush3.msra.mxu0 %v2025_v24  ;;  %v2060_v31 = vld [vmem:[%s2221_s9 + $0x30] sm:$0xff] }
 0x182   : > { %1481 = vmatprep.subr.mxu0 %v2032_v25 }
 0x183   : > { %770 = vadd.xlane.f32.xlu1 %v1870_v34  ;;  %v1915_v54 = vadd.f32 %v1848_v16, %v745_v47  ;;  %v795_v7 = vmul.f32 %v1942_v0, %v1942_v0  ;;  %v905_v16 = vld [vmem:[%s2219_s7 + $0x8] sm:$0xff]  ;;  %1482 = vmatpush3.msra.mxu0 %v2032_v25 }
 0x184   : > { %978 = vmatprep.subr.mxu1 %v905_v16  ;;  %1483 = vmatprep.subr.mxu0 %v2039_v28 }
 0x185   : > { %800 = vadd.xlane.f32.xlu0 %v790_v38  ;;  %v794_v2 = vmul.f32 %v1915_v54, %v1915_v54  ;;  %979 = vmatpush1.msra.mxu1 %v904_v17 }
 0x186   : > { %1515 = vmatprep.subr.mxu1 %v1998_v19  ;;  %1484 = vmatpush3.msra.mxu0 %v2039_v28 }
 0x187   : > { %772 = vadd.xlane.f32.xlu1 %v1877_v37  ;;  %1485 = vmatprep.subr.mxu0 %v2046_v29 }
 0x188   : > { %1486 = vmatpush3.msra.mxu0 %v2046_v29 }
 0x189   : > { %802 = vadd.xlane.f32.xlu0 %v791_v46  ;;  %1487 = vmatprep.subr.mxu0 %v2053_v30 }
 0x18a   : > { %1488 = vmatpush3.msra.mxu0 %v2053_v30 }
 0x18b   : > { %774 = vadd.xlane.f32.xlu1 %v1905_v50  ;;  %1489 = vmatprep.subr.mxu0 %v2060_v31 }
 0x18c   : > { %1490 = vmatpush3.msra.mxu0 %v2060_v31 }
 0x18d   : > { %804 = vadd.xlane.f32.xlu0 %v792_v55 }
 0x18f   : > { %776 = vadd.xlane.f32.xlu1 %v1915_v54 }
 0x191   : > { %806 = vadd.xlane.f32.xlu0 %v793_v61 }
 0x193   : > { %778 = vadd.xlane.f32.xlu1 %v1942_v0 }
 0x195   : > { %808 = vadd.xlane.f32.xlu0 %v794_v2 }
 0x199   : > { %810 = vadd.xlane.f32.xlu0 %v795_v7 }
 0x202   : > { %v765_v32 = vpop.xlane.xlu0 %764 }
 0x203   : > { %v780_v33 = vmul.f32 0.25, %v765_v32 }
 0x204   : > { %v797_v35 = vpop.xlane.xlu1 %796 }
 0x205   : > { %v820_v36 = vmul.f32 %v780_v33, %v780_v33  ;;  %v812_v38 = vmul.f32 0.25, %v797_v35  ;;  %v844_v14 = vsub.f32 %v1852_v20, %v780_v33  ;;  %v2095_v33 = vld [vmem:[%s2218_s6] ss:$0 sm:$0xff] }
 0x206   : > { %v767_v39 = vpop.xlane.xlu0 %766 }
 0x207   : > { %v828_v40 = vsub.f32 %v812_v38, %v820_v36  ;;  %v2066_v41 = vmul.f32 0.25, %v767_v39  ;;  %v2090_v36 = vld [vmem:[%s2217_s5] ss:$0 sm:$0xff] }
 0x208   : > { %v769_v42 = vpop.xlane.xlu1 %768 }
 0x209   : > { %v836_v43 = vmax.f32 %v828_v40, 0.0  ;;  %v821_v46 = vmul.f32 %v2066_v41, %v2066_v41  ;;  %v2070_v49 = vmul.f32 0.25, %v769_v42 }
 0x20a   : > { %v799_v44 = vpop.xlane.xlu0 %798 }
 0x20b   : > { %v852_v45 = vadd.f32 1e-05, %v836_v43  ;;  %v813_v47 = vmul.f32 0.25, %v799_v44  ;;  %v822_v53 = vmul.f32 %v2070_v49, %v2070_v49 }
 0x20c   : > { %v771_v48 = vpop.xlane.xlu1 %770 }
 0x20d   : > { %1591 = vrsqrt.f32 %v852_v45  ;;  %v829_v51 = vsub.f32 %v813_v47, %v821_v46  ;;  %v2074_v57 = vmul.f32 0.25, %v771_v48  ;;  %v845_v46 = vsub.f32 %v1859_v26, %v2066_v41 }
 0x20e   : > { %v801_v52 = vpop.xlane.xlu0 %800 }
 0x20f   : > { %v837_v55 = vmax.f32 %v829_v51, 0.0  ;;  %v814_v56 = vmul.f32 0.25, %v801_v52  ;;  %v823_v63 = vmul.f32 %v2074_v57, %v2074_v57 }
 0x210   : > { %v773_v58 = vpop.xlane.xlu1 %772 }
 0x211   : > { %v853_v59 = vadd.f32 1e-05, %v837_v55  ;;  %v830_v60 = vsub.f32 %v814_v56, %v822_v53  ;;  %v2078_v4 = vmul.f32 0.25, %v773_v58 }
 0x212   : > { %v803_v61 = vpop.xlane.xlu0 %802 }
 0x213   : > { %1593 = vrsqrt.f32 %v853_v59  ;;  %v838_v62 = vmax.f32 %v830_v60, 0.0  ;;  %v815_v1 = vmul.f32 0.25, %v803_v61  ;;  %v824_v7 = vmul.f32 %v2078_v4, %v2078_v4 }
 0x214   : > { %v775_v2 = vpop.xlane.xlu1 %774  ;;  %v846_v59 = vsub.f32 %v1862_v27, %v2070_v49 }
 0x215   : > { %v854_v3 = vadd.f32 1e-05, %v838_v62  ;;  %v831_v5 = vsub.f32 %v815_v1, %v823_v63  ;;  %v2082_v8 = vmul.f32 0.25, %v775_v2 }
 0x216   : > { %v805_v6 = vpop.xlane.xlu0 %804 }
 0x217   : > { %1595 = vrsqrt.f32 %v854_v3  ;;  %v816_v9 = vmul.f32 0.25, %v805_v6  ;;  %v839_v10 = vmax.f32 %v831_v5, 0.0  ;;  %v825_v17 = vmul.f32 %v2082_v8, %v2082_v8 }
 0x218   : > { %v777_v11 = vpop.xlane.xlu1 %776 }
 0x219   : > { %v832_v12 = vsub.f32 %v816_v9, %v824_v7  ;;  %v855_v15 = vadd.f32 1e-05, %v839_v10  ;;  %v2097_v43 = vmul.f32 0.25, %v777_v11 }
 0x21a   : > { %v1592_v13 = vpop.eup %1591  ;;  %v807_v16 = vpop.xlane.xlu0 %806 }
 0x21b   : > { %v840_v32 = vmax.f32 %v832_v12, 0.0  ;;  %v817_v35 = vmul.f32 0.25, %v807_v16  ;;  %1597 = vrsqrt.f32 %v855_v15  ;;  %v868_v39 = vmul.f32 %v1592_v13, %v844_v14 }
 0x21c   : > { %v779_v38 = vpop.xlane.xlu1 %778  ;;  %v826_v52 = vmul.f32 %v2097_v43, %v2097_v43  ;;  %v848_v13 = vsub.f32 %v1877_v37, %v2078_v4 }
 0x21d   : > { %v856_v40 = vadd.f32 1e-05, %v840_v32  ;;  %v833_v42 = vsub.f32 %v817_v35, %v825_v17  ;;  %v882_v45 = vmul.f32 %v2090_v36, %v868_v39  ;;  %v2102_v48 = vmul.f32 0.25, %v779_v38 }
 0x21e   : > { %v809_v44 = vpop.xlane.xlu0 %808 }
 0x21f   : > { %1599 = vrsqrt.f32 %v856_v40  ;;  %v841_v47 = vmax.f32 %v833_v42, 0.0  ;;  %v818_v53 = vmul.f32 0.25, %v809_v44  ;;  %v896_v55 = vadd.f32 %v2095_v33, %v882_v45  ;;  %v1073_v44 = vld [vmem:[%s2221_s9 + $0x20] sm:$0xff] }
 0x220   : > { %v1594_v51 = vpop.eup %1593  ;;  %v827_v41 = vmul.f32 %v2102_v48, %v2102_v48  ;;  %v851_v38 = vsub.f32 %v1942_v0, %v2102_v48  ;;  %v1069_v45 = vld [vmem:[%s2221_s9] sm:$0xff] }
 0x221   : > { %v857_v56 = vadd.f32 1e-05, %v841_v47  ;;  %v869_v58 = vmul.f32 %v1594_v51, %v845_v46  ;;  %v834_v60 = vsub.f32 %v818_v53, %v826_v52  ;;  %1013 = vmatmul.mubr.f32.vlgmr.msra.gmra.mxu1 %v896_v55  ;;  %v938_v46 = vlaneseq  ;;  %v936_v52 = vld [vmem:[%s2220_s8] sm:$0x3] }
 0x222   : > { %v811_v61 = vpop.xlane.xlu0 %810  ;;  %1018 = vmatprep.mubr.f32.mxu1 %v1648_v18  ;;  %1531 = vmatpush3.msra.mxu1 %v1998_v19  ;;  %v847_v19 = vsub.f32 %v1870_v34, %v2074_v57 }
 0x223   : > { %1601 = vrsqrt.f32 %v857_v56  ;;  %v819_v62 = vmul.f32 0.25, %v811_v61  ;;  %v883_v63 = vmul.f32 %v2090_v36, %v869_v58  ;;  %v842_v2 = vmax.f32 %v834_v60, 0.0  ;;  %1516 = vmatprep.subr.mxu1 %v2003_v21 }
 0x224   : > { %v1596_v1 = vpop.eup %1595  ;;  %1532 = vmatpush3.msra.mxu1 %v2003_v21  ;;  %v939_v47 = vshrl.u32 %v938_v46, 7 }
 0x225   : > { %v835_v3 = vsub.f32 %v819_v62, %v827_v41  ;;  %v897_v49 = vadd.f32 %v2095_v33, %v883_v63  ;;  %v870_v5 = vmul.f32 %v1596_v1, %v846_v59  ;;  %v858_v6 = vadd.f32 1e-05, %v842_v2  ;;  %1517 = vmatprep.subr.mxu1 %v2011_v22 }
 0x226   : > { %1533 = vmatpush3.msra.mxu1 %v2011_v22  ;;  %v940_v48 = vsub.s32 0, %v939_v47  ;;  %v944_v51 = vsub.s32 1, %v939_v47 }
 0x227   : > { %v843_v7 = vmax.f32 %v835_v3, 0.0  ;;  %1019 = vmatmul.mubr.f32.gmra.mxu1 %v897_v49  ;;  %v884_v9 = vmul.f32 %v2090_v36, %v870_v5  ;;  %1603 = vrsqrt.f32 %v858_v6  ;;  %1518 = vmatprep.subr.mxu1 %v2018_v23 }
 0x228   : > { %1024 = vmatprep.mubr.f32.mxu1 %v1648_v18  ;;  %v1598_v10 = vpop.eup %1597  ;;  %1534 = vmatpush3.msra.mxu1 %v2018_v23  ;;  %v849_v23 = vsub.f32 %v1905_v50, %v2082_v8  ;;  %v850_v8 = vsub.f32 %v1915_v54, %v2097_v43  ;;  %v941_v53 = vrot.slane %v936_v52, %v940_v48 }
 0x229   : > { %v859_v11 = vadd.f32 1e-05, %v843_v7  ;;  %v898_v12 = vadd.f32 %v2095_v33, %v884_v9  ;;  %v871_v21 = vmul.f32 %v1598_v10, %v847_v19  ;;  %1519 = vmatprep.subr.mxu1 %v2025_v24  ;;  %v945_v55 = vrot.slane %v936_v52, %v944_v51 }
 0x22a   : > { %1535 = vmatpush3.msra.mxu1 %v2025_v24 }
 0x22b   : > { %1605 = vrsqrt.f32 %v859_v11  ;;  %1025 = vmatmul.mubr.f32.gmra.mxu1 %v898_v12  ;;  %v885_v22 = vmul.f32 %v2090_v36, %v871_v21  ;;  %1520 = vmatprep.subr.mxu1 %v2032_v25 }
 0x22c   : > { %v1600_v57 = vpop.eup %1599  ;;  %1030 = vmatprep.mubr.f32.mxu1 %v1648_v18  ;;  %1536 = vmatpush3.msra.mxu1 %v2032_v25 }
 0x22d   : > { %v872_v14 = vmul.f32 %v1600_v57, %v848_v13  ;;  %v899_v15 = vadd.f32 %v2095_v33, %v885_v22  ;;  %1521 = vmatprep.subr.mxu1 %v2039_v28 }
 0x22e   : > { %1537 = vmatpush3.msra.mxu1 %v2039_v28 }
 0x22f   : > { %v886_v4 = vmul.f32 %v2090_v36, %v872_v14  ;;  %1031 = vmatmul.mubr.f32.gmra.mxu1 %v899_v15  ;;  %1522 = vmatprep.subr.mxu1 %v2046_v29 }
 0x230   : > { %v1602_v16 = vpop.eup %1601  ;;  %1036 = vmatprep.mubr.f32.mxu1 %v1648_v18  ;;  %1538 = vmatpush3.msra.mxu1 %v2046_v29 }
 0x231   : > { %v900_v24 = vadd.f32 %v2095_v33, %v886_v4  ;;  %v873_v17 = vmul.f32 %v1602_v16, %v849_v23  ;;  %1523 = vmatprep.subr.mxu1 %v2053_v30 }
 0x232   : > { %1539 = vmatpush3.msra.mxu1 %v2053_v30 }
 0x233   : > { %v887_v25 = vmul.f32 %v2090_v36, %v873_v17  ;;  %1037 = vmatmul.mubr.f32.gmra.mxu1 %v900_v24  ;;  %1524 = vmatprep.subr.mxu1 %v2060_v31 }
 0x234   : > { %v1604_v32 = vpop.eup %1603  ;;  %1042 = vmatprep.mubr.f32.mxu1 %v1648_v18  ;;  %1540 = vmatpush3.msra.mxu1 %v2060_v31  ;;  %v1074_v31 = vld [vmem:[%s2221_s9 + $0x28] sm:$0xff] }
 0x235   : > { %v901_v35 = vadd.f32 %v2095_v33, %v887_v25  ;;  %v874_v28 = vmul.f32 %v1604_v32, %v850_v8  ;;  %1491 = vmatprep.subr.mxu0 %v1074_v31  ;;  %1525 = vmatprep.subr.mxu1 %v1074_v31 }
 0x236   : > { %1492 = vmatpush3.msra.mxu0 %v1074_v31  ;;  %1541 = vmatpush3.msra.mxu1 %v1074_v31 }
 0x237   : > { %1043 = vmatmul.mubr.f32.gmra.mxu1 %v901_v35  ;;  %v888_v39 = vmul.f32 %v2090_v36, %v874_v28  ;;  %1493 = vmatprep.subr.mxu0 %v1073_v44 }
 0x238   : > { %v1606_v29 = vpop.eup %1605  ;;  %1048 = vmatprep.mubr.f32.mxu1 %v1648_v18  ;;  %1526 = vmatprep.subr.mxu1 %v1073_v44 }
 0x239   : > { %v875_v40 = vmul.f32 %v1606_v29, %v851_v38  ;;  %v902_v42 = vadd.f32 %v2095_v33, %v888_v39  ;;  %1494 = vmatpush3.msra.mxu0 %v1073_v44  ;;  %1542 = vmatpush3.msra.mxu1 %v1073_v44 }
 0x23b   : > { %v889_v43 = vmul.f32 %v2090_v36, %v875_v40  ;;  %1049 = vmatmul.mubr.f32.gmra.mxu1 %v902_v42  ;;  %v1071_v36 = vld [vmem:[%s2221_s9 + $0x10] sm:$0xff] }
 0x23c   : > { %1054 = vmatprep.mubr.f32.mxu1 %v1648_v18  ;;  %v1072_v18 = vld [vmem:[%s2221_s9 + $0x18] sm:$0xff] }
 0x23d   : > { %v903_v30 = vadd.f32 %v2095_v33, %v889_v43  ;;  %1495 = vmatprep.subr.mxu0 %v1072_v18  ;;  %1527 = vmatprep.subr.mxu1 %v1072_v18  ;;  %v1070_v33 = vld [vmem:[%s2221_s9 + $0x8] sm:$0xff]  ;;  %v1375_v43 = vld [vmem:[%s2222_s10] ss:$0 sm:$0xff] }
 0x23e   : > { %1496 = vmatpush3.msra.mxu0 %v1072_v18  ;;  %1543 = vmatpush3.msra.mxu1 %v1072_v18 }
 0x23f   : > { %1055 = vmatmul.mubr.f32.gmra.mxu1 %v903_v30  ;;  %1497 = vmatprep.subr.mxu0 %v1071_v36 }
 0x240   : > { %1528 = vmatprep.subr.mxu1 %v1071_v36  ;;  %1498 = vmatpush3.msra.mxu0 %v1071_v36 }
 0x241   : > { %1544 = vmatpush3.msra.mxu1 %v1071_v36  ;;  %1499 = vmatprep.subr.mxu0 %v1070_v33 }
 0x242   : > { %1529 = vmatprep.subr.mxu1 %v1070_v33  ;;  %1500 = vmatpush3.msra.mxu0 %v1070_v33 }
 0x243   : > { %1545 = vmatpush3.msra.mxu1 %v1070_v33  ;;  %1501 = vmatprep.subr.mxu0 %v1069_v45 }
 0x244   : > { %1530 = vmatprep.subr.mxu1 %v1069_v45  ;;  %1502 = vmatpush3.msra.mxu0 %v1069_v45 }
 0x245   : > { %1546 = vmatpush3.msra.mxu1 %v1069_v45 }
 0x2e1   : > { %v1014_v56 = vpop.f32.mrf.mxu1 }
 0x2e2   : > { %v1015_v59 = vadd.f32 %v1014_v56, %v941_v53 }
 0x2e3   : > { %v1016_v58 = vpop.f32.mrf.mxu1 }
 0x2e4   : > { %v1017_v60 = vadd.f32 %v1016_v58, %v945_v55 }
 0x2e6   : > { %v1061_v61 = vmul.f32 %v1017_v60, %v1015_v59 }
 0x2e7   : > { %v1020_v41 = vpop.f32.mrf.mxu1 }
 0x2e8   : > { %1503 = vmatprep.mubr.f32.mxu0 %v1061_v61  ;;  %v1021_v63 = vadd.f32 %v1020_v41, %v941_v53 }
 0x2e9   : > { %v1022_v62 = vpop.f32.mrf.mxu1 }
 0x2ea   : > { %v1023_v1 = vadd.f32 %v1022_v62, %v945_v55 }
 0x2eb   : > { %v1026_v2 = vpop.f32.mrf.mxu1 }
 0x2ec   : > { %v1062_v3 = vmul.f32 %v1023_v1, %v1021_v63  ;;  %v1027_v5 = vadd.f32 %v1026_v2, %v941_v53 }
 0x2ed   : > { %v1028_v49 = vpop.f32.mrf.mxu1 }
 0x2ee   : > { %v1029_v6 = vadd.f32 %v1028_v49, %v945_v55  ;;  %1504 = vmatmul.mubr.f32.vlgmr.msra.gmra.mxu0 %v1062_v3 }
 0x2ef   : > { %v1032_v9 = vpop.f32.mrf.mxu1 }
 0x2f0   : > { %v1063_v7 = vmul.f32 %v1029_v6, %v1027_v5  ;;  %v1033_v10 = vadd.f32 %v1032_v9, %v941_v53 }
 0x2f1   : > { %v1034_v19 = vpop.f32.mrf.mxu1 }
 0x2f2   : > { %1506 = vmatprep.mubr.f32.mxu0 %v1063_v7  ;;  %v1035_v11 = vadd.f32 %v1034_v19, %v945_v55 }
 0x2f3   : > { %v1038_v12 = vpop.f32.mrf.mxu1 }
 0x2f4   : > { %v1064_v21 = vmul.f32 %v1035_v11, %v1033_v10  ;;  %v1039_v57 = vadd.f32 %v1038_v12, %v941_v53 }
 0x2f5   : > { %v1040_v13 = vpop.f32.mrf.mxu1 }
 0x2f6   : > { %v1041_v22 = vadd.f32 %v1040_v13, %v945_v55  ;;  %1507 = vmatmul.mubr.f32.gmra.mxu0 %v1064_v21 }
 0x2f7   : > { %v1044_v14 = vpop.f32.mrf.mxu1 }
 0x2f8   : > { %v1065_v15 = vmul.f32 %v1041_v22, %v1039_v57  ;;  %v1045_v4 = vadd.f32 %v1044_v14, %v941_v53 }
 0x2f9   : > { %v1046_v23 = vpop.f32.mrf.mxu1 }
 0x2fa   : > { %v1047_v16 = vadd.f32 %v1046_v23, %v945_v55  ;;  %1509 = vmatprep.mubr.f32.mxu1 %v1065_v15 }
 0x2fb   : > { %v1050_v24 = vpop.f32.mrf.mxu1 }
 0x2fc   : > { %v1066_v17 = vmul.f32 %v1047_v16, %v1045_v4  ;;  %v1051_v8 = vadd.f32 %v1050_v24, %v941_v53 }
 0x2fd   : > { %v1052_v25 = vpop.f32.mrf.mxu1 }
 0x2fe   : > { %v1053_v32 = vadd.f32 %v1052_v25, %v945_v55  ;;  %1510 = vmatmul.mubr.f32.vlgmr.msra.gmra.mxu1 %v1066_v17 }
 0x2ff   : > { %v1056_v35 = vpop.f32.mrf.mxu1 }
 0x300   : > { %v1067_v28 = vmul.f32 %v1053_v32, %v1051_v8  ;;  %v1057_v29 = vadd.f32 %v1056_v35, %v941_v53 }
 0x301   : > { %v1058_v38 = vpop.f32.mrf.mxu1 }
 0x302   : > { %v1059_v39 = vadd.f32 %v1058_v38, %v945_v55  ;;  %1512 = vmatprep.mubr.f32.mxu1 %v1067_v28 }
 0x304   : > { %v1068_v40 = vmul.f32 %v1059_v39, %v1057_v29 }
 0x306   : > { %1513 = vmatmul.mubr.f32.gmra.mxu1 %v1068_v40 }
 0x3ae   : > { %v1505_v42 = vpop.f32.mrf.mxu0 }
 0x3af   : > { %v1191_v30 = vadd.f32 %v1505_v42, %v1859_v26 }
 0x3b0   : > { %v1151_v31 = vpop.f32.mrf.mxu0 }
 0x3b1   : > { %v1206_v44 = vadd.f32 %v1375_v43, %v1191_v30  ;;  %v1190_v18 = vadd.f32 %v1151_v31, %v1852_v20 }
 0x3b3   : > { %1214 = vst [vmem:[%s488_s25 + $0x8] sm:$0xff] %v1206_v44  ;;  %v1205_v36 = vadd.f32 %v1375_v43, %v1190_v18 }
 0x3b5   : > { %1213 = vst [vmem:[%s488_s25] sm:$0xff] %v1205_v36 }
 0x3b6   : > { %v1508_v33 = vpop.f32.mrf.mxu0 }
 0x3b7   : > { %v1193_v45 = vadd.f32 %v1508_v33, %v1870_v34 }
 0x3b8   : > { %v1161_v46 = vpop.f32.mrf.mxu0 }
 0x3b9   : > { %v1208_v47 = vadd.f32 %v1375_v43, %v1193_v45  ;;  %v1192_v48 = vadd.f32 %v1161_v46, %v1862_v27 }
 0x3bb   : > { %1216 = vst [vmem:[%s488_s25 + $0x18] sm:$0xff] %v1208_v47  ;;  %v1207_v26 = vadd.f32 %v1375_v43, %v1192_v48 }
 0x3bd   : > { %1215 = vst [vmem:[%s488_s25 + $0x10] sm:$0xff] %v1207_v26 }
 0x3be   : > { %v1511_v51 = vpop.f32.mrf.mxu1 }
 0x3bf   : > { %v1195_v52 = vadd.f32 %v1511_v51, %v1905_v50 }
 0x3c0   : > { %v1171_v53 = vpop.f32.mrf.mxu1 }
 0x3c1   : > { %v1210_v55 = vadd.f32 %v1375_v43, %v1195_v52  ;;  %v1194_v20 = vadd.f32 %v1171_v53, %v1877_v37 }
 0x3c3   : > { %1218 = vst [vmem:[%s488_s25 + $0x28] sm:$0xff] %v1210_v55  ;;  %v1209_v56 = vadd.f32 %v1375_v43, %v1194_v20 }
 0x3c5   : > { %1217 = vst [vmem:[%s488_s25 + $0x20] sm:$0xff] %v1209_v56 }
 0x3c6   : > { %v1514_v58 = vpop.f32.mrf.mxu1 }
 0x3c7   : > { %v1197_v34 = vadd.f32 %v1514_v58, %v1942_v0 }
 0x3c8   : > { %v1181_v59 = vpop.f32.mrf.mxu1 }
 0x3c9   : > { %v1212_v60 = vadd.f32 %v1375_v43, %v1197_v34  ;;  %v1196_v27 = vadd.f32 %v1181_v59, %v1915_v54 }
 0x3cb   : > { %1220 = vst [vmem:[%s488_s25 + $0x38] sm:$0xff] %v1212_v60  ;;  %v1211_v61 = vadd.f32 %v1375_v43, %v1196_v27 }
 0x3cd   : > { %1219 = vst [vmem:[%s488_s25 + $0x30] sm:$0xff] %v1211_v61 }
 0x3ce PF: > { %s21_s21 = sadd.s32 1, %s1645_s21   ;;  %s2224_s17 = smov %s1637_s19 }
 0x3cf   : > { %p18_p7 = scmp.ge.s32.totalorder %s21_s21, 10   ;;  %s2225_s18 = smov %s1641_s20 }
 0x3d0   : > { %s2226_s19 = smov %s2229_s22  ;;  %s2227_s20 = smov %s2233_s23 }
 0x3d1   :  { %20 = sbr.rel (!%p18_p7) target bundleno = 3 (0x3), region = 100 }

// kernel: nafblock_pallas.2
= control target key start
LH: loop header
LB: loop body
LE: loop exit
PB: predicated region body
PF: predicated region fallthrough
CT: control target
= control target key end

     0   :  { %s2659_s21 = smov 0   ;;  %s2661_s22 = smov 0   ;;  %s4460_s0 = inlined_call_operand.vmem [shape: f32[2,16,16,128], index: 0, kind: input, shape index: {}, may-alias: {0,1,2}]   ;;  %s4461_s1 = inlined_call_operand.vmem [shape: f32[2,16,16,128], index: 1, kind: input, shape index: {}, may-alias: {0,1,2}]   ;;  %s4462_s2 = inlined_call_operand.vmem [shape: f32[2,16,16,128], index: 2, kind: input, shape index: {}, may-alias: {0,1,2}]   ;;  %s4463_s3 = inlined_call_operand.vmem [shape: f32[1,128], index: 3, kind: input, shape index: {}]   ;;  %s4464_s4 = inlined_call_operand.vmem [shape: f32[1,128], index: 4, kind: input, shape index: {}]   ;;  %s4465_s5 = inlined_call_operand.vmem [shape: f32[128,256], index: 5, kind: input, shape index: {}]   ;;  %s4466_s6 = inlined_call_operand.vmem [shape: f32[1,256], index: 6, kind: input, shape index: {}]   ;;  %s4467_s7 = inlined_call_operand.vmem [shape: f32[9,256], index: 7, kind: input, shape index: {}]   ;;  %s4468_s8 = inlined_call_operand.vmem [shape: f32[1,256], index: 8, kind: input, shape index: {}]   ;;  %s4469_s9 = inlined_call_operand.vmem [shape: f32[1,16,256], index: 9, kind: input, shape index: {}]   ;;  %s4470_s10 = inlined_call_operand.vmem [shape: f32[1,16,256], index: 10, kind: input, shape index: {}]   ;;  %s4471_s11 = inlined_call_operand.vmem [shape: f32[2,16,16,128], index: 11, kind: output, shape index: {0}]   ;;  %s4472_s12 = inlined_call_operand.vmem [shape: f32[2,2,1,128], index: 12, kind: output, shape index: {1}]  }
   0x1   :  { %4543 = sst [smem:[#allocation55_spill]] %s4460_s0  ;;  %s2663_s23 = smov 0  }
   0x2   :  { %s2665_s24 = smov 0   ;;  %s2667_s25 = smov 0  }
   0x3 LB: > { %s32_s26 = sadd.s32 1, %s2583_s23  ;;  %s35_s27 = sadd.s32 1, %s2587_s24  ;;  %s2591_s25 = sphi %s2667_s25, %s23_s25   ;;  %s2587_s24 = sphi %s2665_s24, %s4711_s24   ;;  %s2583_s23 = sphi %s2663_s23, %s4710_s23   ;;  %s2579_s22 = sphi %s2661_s22, %s4709_s22   ;;  %s2575_s21 = sphi %s2659_s21, %s4708_s21  }
   0x4   : > { %p33_p0 = scmp.ge.s32.totalorder %s32_s26, 2  ;;  %p2427_p1 = scmp.ge.s32.totalorder %s2591_s25, 1 }
   0x5   : > { %p453_p2 = scmp.lt.s32.totalorder %s2591_s25, 5 }
   0x6   : > { %s4713_s26 = smov (%p33_p0, %s32_s26), 0  ;;  %s4715_s27 = smov (!%p33_p0, %s35_s27), %s2587_s24 }
   0x7   : > { %4544 = sst [smem:[#allocation2_spill]] %s4713_s26  ;;  %p454_p3 = pnand %p2427_p1, %p453_p2 }
   0x8   : > { %p37_p4 = scmp.ge.s32.totalorder %s4715_s27, 2 }
   0x9   : > { %457 = sbr.rel (%p454_p3) target bundleno = 652 (0x28c), region = 64 }
   0xa   : > { %s4717_s27 = smov (%p37_p4, %s4715_s27), 0 }
   0xb   : > { %4545 = sst [smem:[#allocation3_spill]] %s4717_s27 }
   0xe   : > { %s2428_s28 = sshll.u32 %s2575_s21, 3  ;;  %p539_p5 = scmp.lt.s32.totalorder %s2579_s22, 1  ;;  %v918_v12 = vld [vmem:[%s4465_s5 + $0xf8] sm:$0xff]  ;;  %v917_v13 = vld [vmem:[%s4465_s5 + $0xf0] sm:$0xff]  ;;  %v916_v14 = vld [vmem:[%s4465_s5 + $0xe8] sm:$0xff]  ;;  %v2593_v56 = vmov 0.0  }
   0xf   : > { %p541_p6 = scmp.lt.s32.totalorder %s2428_s28, 15  ;;  %s2433_s29 = sadd.s32 4294967295, %s2428_s28  ;;  %931 = vmatprep.subr.mxu0 %v918_v12  ;;  %1160 = vmatprep.subr.mxu1 %v918_v12  ;;  %v915_v15 = vld [vmem:[%s4465_s5 + $0xe0] sm:$0xff]  ;;  %v914_v18 = vld [vmem:[%s4465_s5 + $0xd8] sm:$0xff]  ;;  %v913_v19 = vld [vmem:[%s4465_s5 + $0xd0] sm:$0xff] }
  0x10   : > { %s4719_s22 = smov (!%p539_p5, %s2579_s22), 1  ;;  %p551_p7 = scmp.gt.s32.totalorder %s2433_s29, 0  ;;  %932 = vmatpush1.msra.mxu0 %v917_v13  ;;  %1161 = vmatpush1.msra.mxu1 %v917_v13  ;;  %v912_v22 = vld [vmem:[%s4465_s5 + $0xc8] sm:$0xff]  ;;  %v911_v23 = vld [vmem:[%s4465_s5 + $0xc0] sm:$0xff]  ;;  %v910_v24 = vld [vmem:[%s4465_s5 + $0xb8] sm:$0xff] }
  0x11   : > { %s542_s30 = scalar_select %p541_p6, %s2428_s28, 15  ;;  %933 = vmatprep.subr.mxu0 %v916_v14  ;;  %1162 = vmatprep.subr.mxu1 %v916_v14  ;;  %v909_v25 = vld [vmem:[%s4465_s5 + $0xb0] sm:$0xff]  ;;  %v908_v26 = vld [vmem:[%s4465_s5 + $0xa8] sm:$0xff]  ;;  %v907_v29 = vld [vmem:[%s4465_s5 + $0xa0] sm:$0xff] }
  0x12   : > { %s2695_s13 = sshll.u32 %s4719_s22, 5  ;;  %s567_s16 = sadd.s32 8, %s2428_s28  ;;  %934 = vmatpush1.msra.mxu0 %v915_v15  ;;  %1163 = vmatpush1.msra.mxu1 %v915_v15  ;;  %v906_v30 = vld [vmem:[%s4465_s5 + $0x98] sm:$0xff]  ;;  %v905_v33 = vld [vmem:[%s4465_s5 + $0x90] sm:$0xff]  ;;  %v904_v35 = vld [vmem:[%s4465_s5 + $0x88] sm:$0xff] }
  0x13   : > { %s2429_s14 = sshll.u32 %s542_s30, 1  ;;  %p2701_p8 = scmp.lt.s32.totalorder %s567_s16, 15  ;;  %935 = vmatprep.subr.mxu0 %v914_v18  ;;  %1164 = vmatprep.subr.mxu1 %v914_v18  ;;  %v903_v36 = vld [vmem:[%s4465_s5 + $0x80] sm:$0xff]  ;;  %v902_v38 = vld [vmem:[%s4465_s5 + $0x78] sm:$0xff]  ;;  %v901_v40 = vld [vmem:[%s4465_s5 + $0x70] sm:$0xff] }
  0x14   : > { %s2698_s15 = sadd.s32 %s2695_s13, %s2429_s14  ;;  %s4547_s0 = sld [smem:[#allocation55_spill]]  ;;  %936 = vmatpush1.msra.mxu0 %v913_v19  ;;  %1165 = vmatpush1.msra.mxu1 %v913_v19  ;;  %v900_v41 = vld [vmem:[%s4465_s5 + $0x68] sm:$0xff]  ;;  %v899_v43 = vld [vmem:[%s4465_s5 + $0x60] sm:$0xff]  ;;  %v898_v45 = vld [vmem:[%s4465_s5 + $0x58] sm:$0xff] }
  0x15   : > { %s4473_s17 = sshll.u32 %s2698_s15, 3  ;;  %p2434_p9 = scmp.lt.s32.totalorder %s2433_s29, 15  ;;  %937 = vmatprep.subr.mxu0 %v912_v22  ;;  %1166 = vmatprep.subr.mxu1 %v912_v22  ;;  %v897_v46 = vld [vmem:[%s4465_s5 + $0x50] sm:$0xff]  ;;  %v896_v48 = vld [vmem:[%s4465_s5 + $0x48] sm:$0xff]  ;;  %v895_v50 = vld [vmem:[%s4465_s5 + $0x40] sm:$0xff] }
  0x16   : > { %s4721_s29 = smov (!%p551_p7, %s2433_s29), 0  ;;  %s4723_s16 = smov (!%p2701_p8, %s567_s16), 15  ;;  %938 = vmatpush1.msra.mxu0 %v911_v23  ;;  %1167 = vmatpush1.msra.mxu1 %v911_v23  ;;  %v894_v51 = vld [vmem:[%s4465_s5 + $0x38] sm:$0xff]  ;;  %v893_v53 = vld [vmem:[%s4465_s5 + $0x30] sm:$0xff]  ;;  %v892_v55 = vld [vmem:[%s4465_s5 + $0x28] sm:$0xff] }
  0x17   : > { %s4725_s16 = smov (!%p2701_p8, %s4723_s16), 15  ;;  %s4727_s29 = smov (!%p2434_p9, %s4721_s29), 15  ;;  %939 = vmatprep.subr.mxu0 %v910_v24  ;;  %1168 = vmatprep.subr.mxu1 %v910_v24  ;;  %v891_v57 = vld [vmem:[%s4465_s5 + $0x20] sm:$0xff]  ;;  %v890_v59 = vld [vmem:[%s4465_s5 + $0x18] sm:$0xff]  ;;  %v889_v61 = vld [vmem:[%s4465_s5 + $0x10] sm:$0xff] }
  0x18   : > { %s2732_s28 = sshll.u32 %s4725_s16, 1  ;;  %s2439_s14 = sshll.u32 %s4727_s29, 1  ;;  %940 = vmatpush1.msra.mxu0 %v909_v25  ;;  %1169 = vmatpush1.msra.mxu1 %v909_v25  ;;  %v888_v62 = vld [vmem:[%s4465_s5 + $0x8] sm:$0xff] }
  0x19   : > { %s559_s16 = sadd.s32 %s2439_s14, %s2695_s13  ;;  %941 = vmatprep.subr.mxu0 %v908_v26  ;;  %1170 = vmatprep.subr.mxu1 %v908_v26  ;;  %s4548_s19 = sadd.s32 %s2732_s28, %s2695_s13 }
  0x1a   : > { %s2710_s27 = scalar_lea.vmem %s4547_s0, %s4473_s17  ;;  %s2441_s18 = sshll.u32 %s559_s16, 3  ;;  %942 = vmatpush1.msra.mxu0 %v907_v29  ;;  %1171 = vmatpush1.msra.mxu1 %v907_v29 }
  0x1b   : > { %v2713_v0 = vld [vmem:[%s2710_s27 + $0x8] sm:$0xff]  ;;  %v2716_v1 = vld [vmem:[%s2710_s27] sm:$0xff]  ;;  %v2725_v3 = vld [vmem:[%s2710_s27 + $0x10] sm:$0xff]  ;;  %s2762_s30 = scalar_lea.vmem %s4461_s1, %s2441_s18  ;;  %943 = vmatprep.subr.mxu0 %v906_v30  ;;  %1172 = vmatprep.subr.mxu1 %v906_v30  ;;  %s2448_s17 = sshll.u32 %s4548_s19, 3 }
  0x1c   : > { %621 = vadd.xlane.f32.xlu1 %v2713_v0  ;;  %619 = vadd.xlane.f32.xlu0 %v2716_v1  ;;  %v668_v2 = vmul.f32 %v2713_v0, %v2713_v0  ;;  %v669_v4 = vmul.f32 %v2725_v3, %v2725_v3  ;;  %v2735_v5 = vld [vmem:[%s2710_s27 + $0x18] sm:$0xff]  ;;  %v667_v7 = vmul.f32 %v2716_v1, %v2716_v1  ;;  %v2745_v8 = vld [vmem:[%s2710_s27 + $0x20] sm:$0xff]  ;;  %v2751_v10 = vld [vmem:[%s2710_s27 + $0x28] sm:$0xff]  ;;  %s578_s20 = scalar_lea.vmem %s4462_s2, %s2448_s17  ;;  %p1249_p10 = scmp.gt.s32.totalorder %s2575_s21, 0 }
  0x1d   : > { %v670_v6 = vmul.f32 %v2735_v5, %v2735_v5  ;;  %v671_v9 = vmul.f32 %v2745_v8, %v2745_v8  ;;  %v672_v11 = vmul.f32 %v2751_v10, %v2751_v10  ;;  %v2775_v16 = vld [vmem:[%s2762_s30] sm:$0xff]  ;;  %v2778_v17 = vld [vmem:[%s2710_s27 + $0x30] sm:$0xff]  ;;  %v2808_v27 = vld [vmem:[%s2762_s30 + $0x8] sm:$0xff]  ;;  %944 = vmatpush1.msra.mxu0 %v905_v33  ;;  %1173 = vmatpush1.msra.mxu1 %v905_v33  ;;  %s4607_s19 = sshll.u32 %s2698_s15, 3  ;;  %p596_p11 = scmp.lt.s32.totalorder %s2575_s21, 1 }
  0x1e   : > { %v1108_v20 = vmul.f32 %v2775_v16, %v2775_v16  ;;  %v673_v21 = vmul.f32 %v2778_v17, %v2778_v17  ;;  %v2811_v28 = vld [vmem:[%s2710_s27 + $0x38] sm:$0xff]  ;;  %v1109_v31 = vmul.f32 %v2808_v27, %v2808_v27  ;;  %v2829_v34 = vld [vmem:[%s2710_s27 + $0x40] sm:$0xff]  ;;  %v2843_v39 = vld [vmem:[%s2710_s27 + $0x48] sm:$0xff]  ;;  %945 = vmatprep.subr.mxu0 %v904_v35  ;;  %1174 = vmatprep.subr.mxu1 %v904_v35  ;;  %s3146_s30 = scalar_select %p1249_p10, 1, 0 }
  0x1f   : > { %v674_v32 = vmul.f32 %v2811_v28, %v2811_v28  ;;  %v675_v37 = vmul.f32 %v2829_v34, %v2829_v34  ;;  %946 = vmatpush1.msra.mxu0 %v903_v36  ;;  %1175 = vmatpush1.msra.mxu1 %v903_v36  ;;  %v676_v42 = vmul.f32 %v2843_v39, %v2843_v39  ;;  %v2858_v44 = vld [vmem:[%s2710_s27 + $0x50] sm:$0xff]  ;;  %v2873_v49 = vld [vmem:[%s2710_s27 + $0x58] sm:$0xff]  ;;  %v2888_v54 = vld [vmem:[%s2710_s27 + $0x60] sm:$0xff]  ;;  %s4284_s29 = scalar_select %p596_p11, 1, 0 }
  0x20   : > { %685 = vadd.xlane.f32.xlu1 %v668_v2  ;;  %623 = vadd.xlane.f32.xlu0 %v2725_v3  ;;  %v677_v47 = vmul.f32 %v2858_v44, %v2858_v44  ;;  %v678_v52 = vmul.f32 %v2873_v49, %v2873_v49  ;;  %v679_v58 = vmul.f32 %v2888_v54, %v2888_v54  ;;  %v2904_v60 = vld [vmem:[%s2710_s27 + $0x68] sm:$0xff]  ;;  %v887_v2 = vld [vmem:[%s4465_s5] sm:$0xff]  ;;  %s1251_s18 = scvt.s32.f32 %s3146_s30  ;;  %s4729_s21 = smov (!%p596_p11, %s2575_s21), 1 }
  0x21   : > { %947 = vmatprep.subr.mxu0 %v902_v38  ;;  %1176 = vmatprep.subr.mxu1 %v902_v38  ;;  %v680_v63 = vmul.f32 %v2904_v60, %v2904_v60  ;;  %v2943_v13 = vld [vmem:[%s578_s20 + $0x8] sm:$0xff]  ;;  %s1254_s14 = scvt.s32.f32 %s4284_s29  ;;  %s2453_s16 = sshll.u32 %s4719_s22, 1 }
  0x22   : > { %948 = vmatpush1.msra.mxu0 %v901_v40  ;;  %1177 = vmatpush1.msra.mxu1 %v901_v40  ;;  %v1111_v14 = vmul.f32 %v2943_v13, %v2943_v13 }
  0x23   : > { %949 = vmatprep.subr.mxu0 %v900_v41  ;;  %1178 = vmatprep.subr.mxu1 %v900_v41 }
  0x24   : > { %687 = vadd.xlane.f32.xlu1 %v669_v4  ;;  %625 = vadd.xlane.f32.xlu0 %v2735_v5  ;;  %v2919_v4 = vld [vmem:[%s2710_s27 + $0x70] sm:$0xff] }
  0x25   : > { %950 = vmatpush1.msra.mxu0 %v899_v43  ;;  %1179 = vmatpush1.msra.mxu1 %v899_v43 }
  0x26   : > { %951 = vmatprep.subr.mxu0 %v898_v45  ;;  %1180 = vmatprep.subr.mxu1 %v898_v45 }
  0x27   : > { %952 = vmatpush1.msra.mxu0 %v897_v46  ;;  %1181 = vmatpush1.msra.mxu1 %v897_v46 }
  0x28   : > { %689 = vadd.xlane.f32.xlu1 %v670_v6  ;;  %683 = vadd.xlane.f32.xlu0 %v667_v7  ;;  %v681_v6 = vmul.f32 %v2919_v4, %v2919_v4  ;;  %v2932_v7 = vld [vmem:[%s578_s20] sm:$0xff] }
  0x29   : > { %953 = vmatprep.subr.mxu0 %v896_v48  ;;  %1182 = vmatprep.subr.mxu1 %v896_v48 }
  0x2a   : > { %954 = vmatpush1.msra.mxu0 %v895_v50  ;;  %1183 = vmatpush1.msra.mxu1 %v895_v50 }
  0x2b   : > { %955 = vmatprep.subr.mxu0 %v894_v51  ;;  %995 = vmatprep.mubr.f32.mxu0 %v2593_v56 }
  0x2c   : > { %691 = vadd.xlane.f32.xlu1 %v671_v9  ;;  %627 = vadd.xlane.f32.xlu0 %v2745_v8  ;;  %v2935_v9 = vld [vmem:[%s2710_s27 + $0x78] sm:$0xff] }
  0x2d   : > { %956 = vmatpush1.msra.mxu0 %v893_v53  ;;  %1184 = vmatprep.subr.mxu1 %v894_v51  ;;  %v682_v12 = vmul.f32 %v2935_v9, %v2935_v9 }
  0x2e   : > { %957 = vmatprep.subr.mxu0 %v892_v55  ;;  %1185 = vmatpush1.msra.mxu1 %v893_v53 }
  0x2f   : > { %958 = vmatpush1.msra.mxu0 %v891_v57  ;;  %1186 = vmatprep.subr.mxu1 %v892_v55 }
  0x30   : > { %693 = vadd.xlane.f32.xlu1 %v672_v11  ;;  %629 = vadd.xlane.f32.xlu0 %v2751_v10  ;;  %v1110_v11 = vmul.f32 %v2932_v7, %v2932_v7 }
  0x31   : > { %959 = vmatprep.subr.mxu0 %v890_v59  ;;  %1187 = vmatpush1.msra.mxu1 %v891_v57 }
  0x32   : > { %960 = vmatpush1.msra.mxu0 %v889_v61  ;;  %1188 = vmatprep.subr.mxu1 %v890_v59 }
  0x33   : > { %961 = vmatprep.subr.mxu0 %v888_v62  ;;  %1189 = vmatpush1.msra.mxu1 %v889_v61 }
  0x34   : > { %1096 = vadd.xlane.f32.xlu1 %v2775_v16  ;;  %631 = vadd.xlane.f32.xlu0 %v2778_v17 }
  0x35   : > { %962 = vmatpush1.msra.mxu0 %v887_v2  ;;  %1190 = vmatprep.subr.mxu1 %v888_v62 }
  0x36   : > { %1191 = vmatpush1.msra.mxu1 %v887_v2  ;;  %1224 = vmatprep.mubr.f32.mxu1 %v2593_v56 }
  0x38   : > { %1112 = vadd.xlane.f32.xlu1 %v1108_v20  ;;  %695 = vadd.xlane.f32.xlu0 %v673_v21 }
  0x3c   : > { %1098 = vadd.xlane.f32.xlu1 %v2808_v27  ;;  %633 = vadd.xlane.f32.xlu0 %v2811_v28 }
  0x40   : > { %1114 = vadd.xlane.f32.xlu1 %v1109_v31  ;;  %697 = vadd.xlane.f32.xlu0 %v674_v32 }
  0x44   : > { %699 = vadd.xlane.f32.xlu1 %v675_v37  ;;  %635 = vadd.xlane.f32.xlu0 %v2829_v34 }
  0x48   : > { %701 = vadd.xlane.f32.xlu1 %v676_v42  ;;  %637 = vadd.xlane.f32.xlu0 %v2843_v39 }
  0x4c   : > { %703 = vadd.xlane.f32.xlu1 %v677_v47  ;;  %639 = vadd.xlane.f32.xlu0 %v2858_v44 }
  0x50   : > { %705 = vadd.xlane.f32.xlu1 %v678_v52  ;;  %641 = vadd.xlane.f32.xlu0 %v2873_v49 }
  0x54   : > { %707 = vadd.xlane.f32.xlu1 %v679_v58  ;;  %643 = vadd.xlane.f32.xlu0 %v2888_v54 }
  0x58   : > { %709 = vadd.xlane.f32.xlu1 %v680_v63  ;;  %645 = vadd.xlane.f32.xlu0 %v2904_v60 }
  0x5c   : > { %711 = vadd.xlane.f32.xlu1 %v681_v6  ;;  %647 = vadd.xlane.f32.xlu0 %v2919_v4 }
  0x60   : > { %1100 = vadd.xlane.f32.xlu1 %v2932_v7  ;;  %649 = vadd.xlane.f32.xlu0 %v2935_v9 }
  0x64   : > { %1116 = vadd.xlane.f32.xlu1 %v1110_v11  ;;  %713 = vadd.xlane.f32.xlu0 %v682_v12 }
  0x68   : > { %1102 = vadd.xlane.f32.xlu0 %v2943_v13  ;;  %1118 = vadd.xlane.f32.xlu1 %v1111_v14 }
  0xa5   : > { %v622_v15 = vpop.xlane.xlu1 %621  ;;  %v620_v18 = vpop.xlane.xlu0 %619 }
  0xa6   : > { %v2948_v19 = vmul.f32 0.25, %v622_v15  ;;  %v2954_v30 = vmul.f32 0.25, %v620_v18 }
  0xa8   : > { %v732_v20 = vmul.f32 %v2948_v19, %v2948_v19  ;;  %v731_v40 = vmul.f32 %v2954_v30, %v2954_v30 }
  0xa9   : > { %v686_v21 = vpop.xlane.xlu1 %685  ;;  %v624_v22 = vpop.xlane.xlu0 %623 }
  0xaa   : > { %v716_v23 = vmul.f32 0.25, %v686_v21  ;;  %v2952_v24 = vmul.f32 0.25, %v624_v22 }
  0xac   : > { %v748_v25 = vsub.f32 %v716_v23, %v732_v20  ;;  %v733_v32 = vmul.f32 %v2952_v24, %v2952_v24 }
  0xad   : > { %v688_v26 = vpop.xlane.xlu1 %687  ;;  %v626_v29 = vpop.xlane.xlu0 %625 }
  0xae   : > { %v717_v31 = vmul.f32 0.25, %v688_v26  ;;  %v2958_v33 = vmul.f32 0.25, %v626_v29  ;;  %v764_v35 = vmax.f32 %v748_v25, 0.0 }
  0xb0   : > { %v749_v36 = vsub.f32 %v717_v31, %v733_v32  ;;  %v734_v43 = vmul.f32 %v2958_v33, %v2958_v33  ;;  %v796_v46 = vadd.f32 1e-05, %v764_v35 }
  0xb1   : > { %v690_v37 = vpop.xlane.xlu1 %689  ;;  %v684_v38 = vpop.xlane.xlu0 %683 }
  0xb2   : > { %v718_v41 = vmul.f32 0.25, %v690_v37  ;;  %v715_v42 = vmul.f32 0.25, %v684_v38  ;;  %v765_v47 = vmax.f32 %v749_v36, 0.0  ;;  %2503 = vrsqrt.f32 %v796_v46 }
  0xb4   : > { %v747_v45 = vsub.f32 %v715_v42, %v731_v40  ;;  %v750_v48 = vsub.f32 %v718_v41, %v734_v43  ;;  %v797_v58 = vadd.f32 1e-05, %v765_v47 }
  0xb5   : > { %v692_v50 = vpop.xlane.xlu1 %691  ;;  %v628_v51 = vpop.xlane.xlu0 %627 }
  0xb6   : > { %v763_v52 = vmax.f32 %v747_v45, 0.0  ;;  %v719_v53 = vmul.f32 0.25, %v692_v50  ;;  %v2964_v55 = vmul.f32 0.25, %v628_v51  ;;  %v766_v59 = vmax.f32 %v750_v48, 0.0 }
  0xb7   : > { %v780_v51 = vsub.f32 %v2713_v0, %v2948_v19 }
  0xb8   : > { %v795_v57 = vadd.f32 1e-05, %v763_v52  ;;  %v735_v61 = vmul.f32 %v2964_v55, %v2964_v55  ;;  %v798_v14 = vadd.f32 1e-05, %v766_v59  ;;  %v779_v52 = vsub.f32 %v2716_v1, %v2954_v30  ;;  %v2995_v1 = vld [vmem:[%s4463_s3] ss:$0 sm:$0xff] }
  0xb9   : > { %v694_v62 = vpop.xlane.xlu1 %693  ;;  %v630_v63 = vpop.xlane.xlu0 %629  ;;  %v781_v30 = vsub.f32 %v2725_v3, %v2952_v24 }
  0xba   : > { %v720_v2 = vmul.f32 0.25, %v694_v62  ;;  %v2968_v6 = vmul.f32 0.25, %v630_v63  ;;  %2505 = vrsqrt.f32 %v795_v57  ;;  %v751_v11 = vsub.f32 %v719_v53, %v735_v61 }
  0xbb   : > { %2507 = vrsqrt.f32 %v797_v58 }
  0xbc   : > { %v736_v12 = vmul.f32 %v2968_v6, %v2968_v6  ;;  %v767_v15 = vmax.f32 %v751_v11, 0.0  ;;  %2509 = vrsqrt.f32 %v798_v14 }
  0xbd   : > { %v1097_v18 = vpop.xlane.xlu1 %1096  ;;  %v632_v20 = vpop.xlane.xlu0 %631 }
  0xbe   : > { %v752_v21 = vsub.f32 %v720_v2, %v736_v12  ;;  %v2972_v22 = vmul.f32 0.25, %v1097_v18  ;;  %v2974_v23 = vmul.f32 0.25, %v632_v20  ;;  %v799_v26 = vadd.f32 1e-05, %v767_v15  ;;  %v3003_v20 = vld [vmem:[%s4464_s4] ss:$0 sm:$0xff] }
  0xbf   : > { %v2504_v45 = vpop.eup %2503 }
  0xc0   : > { %v1124_v25 = vmul.f32 %v2972_v22, %v2972_v22  ;;  %v768_v29 = vmax.f32 %v752_v21, 0.0  ;;  %v737_v35 = vmul.f32 %v2974_v23, %v2974_v23  ;;  %2511 = vrsqrt.f32 %v799_v26 }
  0xc1   : > { %v1113_v31 = vpop.xlane.xlu1 %1112  ;;  %v696_v32 = vpop.xlane.xlu0 %695  ;;  %v828_v2 = vmul.f32 %v2504_v45, %v780_v51 }
  0xc2   : > { %v1120_v36 = vmul.f32 0.25, %v1113_v31  ;;  %v721_v37 = vmul.f32 0.25, %v696_v32  ;;  %v800_v41 = vadd.f32 1e-05, %v768_v29 }
  0xc3   : > { %v850_v29 = vmul.f32 %v2995_v1, %v828_v2 }
  0xc4   : > { %v1128_v38 = vsub.f32 %v1120_v36, %v1124_v25  ;;  %v753_v40 = vsub.f32 %v721_v37, %v737_v35  ;;  %2513 = vrsqrt.f32 %v800_v41  ;;  %v782_v37 = vsub.f32 %v2735_v5, %v2958_v33 }
  0xc5   : > { %v1099_v42 = vpop.xlane.xlu1 %1098  ;;  %v634_v43 = vpop.xlane.xlu0 %633  ;;  %v872_v45 = vadd.f32 %v3003_v20, %v850_v29  ;;  %v783_v5 = vsub.f32 %v2745_v8, %v2964_v55  ;;  %v1136_v8 = vsub.f32 %v2775_v16, %v2972_v22 }
  0xc6   : > { %v1132_v46 = vmax.f32 %v1128_v38, 0.0  ;;  %v769_v47 = vmax.f32 %v753_v40, 0.0  ;;  %v2980_v48 = vmul.f32 0.25, %v1099_v42  ;;  %v2982_v50 = vmul.f32 0.25, %v634_v43 }
  0xc7   : > { %v2506_v53 = vpop.eup %2505 }
  0xc8   : > { %v1140_v57 = vadd.f32 1e-05, %v1132_v46  ;;  %v1125_v58 = vmul.f32 %v2980_v48, %v2980_v48  ;;  %v801_v59 = vadd.f32 1e-05, %v769_v47  ;;  %v827_v63 = vmul.f32 %v2506_v53, %v779_v52  ;;  %v2508_v11 = vpop.eup %2507 }
  0xc9   : > { %v1115_v61 = vpop.xlane.xlu1 %1114  ;;  %v698_v62 = vpop.xlane.xlu0 %697  ;;  %v738_v12 = vmul.f32 %v2982_v50, %v2982_v50  ;;  %v829_v31 = vmul.f32 %v2508_v11, %v781_v30  ;;  %v784_v30 = vsub.f32 %v2751_v10, %v2968_v6 }
  0xca   : > { %2515 = vrsqrt.f32 %v1140_v57  ;;  %v1121_v0 = vmul.f32 0.25, %v1115_v61  ;;  %v722_v19 = vmul.f32 0.25, %v698_v62  ;;  %v849_v14 = vmul.f32 %v2995_v1, %v827_v63  ;;  %v2510_v32 = vpop.eup %2509 }
  0xcb   : > { %2517 = vrsqrt.f32 %v801_v59  ;;  %v851_v46 = vmul.f32 %v2995_v1, %v829_v31  ;;  %v830_v47 = vmul.f32 %v2510_v32, %v782_v37 }
  0xcc   : > { %v1129_v15 = vsub.f32 %v1121_v0, %v1125_v58  ;;  %v754_v18 = vsub.f32 %v722_v19, %v738_v12  ;;  %v871_v26 = vadd.f32 %v3003_v20, %v849_v14 }
  0xcd   : > { %v700_v21 = vpop.xlane.xlu1 %699  ;;  %v636_v25 = vpop.xlane.xlu0 %635  ;;  %v873_v63 = vadd.f32 %v3003_v20, %v851_v46  ;;  %v852_v2 = vmul.f32 %v2995_v1, %v830_v47 }
  0xce   : > { %v1133_v35 = vmax.f32 %v1129_v15, 0.0  ;;  %v770_v3 = vmax.f32 %v754_v18, 0.0  ;;  %v723_v24 = vmul.f32 0.25, %v700_v21  ;;  %v3007_v36 = vmul.f32 0.25, %v636_v25  ;;  %996 = vmatmul.mubr.f32.vlgmr.msra.gmra.mxu0 %v871_v26  ;;  %v2512_v51 = vpop.eup %2511 }
  0xcf   : > { %1001 = vmatprep.mubr.f32.mxu0 %v2593_v56  ;;  %v831_v58 = vmul.f32 %v2512_v51, %v783_v5  ;;  %v874_v26 = vadd.f32 %v3003_v20, %v852_v2  ;;  %v1137_v5 = vsub.f32 %v2808_v27, %v2980_v48 }
  0xd0   : > { %v1141_v38 = vadd.f32 1e-05, %v1133_v35  ;;  %v802_v40 = vadd.f32 1e-05, %v770_v3  ;;  %v739_v41 = vmul.f32 %v3007_v36, %v3007_v36  ;;  %v785_v3 = vsub.f32 %v2778_v17, %v2974_v23 }
  0xd1   : > { %v702_v42 = vpop.xlane.xlu1 %701  ;;  %v638_v43 = vpop.xlane.xlu0 %637  ;;  %v853_v29 = vmul.f32 %v2995_v1, %v831_v58 }
  0xd2   : > { %2519 = vrsqrt.f32 %v1141_v38  ;;  %v755_v52 = vsub.f32 %v723_v24, %v739_v41  ;;  %v724_v33 = vmul.f32 0.25, %v702_v42  ;;  %v3018_v53 = vmul.f32 0.25, %v638_v43  ;;  %1002 = vmatmul.mubr.f32.gmra.mxu0 %v872_v45  ;;  %v2514_v11 = vpop.eup %2513 }
  0xd3   : > { %2521 = vrsqrt.f32 %v802_v40  ;;  %1007 = vmatprep.mubr.f32.mxu0 %v2593_v56  ;;  %v832_v21 = vmul.f32 %v2514_v11, %v784_v30  ;;  %v875_v43 = vadd.f32 %v3003_v20, %v853_v29 }
  0xd4   : > { %v771_v57 = vmax.f32 %v755_v52, 0.0  ;;  %v740_v59 = vmul.f32 %v3018_v53, %v3018_v53 }
  0xd5   : > { %v704_v61 = vpop.xlane.xlu1 %703  ;;  %v640_v62 = vpop.xlane.xlu0 %639  ;;  %v854_v45 = vmul.f32 %v2995_v1, %v832_v21 }
  0xd6   : > { %v803_v55 = vadd.f32 1e-05, %v771_v57  ;;  %v725_v12 = vmul.f32 0.25, %v704_v61  ;;  %v3027_v0 = vmul.f32 0.25, %v640_v62  ;;  %v756_v14 = vsub.f32 %v724_v33, %v740_v59  ;;  %1008 = vmatmul.mubr.f32.gmra.mxu0 %v873_v63 }
  0xd7   : > { %v2516_v19 = vpop.eup %2515  ;;  %1013 = vmatprep.mubr.f32.mxu0 %v2593_v56  ;;  %v786_v33 = vsub.f32 %v2811_v28, %v2982_v50  ;;  %v876_v63 = vadd.f32 %v3003_v20, %v854_v45 }
  0xd8   : > { %2523 = vrsqrt.f32 %v803_v55  ;;  %v741_v15 = vmul.f32 %v3027_v0, %v3027_v0  ;;  %v1148_v18 = vmul.f32 %v2516_v19, %v1136_v8  ;;  %v772_v25 = vmax.f32 %v756_v14, 0.0  ;;  %v2518_v31 = vpop.eup %2517 }
  0xd9   : > { %v706_v16 = vpop.xlane.xlu1 %705  ;;  %v642_v22 = vpop.xlane.xlu0 %641  ;;  %v833_v46 = vmul.f32 %v2518_v31, %v785_v3 }
  0xda   : > { %v757_v32 = vsub.f32 %v725_v12, %v741_v15  ;;  %v726_v10 = vmul.f32 0.25, %v706_v16  ;;  %v3036_v6 = vmul.f32 0.25, %v642_v22  ;;  %v1152_v35 = vmul.f32 %v2995_v1, %v1148_v18  ;;  %1014 = vmatmul.mubr.f32.gmra.mxu0 %v874_v26 }
  0xdb   : > { %v804_v24 = vadd.f32 1e-05, %v772_v25  ;;  %1019 = vmatprep.mubr.f32.mxu0 %v2593_v56  ;;  %v855_v27 = vmul.f32 %v2995_v1, %v833_v46  ;;  %v787_v12 = vsub.f32 %v2829_v34, %v3007_v36 }
  0xdc   : > { %v773_v37 = vmax.f32 %v757_v32, 0.0  ;;  %v742_v38 = vmul.f32 %v3036_v6, %v3036_v6  ;;  %v1156_v40 = vadd.f32 %v3003_v20, %v1152_v35  ;;  %v788_v32 = vsub.f32 %v2843_v39, %v3018_v53 }
  0xdd   : > { %2525 = vrsqrt.f32 %v804_v24  ;;  %v708_v41 = vpop.xlane.xlu1 %707  ;;  %v644_v42 = vpop.xlane.xlu0 %643  ;;  %v877_v21 = vadd.f32 %v3003_v20, %v855_v27  ;;  %v789_v39 = vsub.f32 %v2858_v44, %v3027_v0 }
  0xde   : > { %v805_v47 = vadd.f32 1e-05, %v773_v37  ;;  %v758_v17 = vsub.f32 %v726_v10, %v742_v38  ;;  %v727_v23 = vmul.f32 0.25, %v708_v41  ;;  %v3047_v51 = vmul.f32 0.25, %v644_v42  ;;  %1225 = vmatmul.mubr.f32.vlgmr.msra.gmra.mxu1 %v1156_v40  ;;  %1020 = vmatmul.mubr.f32.gmra.mxu0 %v875_v43 }
  0xdf   : > { %v2520_v52 = vpop.eup %2519  ;;  %1230 = vmatprep.mubr.f32.mxu1 %v2593_v56  ;;  %1025 = vmatprep.mubr.f32.mxu0 %v2593_v56 }
  0xe0   : > { %v2522_v57 = vpop.eup %2521  ;;  %2527 = vrsqrt.f32 %v805_v47  ;;  %v774_v58 = vmax.f32 %v758_v17, 0.0  ;;  %v743_v59 = vmul.f32 %v3047_v51, %v3047_v51  ;;  %v1149_v48 = vmul.f32 %v2520_v52, %v1137_v5 }
  0xe1   : > { %v710_v61 = vpop.xlane.xlu1 %709  ;;  %v646_v62 = vpop.xlane.xlu0 %645  ;;  %v834_v2 = vmul.f32 %v2522_v57, %v786_v33 }
  0xe2   : > { %v806_v28 = vadd.f32 1e-05, %v774_v58  ;;  %v759_v50 = vsub.f32 %v727_v23, %v743_v59  ;;  %v728_v11 = vmul.f32 0.25, %v710_v61  ;;  %v3059_v8 = vmul.f32 0.25, %v646_v62  ;;  %1026 = vmatmul.mubr.f32.gmra.mxu0 %v876_v63 }
  0xe3   : > { %v1153_v55 = vmul.f32 %v2995_v1, %v1149_v48  ;;  %1031 = vmatprep.mubr.f32.mxu0 %v2593_v56  ;;  %v856_v16 = vmul.f32 %v2995_v1, %v834_v2  ;;  %v790_v59 = vsub.f32 %v2873_v49, %v3036_v6  ;;  %v791_v49 = vsub.f32 %v2888_v54, %v3047_v51 }
  0xe4   : > { %2529 = vrsqrt.f32 %v806_v28  ;;  %v775_v19 = vmax.f32 %v759_v50, 0.0  ;;  %v744_v30 = vmul.f32 %v3059_v8, %v3059_v8 }
  0xe5   : > { %v2524_v14 = vpop.eup %2523  ;;  %v712_v15 = vpop.xlane.xlu1 %711  ;;  %v1157_v25 = vadd.f32 %v3003_v20, %v1153_v55  ;;  %v878_v24 = vadd.f32 %v3003_v20, %v856_v16 }
  0xe6   : > { %v648_v18 = vpop.xlane.xlu0 %647  ;;  %v835_v22 = vmul.f32 %v2524_v14, %v787_v12  ;;  %v807_v26 = vadd.f32 1e-05, %v775_v19  ;;  %v760_v29 = vsub.f32 %v728_v11, %v744_v30  ;;  %v729_v34 = vmul.f32 0.25, %v712_v15  ;;  %1032 = vmatmul.mubr.f32.gmra.mxu0 %v877_v21 }
  0xe7   : > { %v3070_v36 = vmul.f32 0.25, %v648_v18  ;;  %1231 = vmatmul.mubr.f32.gmra.mxu1 %v1157_v25  ;;  %1037 = vmatprep.mubr.f32.mxu0 %v2593_v56 }
  0xe8   : > { %2531 = vrsqrt.f32 %v807_v26  ;;  %v776_v31 = vmax.f32 %v760_v29, 0.0  ;;  %1236 = vmatprep.mubr.f32.mxu1 %v2593_v56  ;;  %v857_v37 = vmul.f32 %v2995_v1, %v835_v22  ;;  %v792_v22 = vsub.f32 %v2904_v60, %v3059_v8 }
  0xe9   : > { %v745_v10 = vmul.f32 %v3070_v36, %v3070_v36  ;;  %v1101_v35 = vpop.xlane.xlu1 %1100 }
  0xea   : > { %v650_v3 = vpop.xlane.xlu0 %649  ;;  %v2526_v38 = vpop.eup %2525  ;;  %v808_v40 = vadd.f32 1e-05, %v776_v31  ;;  %v3080_v41 = vmul.f32 0.25, %v1101_v35  ;;  %1038 = vmatmul.mubr.f32.gmra.mxu0 %v878_v24  ;;  %v879_v52 = vadd.f32 %v3003_v20, %v857_v37 }
  0xeb   : > { %v3082_v42 = vmul.f32 0.25, %v650_v3  ;;  %v836_v43 = vmul.f32 %v2526_v38, %v788_v32  ;;  %v761_v45 = vsub.f32 %v729_v34, %v745_v10  ;;  %1043 = vmatprep.mubr.f32.mxu0 %v2593_v56  ;;  %v793_v32 = vsub.f32 %v2919_v4, %v3070_v36 }
  0xec   : > { %2533 = vrsqrt.f32 %v808_v40  ;;  %v1126_v53 = vmul.f32 %v3080_v41, %v3080_v41  ;;  %v1138_v37 = vsub.f32 %v2932_v7, %v3080_v41 }
  0xed   : > { %v2528_v46 = vpop.eup %2527  ;;  %v777_v47 = vmax.f32 %v761_v45, 0.0  ;;  %v1117_v17 = vpop.xlane.xlu1 %1116  ;;  %v858_v5 = vmul.f32 %v2995_v1, %v836_v43  ;;  %v746_v57 = vmul.f32 %v3082_v42, %v3082_v42  ;;  %v794_v4 = vsub.f32 %v2935_v9, %v3082_v42 }
  0xee   : > { %v714_v23 = vpop.xlane.xlu0 %713  ;;  %v837_v33 = vmul.f32 %v2528_v46, %v789_v39  ;;  %v1122_v58 = vmul.f32 0.25, %v1117_v17  ;;  %1044 = vmatmul.mubr.f32.gmra.mxu0 %v879_v52 }
  0xef   : > { %v730_v44 = vmul.f32 0.25, %v714_v23  ;;  %v809_v0 = vadd.f32 1e-05, %v777_v47  ;;  %1049 = vmatprep.mubr.f32.mxu0 %v2593_v56  ;;  %v880_v48 = vadd.f32 %v3003_v20, %v858_v5  ;;  %v921_v23 = vlaneseq  ;;  %v919_v5 = vld [vmem:[%s4466_s6] sm:$0x3] }
  0xf0   : > { %v1130_v61 = vsub.f32 %v1122_v58, %v1126_v53  ;;  %v859_v28 = vmul.f32 %v2995_v1, %v837_v33 }
  0xf1   : > { %v762_v62 = vsub.f32 %v730_v44, %v746_v57  ;;  %v2530_v63 = vpop.eup %2529  ;;  %2535 = vrsqrt.f32 %v809_v0  ;;  %v1119_v2 = vpop.xlane.xlu1 %1118  ;;  %v3131_v52 = vshrl.u32 %v921_v23, 7 }
  0xf2   : > { %v1103_v27 = vpop.xlane.xlu0 %1102  ;;  %v838_v50 = vmul.f32 %v2530_v63, %v790_v59  ;;  %v1134_v11 = vmax.f32 %v1130_v61, 0.0  ;;  %1050 = vmatmul.mubr.f32.gmra.mxu0 %v880_v48  ;;  %v1123_v19 = vmul.f32 0.25, %v1119_v2  ;;  %v881_v18 = vadd.f32 %v3003_v20, %v859_v28 }
  0xf3   : > { %v778_v55 = vmax.f32 %v762_v62, 0.0  ;;  %v1107_v12 = vmul.f32 0.25, %v1103_v27  ;;  %1055 = vmatprep.mubr.f32.mxu0 %v2593_v56  ;;  %v927_v33 = vsub.s32 1, %v3131_v52  ;;  %v1779_v57 = vsub.s32 4, %v3131_v52 }
  0xf4   : > { %v1142_v6 = vadd.f32 1e-05, %v1134_v11  ;;  %v860_v21 = vmul.f32 %v2995_v1, %v838_v50  ;;  %v1635_v58 = vsub.s32 2, %v3131_v52  ;;  %v1707_v44 = vsub.s32 3, %v3131_v52 }
  0xf5   : > { %v810_v30 = vadd.f32 1e-05, %v778_v55  ;;  %v1127_v14 = vmul.f32 %v1107_v12, %v1107_v12  ;;  %v2532_v15 = vpop.eup %2531  ;;  %v1139_v7 = vsub.f32 %v2943_v13, %v1107_v12  ;;  %v923_v13 = vsub.s32 0, %v3131_v52 }
  0xf6   : > { %v839_v25 = vmul.f32 %v2532_v15, %v791_v49  ;;  %2537 = vrsqrt.f32 %v1142_v6  ;;  %1056 = vmatmul.mubr.f32.gmra.mxu0 %v881_v18  ;;  %v882_v51 = vadd.f32 %v3003_v20, %v860_v21  ;;  %v3152_v0 = vrot.slane %v919_v5, %v927_v33 }
  0xf7   : > { %v1131_v16 = vsub.f32 %v1123_v19, %v1127_v14  ;;  %2539 = vrsqrt.f32 %v810_v30  ;;  %1061 = vmatprep.mubr.f32.mxu0 %v2593_v56  ;;  %v1851_v61 = vsub.s32 5, %v3131_v52  ;;  %v1995_v48 = vsub.s32 7, %v3131_v52 }
  0xf8   : > { %v861_v29 = vmul.f32 %v2995_v1, %v839_v25  ;;  %vm1307_vm0 = vcmp.lt.s32.totalorder %v3131_v52, 1  ;;  %vm1432_vm1 = vcmp.lt.s32.totalorder %v3131_v52, 7  ;;  %v1923_v50 = vsub.s32 6, %v3131_v52 }
  0xf9   : > { %v1135_v26 = vmax.f32 %v1131_v16, 0.0  ;;  %v2534_v54 = vpop.eup %2533 }
  0xfa   : > { %v840_v34 = vmul.f32 %v2534_v54, %v792_v22  ;;  %1062 = vmatmul.mubr.f32.gmra.mxu0 %v882_v51  ;;  %v883_v10 = vadd.f32 %v3003_v20, %v861_v29  ;;  %v2137_v22 = vld [vmem:[%s4468_s8] sm:$0x3] }
  0xfb   : > { %v1143_v31 = vadd.f32 1e-05, %v1135_v26  ;;  %1067 = vmatprep.mubr.f32.mxu0 %v2593_v56 }
  0xfc   : > { %v862_v60 = vmul.f32 %v2995_v1, %v840_v34  ;;  %v3198_v34 = vstv %s1251_s18  ;;  %s3613_s18 = scalar_lea.vmem %s4471_s11, %s4607_s19  ;;  %s599_s19 = sadd.s32 %s2453_s16, %s4729_s21 }
  0xfd   : > { %2541 = vrsqrt.f32 %v1143_v31  ;;  %s600_s15 = scalar_lea.vmem %s4472_s12, %s599_s19 }
  0xfe   : > { %v2536_v8 = vpop.eup %2535  ;;  %1068 = vmatmul.mubr.f32.gmra.mxu0 %v883_v10  ;;  %v884_v3 = vadd.f32 %v3003_v20, %v862_v60  ;;  %v3203_v60 = vld [vmem:[%s4469_s9] sm:$0xff] }
  0xff   : > { %v841_v35 = vmul.f32 %v2536_v8, %v793_v32  ;;  %1073 = vmatprep.mubr.f32.mxu0 %v2593_v56  ;;  %4559 = vst [vmem:[#allocation14_spill] sm:$0xff] %v3203_v60  ;;  %v3208_v8 = vld [vmem:[%s4469_s9 + $0x10] sm:$0xff] }
 0x100   : > { %4560 = vst [vmem:[#allocation15_spill] sm:$0xff] %v3208_v8 }
 0x101   : > { %v863_v24 = vmul.f32 %v2995_v1, %v841_v35 }
 0x102   : > { %1074 = vmatmul.mubr.f32.gmra.mxu0 %v884_v3 }
 0x103   : > { %v2538_v38 = vpop.eup %2537  ;;  %1079 = vmatprep.mubr.f32.mxu0 %v2593_v56  ;;  %v885_v43 = vadd.f32 %v3003_v20, %v863_v24 }
 0x104   : > { %v2540_v36 = vpop.eup %2539  ;;  %v1150_v40 = vmul.f32 %v2538_v38, %v1138_v37  ;;  %v3212_v38 = vrot.slane %v2137_v22, %v923_v13 }
 0x105   : > { %v842_v45 = vmul.f32 %v2540_v36, %v794_v4  ;;  %v3214_v4 = vrot.slane %v2137_v22, %v927_v33 }
 0x106   : > { %v1154_v39 = vmul.f32 %v2995_v1, %v1150_v40  ;;  %1080 = vmatmul.mubr.f32.gmra.mxu0 %v885_v43  ;;  %4561 = vst [vmem:[#allocation16_spill] sm:$0xff] %v3212_v38 }
 0x107   : > { %v864_v53 = vmul.f32 %v2995_v1, %v842_v45  ;;  %1085 = vmatprep.mubr.f32.mxu0 %v2593_v56  ;;  %4562 = vst [vmem:[#allocation17_spill] sm:$0xff] %v3214_v4 }
 0x108   : > { %v1158_v9 = vadd.f32 %v3003_v20, %v1154_v39  ;;  %v3228_v39 = vld [vmem:[%s4470_s10] sm:$0xff] }
 0x109   : > { %v886_v42 = vadd.f32 %v3003_v20, %v864_v53  ;;  %4564 = vst [vmem:[#allocation19_spill] sm:$0xff] %v3228_v39 }
 0x10a   : > { %v2542_v41 = vpop.eup %2541  ;;  %1237 = vmatmul.mubr.f32.gmra.mxu1 %v1158_v9 }
 0x10b   : > { %v1151_v46 = vmul.f32 %v2542_v41, %v1139_v7  ;;  %1086 = vmatmul.mubr.f32.gmra.mxu0 %v886_v42  ;;  %1242 = vmatprep.mubr.f32.mxu1 %v2593_v56  ;;  %v1517_v56 = vld [vmem:[%s4467_s7] sm:$0xff]  ;;  %v3239_v42 = vld [vmem:[%s4470_s10 + $0x10] sm:$0xff] }
 0x10c   : > { %v3155_v62 = vrot.slane %v1517_v56, %v927_v33  ;;  %v3157_v63 = vrot.slane %v1517_v56, %v1779_v57  ;;  %v3169_v55 = vrot.slane %v1517_v56, %v923_v13  ;;  %v3171_v12 = vrot.slane %v1517_v56, %v1635_v58  ;;  %4566 = vst [vmem:[#allocation21_spill] sm:$0xff] %v3239_v42 }
 0x10d   : > { %v1155_v47 = vmul.f32 %v2995_v1, %v1151_v46  ;;  %v1518_v1 = vld [vmem:[%s4467_s7 + $0x8] sm:$0xff]  ;;  %v3173_v19 = vrot.slane %v1517_v56, %v1707_v44  ;;  %v3175_v6 = vrot.slane %v1517_v56, %v1851_v61  ;;  %v3186_v25 = vrot.slane %v1517_v56, %v1995_v48 }
 0x10e   : > { %v3159_v27 = vrot.slane %v1518_v1, %v927_v33  ;;  %v3162_v28 = vrot.slane %v1518_v1, %v1779_v57  ;;  %4550 = vst [vmem:[#allocation5_spill] sm:$0xff] %v3169_v55  ;;  %4551 = vst [vmem:[#allocation6_spill] sm:$0xff] %v3171_v12  ;;  %v3177_v30 = vrot.slane %v1518_v1, %v923_v13 }
 0x10f   : > { %v1159_v17 = vadd.f32 %v3003_v20, %v1155_v47  ;;  %v3148_v20 = vrot.slane %v919_v5, %v923_v13  ;;  %4552 = vst [vmem:[#allocation7_spill] sm:$0xff] %v3173_v19  ;;  %4553 = vst [vmem:[#allocation8_spill] sm:$0xff] %v3175_v6  ;;  %v3179_v14 = vrot.slane %v1518_v1, %v1635_v58  ;;  %v3245_v13 = vld [vmem:[%s4469_s9 + $0x18] sm:$0xff]  ;;  %v3257_v58 = vld [vmem:[%s4469_s9 + $0x8] sm:$0xff] }
 0x110   : > { %4554 = vst [vmem:[#allocation9_spill] sm:$0xff] %v3177_v30  ;;  %v3181_v15 = vrot.slane %v1518_v1, %v1707_v44  ;;  %v3184_v21 = vrot.slane %v1518_v1, %v1851_v61  ;;  %4557 = vst [vmem:[#allocation12_spill] sm:$0xff] %v3186_v25  ;;  %v3188_v16 = vrot.slane %v1518_v1, %v1995_v48 }
 0x111   : > { %1243 = vmatmul.mubr.f32.gmra.mxu1 %v1159_v17  ;;  %4549 = vst [vmem:[#allocation4_spill] sm:$0xff] %v3148_v20  ;;  %4555 = vst [vmem:[#allocation10_spill] sm:$0xff] %v3179_v14  ;;  %v3194_v51 = vrot.slane %v1517_v56, %v1923_v50  ;;  %v3196_v29 = vrot.slane %v1518_v1, %v1923_v50 }
 0x112   : > { %4556 = vst [vmem:[#allocation11_spill] sm:$0xff] %v3184_v21 }
 0x113   : > { %4558 = vst [vmem:[#allocation13_spill] sm:$0xff] %v3196_v29 }
 0x18e   : > { %v997_v59 = vpop.f32.mrf.mxu0 }
 0x18f   : > { %v998_v11 = vadd.f32 %v997_v59, %v3148_v20 }
 0x190   : > { %v999_v2 = vpop.f32.mrf.mxu0 }
 0x191   : > { %v1000_v26 = vadd.f32 %v999_v2, %v3152_v0  ;;  %v1267_v31 = vrot.slane %v998_v11, 7  ;;  %v1394_v32 = vrot.slane %v998_v11, 1  ;;  %v1573_v3 = vmul.f32 %v3155_v62, %v998_v11  ;;  %v3269_v2 = vld [vmem:[%s4470_s10 + $0x8] sm:$0xff] }
 0x192   : > { %v1003_v49 = vpop.f32.mrf.mxu0  ;;  %v3217_v36 = vmul.f32 %v3157_v63, %v998_v11 }
 0x193   : > { %v1004_v18 = vadd.f32 %v1003_v49, %v3148_v20  ;;  %v1268_v53 = vrot.slane %v1000_v26, 7  ;;  %v1395_v47 = vrot.slane %v1000_v26, 1  ;;  %v1574_v17 = vmul.f32 %v3159_v27, %v1000_v26 }
 0x194   : > { %v1005_v54 = vpop.f32.mrf.mxu0  ;;  %4563 = vst [vmem:[#allocation18_spill] sm:$0xff] %v3217_v36  ;;  %v3248_v33 = vmul.f32 %v3162_v28, %v1000_v26 }
 0x195   : > { %v1287_v10 = vrot.slane %v1004_v18, 7  ;;  %v1414_v35 = vrot.slane %v1004_v18, 1  ;;  %v1006_v24 = vadd.f32 %v1005_v54, %v3152_v0  ;;  %v1575_v59 = vmul.f32 %v3155_v62, %v1004_v18 }
 0x196   : > { %v1009_v37 = vpop.f32.mrf.mxu0  ;;  %4567 = vst [vmem:[#allocation22_spill] sm:$0xff] %v3248_v33  ;;  %v3262_v61 = vmul.f32 %v3157_v63, %v1004_v18  ;;  %v3279_v18 = vld [vmem:[%s4470_s10 + $0x18] sm:$0xff] }
 0x197   : > { %v1310_v40 = vsel %vm1307_vm0, %v1267_v31, %v1287_v10  ;;  %v1330_v43 = vsel %vm1307_vm0, %v1287_v10, %v1267_v31  ;;  %v1435_v45 = vsel %vm1432_vm1, %v1394_v32, %v1414_v35  ;;  %v1455_v41 = vsel %vm1432_vm1, %v1414_v35, %v1394_v32  ;;  %4570 = vst [vmem:[#allocation25_spill] sm:$0xff] %v3279_v18 }
 0x198   : > { %v1356_v7 = vmul.f32 %v3203_v60, %v1330_v43  ;;  %v3232_v9 = vmul.f32 %v3208_v8, %v1310_v40  ;;  %v1011_v46 = vpop.f32.mrf.mxu0  ;;  %v1288_v23 = vrot.slane %v1006_v24, 7  ;;  %v1415_v5 = vrot.slane %v1006_v24, 1  ;;  %4568 = vst [vmem:[#allocation23_spill] sm:$0xff] %v3262_v61 }
 0x199   : > { %v1481_v57 = vmul.f32 %v3228_v39, %v1435_v45  ;;  %v1483_v44 = vmul.f32 %v3239_v42, %v1455_v41  ;;  %v1576_v26 = vmul.f32 %v3159_v27, %v1006_v24  ;;  %v3290_v40 = vmul.f32 %v3162_v28, %v1006_v24 }
 0x19a   : > { %4565 = vst [vmem:[#allocation20_spill] sm:$0xff] %v3232_v9  ;;  %v1533_v56 = vmul.f32 %v3169_v55, %v1356_v7  ;;  %v1535_v1 = vmul.f32 %v3169_v55, %v3232_v9  ;;  %v1311_v48 = vsel %vm1307_vm0, %v1268_v53, %v1288_v23  ;;  %v1015_v50 = vpop.f32.mrf.mxu0  ;;  %v1331_v49 = vsel %vm1307_vm0, %v1288_v23, %v1268_v53 }
 0x19b   : > { %v3274_v22 = vmul.f32 %v3245_v13, %v1311_v48  ;;  %v1357_v31 = vmul.f32 %v3257_v58, %v1331_v49  ;;  %v1436_v32 = vsel %vm1432_vm1, %v1395_v47, %v1415_v5  ;;  %v1456_v10 = vsel %vm1432_vm1, %v1415_v5, %v1395_v47  ;;  %4571 = vst [vmem:[#allocation26_spill] sm:$0xff] %v3290_v40 }
 0x19c   : > { %v1605_v11 = vadd.f32 %v1573_v3, %v1533_v56  ;;  %v1607_v54 = vadd.f32 %v1575_v59, %v1535_v1  ;;  %v1645_v35 = vmul.f32 %v3171_v12, %v1481_v57  ;;  %v1482_v3 = vmul.f32 %v3269_v2, %v1436_v32  ;;  %v1017_v56 = vpop.f32.mrf.mxu0 }
 0x19d   : > { %4569 = vst [vmem:[#allocation24_spill] sm:$0xff] %v3274_v22  ;;  %v1010_v43 = vadd.f32 %v1009_v37, %v3148_v20  ;;  %v1647_v45 = vmul.f32 %v3171_v12, %v1483_v44  ;;  %v1484_v53 = vmul.f32 %v3279_v18, %v1456_v10  ;;  %v1534_v41 = vmul.f32 %v3177_v30, %v1357_v31 }
 0x19e   : > { %v1536_v23 = vmul.f32 %v3177_v30, %v3274_v22  ;;  %v1677_v47 = vadd.f32 %v1645_v35, %v1605_v11  ;;  %v3299_v5 = vmul.f32 %v3173_v19, %v1356_v7  ;;  %v3302_v1 = vmul.f32 %v3175_v6, %v1481_v57 }
 0x19f   : > { %v3305_v24 = vmul.f32 %v3175_v6, %v1483_v44  ;;  %v1679_v37 = vadd.f32 %v1647_v45, %v1607_v54  ;;  %v1606_v59 = vadd.f32 %v1574_v17, %v1534_v41  ;;  %v3308_v49 = vmul.f32 %v3181_v15, %v1357_v31 }
 0x1a0   : > { %4572 = vst [vmem:[#allocation27_spill] sm:$0xff] %v3299_v5  ;;  %4573 = vst [vmem:[#allocation28_spill] sm:$0xff] %v3302_v1  ;;  %v1608_v48 = vadd.f32 %v1576_v26, %v1536_v23  ;;  %v1646_v32 = vmul.f32 %v3179_v14, %v1482_v3  ;;  %v1269_v10 = vrot.slane %v1010_v43, 7  ;;  %v1012_v11 = vadd.f32 %v1011_v46, %v3152_v0  ;;  %v1021_v26 = vpop.f32.mrf.mxu0 }
 0x1a1   : > { %4574 = vst [vmem:[#allocation29_spill] sm:$0xff] %v3305_v24  ;;  %4575 = vst [vmem:[#allocation30_spill] sm:$0xff] %v3308_v49  ;;  %v1016_v7 = vadd.f32 %v1015_v50, %v3148_v20  ;;  %v1648_v35 = vmul.f32 %v3179_v14, %v1484_v53  ;;  %v3315_v57 = vmul.f32 %v3184_v21, %v1482_v3  ;;  %v1396_v54 = vrot.slane %v1010_v43, 1 }
 0x1a2   : > { %v3318_v44 = vmul.f32 %v3184_v21, %v1484_v53  ;;  %v3321_v17 = vadd.f32 %v1017_v56, %v3152_v0  ;;  %v1577_v31 = vmul.f32 %v3155_v62, %v1010_v43  ;;  %v1789_v45 = vmul.f32 %v3157_v63, %v1010_v43  ;;  %v1023_v5 = vpop.f32.mrf.mxu0 }
 0x1a3   : > { %4576 = vst [vmem:[#allocation31_spill] sm:$0xff] %v3315_v57  ;;  %v3326_v46 = vmul.f32 %v3186_v25, %v1010_v43  ;;  %v1678_v50 = vadd.f32 %v1646_v32, %v1606_v59  ;;  %v3328_v41 = vadd.f32 %v1648_v35, %v1608_v48  ;;  %v1289_v3 = vrot.slane %v1016_v7, 7 }
 0x1a4   : > { %4577 = vst [vmem:[#allocation32_spill] sm:$0xff] %v3318_v44  ;;  %v1416_v23 = vrot.slane %v1016_v7, 1  ;;  %v1270_v57 = vrot.slane %v1012_v11, 7  ;;  %v1397_v53 = vrot.slane %v1012_v11, 1  ;;  %v1290_v44 = vrot.slane %v3321_v17, 7 }
 0x1a5   : > { %4578 = vst [vmem:[#allocation33_spill] sm:$0xff] %v3326_v46  ;;  %v3332_v56 = vadd.f32 %v1021_v26, %v3148_v20  ;;  %v1312_v40 = vsel %vm1307_vm0, %v1269_v10, %v1289_v3  ;;  %v1332_v33 = vsel %vm1307_vm0, %v1289_v3, %v1269_v10  ;;  %v1417_v26 = vrot.slane %v3321_v17, 1 }
 0x1a6   : > { %v1437_v43 = vsel %vm1432_vm1, %v1396_v54, %v1416_v23  ;;  %v1457_v59 = vsel %vm1432_vm1, %v1416_v23, %v1396_v54  ;;  %v1360_v48 = vmul.f32 %v3203_v60, %v1332_v33  ;;  %v3344_v32 = vmul.f32 %v3208_v8, %v1312_v40 }
 0x1a7   : > { %v1485_v35 = vmul.f32 %v3228_v39, %v1437_v43  ;;  %v1578_v46 = vmul.f32 %v3159_v27, %v1012_v11  ;;  %v1790_v49 = vmul.f32 %v3162_v28, %v1012_v11  ;;  %v3351_v10 = vmul.f32 %v3188_v16, %v1012_v11 }
 0x1a8   : > { %4579 = vst [vmem:[#allocation34_spill] sm:$0xff] %v3344_v32  ;;  %v1487_v3 = vmul.f32 %v3239_v42, %v1457_v59  ;;  %v1537_v54 = vmul.f32 %v3169_v55, %v1360_v48  ;;  %v1539_v33 = vmul.f32 %v3169_v55, %v3344_v32  ;;  %v1579_v40 = vmul.f32 %v3155_v62, %v1016_v7 }
 0x1a9   : > { %4580 = vst [vmem:[#allocation35_spill] sm:$0xff] %v3351_v10  ;;  %v1333_v23 = vsel %vm1307_vm0, %v1290_v44, %v1270_v57  ;;  %v1717_v43 = vmul.f32 %v3173_v19, %v1360_v48  ;;  %v1719_v24 = vmul.f32 %v3173_v19, %v3344_v32  ;;  %v1791_v11 = vmul.f32 %v3157_v63, %v1016_v7 }
 0x1aa   : > { %v1313_v59 = vsel %vm1307_vm0, %v1270_v57, %v1290_v44  ;;  %v1649_v10 = vmul.f32 %v3171_v12, %v1485_v35  ;;  %v3368_v1 = vmul.f32 %v3186_v25, %v1016_v7  ;;  %v1438_v61 = vsel %vm1432_vm1, %v1397_v53, %v1417_v26  ;;  %v3379_v57 = vld [vmem:[%s4467_s7 + $0x10] ss:$0 sm:$0xff] }
 0x1ab   : > { %v1458_v36 = vsel %vm1432_vm1, %v1417_v26, %v1397_v53  ;;  %v1651_v22 = vmul.f32 %v3171_v12, %v1487_v3  ;;  %v1749_v32 = vadd.f32 %v1717_v43, %v1677_v47  ;;  %v1751_v9 = vadd.f32 %v1719_v24, %v1679_v37  ;;  %4582 = vst [vmem:[#allocation37_spill] sm:$0xff] %v3379_v57 }
 0x1ac   : > { %4581 = vst [vmem:[#allocation36_spill] sm:$0xff] %v3368_v1  ;;  %v1361_v4 = vmul.f32 %v3257_v58, %v1333_v23  ;;  %v1609_v7 = vadd.f32 %v1577_v31, %v1537_v54  ;;  %v1611_v44 = vadd.f32 %v1579_v40, %v1539_v33  ;;  %v1861_v1 = vmul.f32 %v3175_v6, %v1485_v35  ;;  %v1027_v33 = vpop.f32.mrf.mxu0 }
 0x1ad   : > { %v3383_v38 = vmul.f32 %v3245_v13, %v1313_v59  ;;  %v1821_v53 = vadd.f32 %v1789_v45, %v1749_v32  ;;  %v1823_v26 = vadd.f32 %v1791_v11, %v1751_v9  ;;  %v1486_v12 = vmul.f32 %v3269_v2, %v1438_v61  ;;  %v1226_v32 = vpop.f32.mrf.mxu1 }
 0x1ae   : > { %v1538_v47 = vmul.f32 %v3177_v30, %v1361_v4  ;;  %v1488_v24 = vmul.f32 %v3279_v18, %v1458_v36  ;;  %v1580_v31 = vmul.f32 %v3159_v27, %v3321_v17  ;;  %v1718_v54 = vmul.f32 %v3181_v15, %v1361_v4 }
 0x1af   : > { %4583 = vst [vmem:[#allocation38_spill] sm:$0xff] %v3383_v38  ;;  %v1540_v37 = vmul.f32 %v3177_v30, %v3383_v38  ;;  %v1863_v40 = vmul.f32 %v3175_v6, %v1487_v3  ;;  %v3395_v45 = vmul.f32 %v3194_v51, %v1360_v48  ;;  %v3398_v9 = vmul.f32 %v3379_v57, %v1485_v35 }
 0x1b0   : > { %v1610_v61 = vadd.f32 %v1578_v46, %v1538_v47  ;;  %v3401_v36 = vmul.f32 %v3379_v57, %v1487_v3  ;;  %v1720_v43 = vmul.f32 %v3181_v15, %v3383_v38  ;;  %v1750_v11 = vadd.f32 %v1718_v54, %v1678_v50  ;;  %v3415_v46 = vld [vmem:[%s4467_s7 + $0x18] ss:$0 sm:$0xff] }
 0x1b1   : > { %4584 = vst [vmem:[#allocation39_spill] sm:$0xff] %v3395_v45  ;;  %4585 = vst [vmem:[#allocation40_spill] sm:$0xff] %v3398_v9  ;;  %v1612_v23 = vadd.f32 %v1580_v31, %v1540_v37  ;;  %v3405_v59 = vadd.f32 %v1649_v10, %v1609_v7  ;;  %v1683_v18 = vadd.f32 %v1651_v22, %v1611_v44  ;;  %v1029_v10 = vpop.f32.mrf.mxu0 }
 0x1b2   : > { %4586 = vst [vmem:[#allocation41_spill] sm:$0xff] %v3401_v36  ;;  %v3407_v30 = vadd.f32 %v1861_v1, %v1821_v53  ;;  %v1650_v48 = vmul.f32 %v3179_v14, %v1486_v12  ;;  %v3410_v45 = vadd.f32 %v1863_v40, %v1823_v26  ;;  %4587 = vst [vmem:[#allocation42_spill] sm:$0xff] %v3415_v46  ;;  %v1228_v53 = vpop.f32.mrf.mxu1 }
 0x1b3   : > { %v1652_v35 = vmul.f32 %v3179_v14, %v1488_v24  ;;  %v1752_v3 = vadd.f32 %v1720_v43, %v3328_v41  ;;  %v1792_v50 = vmul.f32 %v3162_v28, %v3321_v17  ;;  %v1822_v1 = vadd.f32 %v1790_v49, %v1750_v11  ;;  %v1033_v43 = vpop.f32.mrf.mxu0 }
 0x1b4   : > { %v3421_v22 = vadd.f32 %v1650_v48, %v1610_v61  ;;  %v1862_v7 = vmul.f32 %v3184_v21, %v1486_v12  ;;  %v1864_v44 = vmul.f32 %v3184_v21, %v1488_v24  ;;  %v3428_v37 = vmul.f32 %v3196_v29, %v1361_v4 }
 0x1b5   : > { %v3425_v26 = vadd.f32 %v1652_v35, %v1612_v23  ;;  %v1824_v47 = vadd.f32 %v1792_v50, %v1752_v3  ;;  %v3432_v41 = vmul.f32 %v3188_v16, %v3321_v17  ;;  %v3435_v31 = vmul.f32 %v3415_v46, %v1486_v12 }
 0x1b6   : > { %4588 = vst [vmem:[#allocation43_spill] sm:$0xff] %v3428_v37  ;;  %v3438_v49 = vmul.f32 %v3415_v46, %v1488_v24  ;;  %v1227_v54 = vadd.f32 %v1226_v32, %v3148_v20  ;;  %v3442_v40 = vadd.f32 %v1023_v5, %v3152_v0  ;;  %v1271_v61 = vrot.slane %v3332_v56, 7 }
 0x1b7   : > { %4589 = vst [vmem:[#allocation44_spill] sm:$0xff] %v3432_v41  ;;  %4590 = vst [vmem:[#allocation45_spill] sm:$0xff] %v3435_v31  ;;  %v1398_v4 = vrot.slane %v3332_v56, 1  ;;  %v1229_v23 = vadd.f32 %v1228_v53, %v3152_v0  ;;  %v1028_v17 = vadd.f32 %v1027_v33, %v3148_v20  ;;  %v3448_v11 = vadd.f32 %v1862_v7, %v1822_v1 }
 0x1b8   : > { %4591 = vst [vmem:[#allocation46_spill] sm:$0xff] %v3438_v49  ;;  %v1581_v12 = vmul.f32 %v3155_v62, %v3332_v56  ;;  %v1793_v24 = vmul.f32 %v3157_v63, %v3332_v56  ;;  %v2005_v5 = vmul.f32 %v3186_v25, %v3332_v56  ;;  %v3456_v32 = vadd.f32 %v1864_v44, %v1824_v47 }
 0x1b9   : > { %v3459_v48 = vmul.f32 %v3198_v34, %v1227_v54  ;;  %v1291_v35 = vrot.slane %v1028_v17, 7  ;;  %v3462_v33 = vadd.f32 %v1029_v10, %v3152_v0  ;;  %v1272_v3 = vrot.slane %v3442_v40, 7 }
 0x1ba   : > { %v1399_v50 = vrot.slane %v3442_v40, 1  ;;  %v1418_v1 = vrot.slane %v1028_v17, 1  ;;  %v3467_v7 = vadd.f32 %v1033_v43, %v3148_v20  ;;  %v3471_v56 = vmul.f32 %v3159_v27, %v3442_v40 }
 0x1bb   : > { %4592 = vst [vmem:[#allocation47_spill] sm:$0xff] %v3459_v48  ;;  %v3475_v44 = vmul.f32 %v3162_v28, %v3442_v40  ;;  %v3478_v53 = vmul.f32 %v3198_v34, %v1229_v23  ;;  %v1314_v10 = vsel %vm1307_vm0, %v1271_v61, %v1291_v35  ;;  %v1334_v47 = vsel %vm1307_vm0, %v1291_v35, %v1271_v61 }
 0x1bc   : > { %v1366_v54 = vmul.f32 %v3208_v8, %v1314_v10  ;;  %v1439_v43 = vsel %vm1432_vm1, %v1398_v4, %v1418_v1  ;;  %v1459_v49 = vsel %vm1432_vm1, %v1418_v1, %v1398_v4  ;;  %v3493_v23 = vmul.f32 %v3188_v16, %v3442_v40 }
 0x1bd   : > { %4593 = vst [vmem:[#allocation48_spill] sm:$0xff] %v3478_v53  ;;  %v1364_v36 = vmul.f32 %v3203_v60, %v1334_v47  ;;  %v1489_v61 = vmul.f32 %v3228_v39, %v1439_v43  ;;  %v1491_v35 = vmul.f32 %v3239_v42, %v1459_v49  ;;  %v3502_v4 = vmul.f32 %v3155_v62, %v3459_v48 }
 0x1be   : > { %v1723_v10 = vmul.f32 %v3173_v19, %v1366_v54  ;;  %v1935_v9 = vmul.f32 %v3194_v51, %v1366_v54  ;;  %v1543_v41 = vmul.f32 %v3169_v55, %v1366_v54  ;;  %v3511_v49 = vmul.f32 %v3159_v27, %v3478_v53  ;;  %v4596_v54 = vld [vmem:[#allocation6_spill] sm:$0xff] }
 0x1bf   : > { %4594 = vst [vmem:[#allocation49_spill] sm:$0xff] %v3502_v4  ;;  %v1541_v1 = vmul.f32 %v3169_v55, %v1364_v36  ;;  %v1721_v40 = vmul.f32 %v3173_v19, %v1364_v36  ;;  %v1583_v37 = vmul.f32 %v3155_v62, %v1028_v17  ;;  %v1795_v38 = vmul.f32 %v3157_v63, %v1028_v17 }
 0x1c0   : > { %4595 = vst [vmem:[#allocation50_spill] sm:$0xff] %v3511_v49  ;;  %v1755_v31 = vadd.f32 %v1723_v10, %v1683_v18  ;;  %v1933_v4 = vmul.f32 %v3194_v51, %v1364_v36  ;;  %v1967_v42 = vadd.f32 %v1935_v9, %v3410_v45  ;;  %v1653_v55 = vmul.f32 %v4596_v54, %v1489_v61 }
 0x1c1   : > { %v1655_v39 = vmul.f32 %v4596_v54, %v1491_v35  ;;  %v1753_v47 = vadd.f32 %v1721_v40, %v3405_v59  ;;  %v2007_v43 = vmul.f32 %v3186_v25, %v1028_v17  ;;  %v1613_v8 = vadd.f32 %v1581_v12, %v1541_v1 }
 0x1c2   : > { %v1615_v53 = vadd.f32 %v1583_v37, %v1543_v41  ;;  %v1865_v18 = vmul.f32 %v3175_v6, %v1489_v61  ;;  %v1965_v10 = vadd.f32 %v1933_v4, %v3407_v30  ;;  %v1827_v49 = vadd.f32 %v1795_v38, %v1755_v31  ;;  %v4597_v4 = vld [vmem:[#allocation9_spill] sm:$0xff] }
 0x1c3   : > { %v2039_v60 = vadd.f32 %v2007_v43, %v1967_v42  ;;  %v1292_v36 = vrot.slane %v3462_v33, 7  ;;  %v1419_v45 = vrot.slane %v3462_v33, 1  ;;  %v1867_v9 = vmul.f32 %v3175_v6, %v1491_v35  ;;  %v4598_v43 = vld [vmem:[#allocation25_spill] sm:$0xff] }
 0x1c4   : > { %v2037_v48 = vadd.f32 %v2005_v5, %v1965_v10  ;;  %v2077_v54 = vmul.f32 %v3379_v57, %v1489_v61  ;;  %v2079_v59 = vmul.f32 %v3379_v57, %v1491_v35  ;;  %v1825_v17 = vadd.f32 %v1793_v24, %v1753_v47 }
 0x1c5   : > { %v1315_v37 = vsel %vm1307_vm0, %v1272_v3, %v1292_v36  ;;  %v1335_v30 = vsel %vm1307_vm0, %v1292_v36, %v1272_v3  ;;  %v1440_v38 = vsel %vm1432_vm1, %v1399_v50, %v1419_v45  ;;  %v1460_v12 = vsel %vm1432_vm1, %v1419_v45, %v1399_v50 }
 0x1c6   : > { %v2111_v42 = vadd.f32 %v2079_v59, %v2039_v60  ;;  %v1365_v41 = vmul.f32 %v3257_v58, %v1335_v30  ;;  %v1367_v31 = vmul.f32 %v3245_v13, %v1315_v37  ;;  %v3538_v5 = vadd.f32 %v1653_v55, %v1613_v8 }
 0x1c7   : > { %v3540_v24 = vadd.f32 %v1655_v39, %v1615_v53  ;;  %v3542_v61 = vadd.f32 %v1867_v9, %v1827_v49  ;;  %v2109_v35 = vadd.f32 %v2077_v54, %v2037_v48  ;;  %v1490_v3 = vmul.f32 %v3269_v2, %v1440_v38  ;;  %v4599_v39 = vld [vmem:[#allocation16_spill] sm:$0xff]  ;;  %v1232_v54 = vpop.f32.mrf.mxu1 }
 0x1c8   : > { %v1542_v1 = vmul.f32 %v4597_v4, %v1365_v41  ;;  %v1544_v60 = vmul.f32 %v4597_v4, %v1367_v31  ;;  %v1722_v40 = vmul.f32 %v3181_v15, %v1365_v41  ;;  %v3548_v47 = vadd.f32 %v1865_v18, %v1825_v17 }
 0x1c9   : > { %v1492_v10 = vmul.f32 %v4598_v43, %v1460_v12  ;;  %v1584_v55 = vmul.f32 %v3159_v27, %v3462_v33  ;;  %v1724_v8 = vmul.f32 %v3181_v15, %v1367_v31  ;;  %v2155_v50 = vadd.f32 %v4599_v39, %v2111_v42 }
 0x1ca   : > { %v1614_v48 = vadd.f32 %v3471_v56, %v1542_v1  ;;  %v1754_v53 = vadd.f32 %v1722_v40, %v3421_v22  ;;  %v1796_v49 = vmul.f32 %v3162_v28, %v3462_v33  ;;  %v1934_v45 = vmul.f32 %v3196_v29, %v1365_v41 }
 0x1cb   : > { %v1616_v36 = vadd.f32 %v1584_v55, %v1544_v60  ;;  %v1756_v18 = vadd.f32 %v1724_v8, %v3425_v26  ;;  %v1936_v9 = vmul.f32 %v3196_v29, %v1367_v31  ;;  %v2153_v59 = vadd.f32 %v4599_v39, %v2109_v35  ;;  %v1035_v35 = vpop.f32.mrf.mxu0 }
 0x1cc   : > { %v1654_v17 = vmul.f32 %v3179_v14, %v1490_v3  ;;  %v1826_v37 = vadd.f32 %v3475_v44, %v1754_v53  ;;  %v2008_v22 = vmul.f32 %v3188_v16, %v3462_v33  ;;  %v1656_v56 = vmul.f32 %v3179_v14, %v1492_v10  ;;  %v1234_v44 = vpop.f32.mrf.mxu1 }
 0x1cd   : > { %v1866_v30 = vmul.f32 %v3184_v21, %v1490_v3  ;;  %v1966_v38 = vadd.f32 %v1934_v45, %v3448_v11  ;;  %v1968_v26 = vadd.f32 %v1936_v9, %v3456_v32  ;;  %v1828_v41 = vadd.f32 %v1796_v49, %v1756_v18  ;;  %v1039_v18 = vpop.f32.mrf.mxu0  ;;  %v4604_v45 = vld [vmem:[#allocation17_spill] sm:$0xff] }
 0x1ce   : > { %v3571_v42 = vadd.f32 %v1654_v17, %v1614_v48  ;;  %v1868_v31 = vmul.f32 %v3184_v21, %v1492_v10  ;;  %v2078_v12 = vmul.f32 %v3415_v46, %v1490_v3  ;;  %v3575_v1 = vadd.f32 %v1656_v56, %v1616_v36  ;;  %v4606_v56 = vld [vmem:[#allocation34_spill] sm:$0xff]  ;;  %v4619_v21 = vld [vmem:[#allocation5_spill] sm:$0xff] }
 0x1cf   : > { %v2038_v33 = vadd.f32 %v3493_v23, %v1966_v38  ;;  %v2040_v60 = vadd.f32 %v2008_v22, %v1968_v26  ;;  %v2080_v40 = vmul.f32 %v3415_v46, %v1492_v10  ;;  %v3579_v55 = vadd.f32 %v1866_v30, %v1826_v37  ;;  %v4605_v37 = vld [vmem:[#allocation20_spill] sm:$0xff] }
 0x1d0   : > { %4600 = vst [vmem:[#allocation51_spill] sm:$0xff] %v3571_v42  ;;  %4601 = vst [vmem:[#allocation52_spill] sm:$0xff] %v3575_v1  ;;  %v1273_v11 = vrot.slane %v3467_v7, 7  ;;  %v1233_v8 = vadd.f32 %v1232_v54, %v3148_v20  ;;  %v3586_v53 = vmul.f32 %v3155_v62, %v3467_v7  ;;  %v1235_v23 = vadd.f32 %v1234_v44, %v3152_v0  ;;  %v4621_v46 = vld [vmem:[#allocation48_spill] sm:$0xff] }
 0x1d1   : > { %4602 = vst [vmem:[#allocation53_spill] sm:$0xff] %v3579_v55  ;;  %v2110_v48 = vadd.f32 %v2078_v12, %v2038_v33  ;;  %v2112_v3 = vadd.f32 %v2080_v40, %v2040_v60  ;;  %v3589_v49 = vadd.f32 %v1868_v31, %v1828_v41  ;;  %v3593_v10 = vmul.f32 %v3157_v63, %v3467_v7  ;;  %v4610_v40 = vld [vmem:[#allocation47_spill] sm:$0xff] }
 0x1d2   : > { %v3597_v36 = vmul.f32 %v3186_v25, %v3467_v7  ;;  %v1258_v54 = vmul.f32 %v3198_v34, %v1233_v8  ;;  %v1715_v22 = vmul.f32 %v3173_v19, %v4605_v37  ;;  %v3606_v30 = vmul.f32 %v3194_v51, %v4606_v56  ;;  %v4617_v37 = vld [vmem:[#allocation19_spill] sm:$0xff] }
 0x1d3   : > { %4603 = vst [vmem:[#allocation54_spill] sm:$0xff] %v3589_v49  ;;  %v2154_v9 = vadd.f32 %v4604_v45, %v2110_v48  ;;  %v2156_v17 = vadd.f32 %v4604_v45, %v2112_v3  ;;  %v3616_v41 = vadd.f32 %v1035_v35, %v3152_v0  ;;  %v1259_v31 = vmul.f32 %v3198_v34, %v1235_v23 }
 0x1d4   : > { %v1285_v38 = vrot.slane %v1258_v54, 7  ;;  %v1412_v26 = vrot.slane %v1258_v54, 1  ;;  %v1571_v33 = vmul.f32 %v3155_v62, %v1258_v54  ;;  %v3625_v60 = vadd.f32 %v1039_v18, %v3148_v20  ;;  %v4615_v54 = vld [vmem:[#allocation14_spill] sm:$0xff] }
 0x1d5   : > { %v3619_v12 = vmul.f32 %v2154_v9, %v2153_v59  ;;  %v3621_v44 = vmul.f32 %v2156_v17, %v2155_v50  ;;  %v4611_v8 = vrot.slane %v4610_v40, 7  ;;  %v4613_v34 = vrot.slane %v4610_v40, 1  ;;  %v4616_v9 = vld [vmem:[#allocation15_spill] sm:$0xff] }
 0x1d6   : > { %v1413_v32 = vrot.slane %v1259_v31, 1  ;;  %v1293_v40 = vrot.slane %v3625_v60, 7  ;;  %v4624_v49 = vrot.slane %v4621_v46, 1 }
 0x1d7   : > { %4608 = vst [vmem:[#allocation20_spill] sm:$0xff] %v3619_v12  ;;  %4609 = vst [vmem:[#allocation34_spill] sm:$0xff] %v3621_v44  ;;  %v1308_v48 = vsel %vm1307_vm0, %v4611_v8, %v1285_v38  ;;  %v4612_v3 = vmov %v4611_v8  ;;  %v1433_v50 = vsel %vm1432_vm1, %v4613_v34, %v1412_v26  ;;  %v4614_v59 = vmov %v4613_v34 }
 0x1d8   : > { %v1328_v35 = vsel %vm1307_vm0, %v1285_v38, %v4612_v3  ;;  %v1453_v23 = vsel %vm1432_vm1, %v1412_v26, %v4614_v59  ;;  %2199 = vst [vmem:[%s3613_s18 + $0x10] sm:$0xff] %v3619_v12  ;;  %2200 = vst [vmem:[%s3613_s18 + $0x18] sm:$0xff] %v3621_v44  ;;  %v1354_v17 = vmul.f32 %v4616_v9, %v1308_v48  ;;  %v4618_v38 = vld [vmem:[#allocation21_spill] sm:$0xff]  ;;  %v1286_v3 = vrot.slane %v1259_v31, 7  ;;  %v4620_v12 = vld [vmem:[#allocation6_spill] sm:$0xff] }
 0x1d9   : > { %v1352_v18 = vmul.f32 %v4615_v54, %v1328_v35  ;;  %v1477_v56 = vmul.f32 %v4617_v37, %v1433_v50  ;;  %v1479_v8 = vmul.f32 %v4618_v38, %v1453_v23  ;;  %v1572_v34 = vmul.f32 %v3159_v27, %v1259_v31 }
 0x1da   : > { %v1531_v59 = vmul.f32 %v4619_v21, %v1354_v17  ;;  %v4622_v48 = vrot.slane %v4621_v46, 7  ;;  %v4625_v17 = vmov %v4624_v49  ;;  %v1336_v46 = vsel %vm1307_vm0, %v1293_v40, %v1273_v11 }
 0x1db   : > { %v1529_v26 = vmul.f32 %v4619_v21, %v1352_v18  ;;  %v1641_v44 = vmul.f32 %v4620_v12, %v1477_v56  ;;  %v1643_v35 = vmul.f32 %v4620_v12, %v1479_v8  ;;  %v1434_v18 = vsel %vm1432_vm1, %v4624_v49, %v1413_v32  ;;  %v4626_v8 = vld [vmem:[#allocation49_spill] sm:$0xff] }
 0x1dc   : > { %v1309_v50 = vsel %vm1307_vm0, %v4622_v48, %v1286_v3  ;;  %v4623_v23 = vmov %v4622_v48  ;;  %v1454_v56 = vsel %vm1432_vm1, %v1413_v32, %v4625_v17  ;;  %v1603_v1 = vadd.f32 %v1571_v33, %v1531_v59  ;;  %v4628_v17 = vld [vmem:[#allocation27_spill] sm:$0xff] }
 0x1dd   : > { %v1329_v31 = vsel %vm1307_vm0, %v1286_v3, %v4623_v23  ;;  %v1601_v55 = vadd.f32 %v4626_v8, %v1529_v26  ;;  %v1355_v42 = vmul.f32 %v3245_v13, %v1309_v50  ;;  %v1478_v20 = vmul.f32 %v3269_v2, %v1434_v18  ;;  %v4627_v50 = vld [vmem:[#allocation24_spill] sm:$0xff] }
 0x1de   : > { %v1353_v48 = vmul.f32 %v3257_v58, %v1329_v31  ;;  %v1480_v3 = vmul.f32 %v4598_v43, %v1454_v56  ;;  %v1316_v23 = vsel %vm1307_vm0, %v1273_v11, %v1293_v40  ;;  %v1675_v57 = vadd.f32 %v1643_v35, %v1603_v1  ;;  %v4629_v43 = vld [vmem:[#allocation50_spill] sm:$0xff]  ;;  %v4642_v1 = vld [vmem:[#allocation36_spill] sm:$0xff] }
 0x1df   : > { %v1673_v49 = vadd.f32 %v1641_v44, %v1601_v55  ;;  %v1532_v33 = vmul.f32 %v4597_v4, %v1355_v42  ;;  %v1642_v26 = vmul.f32 %v3179_v14, %v1478_v20  ;;  %v1716_v31 = vmul.f32 %v3181_v15, %v4627_v50  ;;  %v4630_v40 = vld [vmem:[#allocation18_spill] sm:$0xff] }
 0x1e0   : > { %v1530_v32 = vmul.f32 %v4597_v4, %v1353_v48  ;;  %v1644_v59 = vmul.f32 %v3179_v14, %v1480_v3  ;;  %v1368_v18 = vmul.f32 %v4615_v54, %v1336_v46  ;;  %v1747_v8 = vadd.f32 %v1715_v22, %v1675_v57  ;;  %v4631_v48 = vld [vmem:[#allocation23_spill] sm:$0xff] }
 0x1e1   : > { %v1745_v56 = vadd.f32 %v4628_v17, %v1673_v49  ;;  %v1604_v55 = vadd.f32 %v1572_v34, %v1532_v33  ;;  %v1370_v42 = vmul.f32 %v4616_v9, %v1316_v23  ;;  %v1420_v20 = vrot.slane %v3625_v60, 1  ;;  %v4636_v17 = vld [vmem:[#allocation30_spill] sm:$0xff] }
 0x1e2   : > { %v1602_v11 = vadd.f32 %v4629_v43, %v1530_v32  ;;  %v1819_v3 = vadd.f32 %v4631_v48, %v1747_v8  ;;  %v3699_v57 = vmul.f32 %v3159_v27, %v3616_v41  ;;  %v4632_v43 = vrot.slane %v3467_v7, 1  ;;  %v4634_v32 = vld [vmem:[#allocation28_spill] sm:$0xff]  ;;  %v4637_v48 = vld [vmem:[#allocation39_spill] sm:$0xff] }
 0x1e3   : > { %v1817_v35 = vadd.f32 %v4630_v40, %v1745_v56  ;;  %v1676_v46 = vadd.f32 %v1644_v59, %v1604_v55  ;;  %v1545_v49 = vmul.f32 %v4619_v21, %v1368_v18  ;;  %v1547_v55 = vmul.f32 %v4619_v21, %v1370_v42 }
 0x1e4   : > { %v1674_v50 = vadd.f32 %v1642_v26, %v1602_v11  ;;  %v1441_v22 = vsel %vm1432_vm1, %v4632_v43, %v1420_v20  ;;  %v4633_v34 = vmov %v4632_v43  ;;  %v4635_v26 = vld [vmem:[#allocation29_spill] sm:$0xff]  ;;  %v1725_v40 = vmul.f32 %v3173_v19, %v1368_v18 }
 0x1e5   : > { %v1461_v23 = vsel %vm1432_vm1, %v1420_v20, %v4633_v34  ;;  %v1889_v33 = vadd.f32 %v4634_v32, %v1817_v35  ;;  %v1891_v59 = vadd.f32 %v4635_v26, %v1819_v3  ;;  %v1748_v8 = vadd.f32 %v1716_v31, %v1676_v46  ;;  %v4638_v34 = vld [vmem:[#allocation22_spill] sm:$0xff]  ;;  %v4641_v26 = vld [vmem:[#allocation33_spill] sm:$0xff] }
 0x1e6   : > { %v1746_v56 = vadd.f32 %v4636_v17, %v1674_v50  ;;  %v1493_v11 = vmul.f32 %v4617_v37, %v1441_v22  ;;  %v1727_v7 = vmul.f32 %v3173_v19, %v1370_v42  ;;  %v4639_v35 = vld [vmem:[#allocation26_spill] sm:$0xff]  ;;  %v1495_v31 = vmul.f32 %v4618_v38, %v1461_v23 }
 0x1e7   : > { %v1961_v43 = vadd.f32 %v4637_v48, %v1889_v33  ;;  %v1963_v20 = vadd.f32 %v3606_v30, %v1891_v59  ;;  %v1820_v32 = vadd.f32 %v4639_v35, %v1748_v8  ;;  %v4640_v3 = vld [vmem:[#allocation38_spill] sm:$0xff]  ;;  %v1587_v46 = vmul.f32 %v3155_v62, %v3625_v60  ;;  %v4643_v48 = vld [vmem:[#allocation31_spill] sm:$0xff]  ;;  %v4644_v59 = vld [vmem:[#allocation32_spill] sm:$0xff] }
 0x1e8   : > { %v1818_v44 = vadd.f32 %v4638_v34, %v1746_v56  ;;  %v1932_v50 = vmul.f32 %v3196_v29, %v4640_v3  ;;  %v1617_v22 = vadd.f32 %v3586_v53, %v1545_v49  ;;  %v3733_v8 = vmul.f32 %v3162_v28, %v3616_v41  ;;  %v4645_v49 = vld [vmem:[#allocation43_spill] sm:$0xff] }
 0x1e9   : > { %v2033_v17 = vadd.f32 %v4641_v26, %v1961_v43  ;;  %v2035_v33 = vadd.f32 %v4642_v1, %v1963_v20  ;;  %v1892_v56 = vadd.f32 %v4644_v59, %v1820_v32  ;;  %v1619_v34 = vadd.f32 %v1587_v46, %v1547_v55  ;;  %v1041_v46 = vpop.f32.mrf.mxu0  ;;  %v4648_v26 = vld [vmem:[#allocation41_spill] sm:$0xff]  ;;  %v4649_v59 = vld [vmem:[#allocation35_spill] sm:$0xff] }
 0x1ea   : > { %v1890_v30 = vadd.f32 %v4643_v48, %v1818_v44  ;;  %v1657_v23 = vmul.f32 %v4620_v12, %v1493_v11  ;;  %v1757_v35 = vadd.f32 %v1725_v40, %v3538_v5  ;;  %v3739_v53 = vmul.f32 %v3188_v16, %v3616_v41  ;;  %v4647_v5 = vld [vmem:[#allocation40_spill] sm:$0xff] }
 0x1eb   : > { %v1964_v1 = vadd.f32 %v1932_v50, %v1892_v56  ;;  %v1759_v44 = vadd.f32 %v1727_v7, %v3540_v24  ;;  %v1659_v20 = vmul.f32 %v4620_v12, %v1495_v31  ;;  %v1799_v55 = vmul.f32 %v3157_v63, %v3625_v60 }
 0x1ec   : > { %v1962_v43 = vadd.f32 %v4645_v49, %v1890_v30  ;;  %v3744_v32 = vadd.f32 %v1657_v23, %v1617_v22  ;;  %v1937_v3 = vmul.f32 %v3194_v51, %v1368_v18  ;;  %v2105_v40 = vadd.f32 %v4647_v5, %v2033_v17  ;;  %v4650_v30 = vld [vmem:[#allocation44_spill] sm:$0xff]  ;;  %v4651_v23 = vld [vmem:[#allocation45_spill] sm:$0xff]  ;;  %v4652_v18 = vld [vmem:[#allocation46_spill] sm:$0xff] }
 0x1ed   : > { %v2107_v48 = vadd.f32 %v4648_v26, %v2035_v33  ;;  %v2036_v50 = vadd.f32 %v4650_v30, %v1964_v1  ;;  %v3753_v56 = vadd.f32 %v1659_v20, %v1619_v34  ;;  %v1829_v24 = vadd.f32 %v3593_v10, %v1757_v35  ;;  %v1045_v35 = vpop.f32.mrf.mxu0 }
 0x1ee   : > { %4646 = vst [vmem:[#allocation47_spill] sm:$0xff] %v3744_v32  ;;  %v2034_v19 = vadd.f32 %v4649_v59, %v1962_v43  ;;  %v1939_v7 = vmul.f32 %v3194_v51, %v1370_v42  ;;  %v1969_v22 = vadd.f32 %v1937_v3, %v3548_v47  ;;  %v1831_v12 = vadd.f32 %v1799_v55, %v1759_v44 }
 0x1ef   : > { %v2108_v32 = vadd.f32 %v4652_v18, %v2036_v50  ;;  %v1869_v17 = vmul.f32 %v3175_v6, %v1493_v11  ;;  %v2011_v43 = vmul.f32 %v3186_v25, %v3625_v60  ;;  %v1042_v10 = vadd.f32 %v1041_v46, %v3152_v0  ;;  %v1047_v30 = vpop.f32.mrf.mxu0 }
 0x1f0   : > { %v2106_v49 = vadd.f32 %v4651_v23, %v2034_v19  ;;  %v1971_v33 = vadd.f32 %v1939_v7, %v3542_v61  ;;  %v2041_v34 = vadd.f32 %v3597_v36, %v1969_v22  ;;  %v2149_v42 = vadd.f32 %v4599_v39, %v2105_v40  ;;  %v4653_v61 = vld [vmem:[#allocation37_spill] sm:$0xff] }
 0x1f1   : > { %v2151_v47 = vadd.f32 %v4599_v39, %v2107_v48  ;;  %v2152_v1 = vadd.f32 %v4604_v45, %v2108_v32  ;;  %v2081_v20 = vmul.f32 %v4653_v61, %v1493_v11  ;;  %v1294_v55 = vrot.slane %v1042_v10, 7 }
 0x1f2   : > { %v2150_v19 = vadd.f32 %v4604_v45, %v2106_v49  ;;  %v2043_v44 = vadd.f32 %v2011_v43, %v1971_v33  ;;  %v1421_v60 = vrot.slane %v1042_v10, 1  ;;  %v1871_v46 = vmul.f32 %v3175_v6, %v1495_v31  ;;  %v4658_v33 = vld [vmem:[#allocation4_spill] sm:$0xff] }
 0x1f3   : > { %v2182_v36 = vmul.f32 %v2152_v1, %v2151_v47  ;;  %v3772_v5 = vadd.f32 %v1869_v17, %v1829_v24  ;;  %v2083_v40 = vmul.f32 %v4653_v61, %v1495_v31  ;;  %v2113_v26 = vadd.f32 %v2081_v20, %v2041_v34  ;;  %v1051_v20 = vpop.f32.mrf.mxu0 }
 0x1f4   : > { %v2181_v3 = vmul.f32 %v2150_v19, %v2149_v42  ;;  %v4654_v48 = vrot.slane %v3616_v41, 7  ;;  %v4656_v31 = vrot.slane %v3616_v41, 1  ;;  %v3791_v23 = vadd.f32 %v1871_v46, %v1831_v12 }
 0x1f5   : > { %2198 = vst [vmem:[%s3613_s18 + $0x8] sm:$0xff] %v2182_v36  ;;  %v2115_v49 = vadd.f32 %v2083_v40, %v2043_v44  ;;  %v3798_v43 = vadd.f32 %v1045_v35, %v4658_v33  ;;  %v3804_v19 = vadd.f32 %v1047_v30, %v3152_v0  ;;  %v1588_v1 = vmul.f32 %v3159_v27, %v1042_v10 }
 0x1f6   : > { %v1317_v59 = vsel %vm1307_vm0, %v4654_v48, %v1294_v55  ;;  %v4655_v32 = vmov %v4654_v48  ;;  %2197 = vst [vmem:[%s3613_s18] sm:$0xff] %v2181_v3  ;;  %v2213_v50 = vadd.f32 %v2182_v36, %v2181_v3  ;;  %v1442_v22 = vsel %vm1432_vm1, %v4656_v31, %v1421_v60  ;;  %v4660_v3 = vld [vmem:[#allocation51_spill] sm:$0xff]  ;;  %v4661_v48 = vld [vmem:[#allocation52_spill] sm:$0xff] }
 0x1f7   : > { %v1337_v11 = vsel %vm1307_vm0, %v1294_v55, %v4655_v32  ;;  %v1371_v7 = vmul.f32 %v3245_v13, %v1317_v59  ;;  %v4657_v18 = vmov %v4656_v31  ;;  %v1494_v12 = vmul.f32 %v3269_v2, %v1442_v22  ;;  %v4659_v55 = vld [vmem:[#allocation25_spill] sm:$0xff] }
 0x1f8   : > { %v1369_v24 = vmul.f32 %v3257_v58, %v1337_v11  ;;  %v1462_v17 = vsel %vm1432_vm1, %v1421_v60, %v4657_v18  ;;  %v2157_v35 = vadd.f32 %v4599_v39, %v2113_v26  ;;  %v1800_v46 = vmul.f32 %v3162_v28, %v1042_v10  ;;  %v4662_v11 = vld [vmem:[#allocation53_spill] sm:$0xff] }
 0x1f9   : > { %v1548_v42 = vmul.f32 %v4597_v4, %v1371_v7  ;;  %v1728_v41 = vmul.f32 %v3181_v15, %v1371_v7  ;;  %v1496_v60 = vmul.f32 %v4659_v55, %v1462_v17  ;;  %v2159_v40 = vadd.f32 %v4599_v39, %v2115_v49  ;;  %v4663_v17 = vld [vmem:[#allocation54_spill] sm:$0xff] }
 0x1fa   : > { %v1546_v34 = vmul.f32 %v4597_v4, %v1369_v24  ;;  %v1726_v47 = vmul.f32 %v3181_v15, %v1369_v24  ;;  %v1938_v44 = vmul.f32 %v3196_v29, %v1369_v24  ;;  %v1940_v32 = vmul.f32 %v3196_v29, %v1371_v7  ;;  %v4664_v49 = vld [vmem:[#allocation42_spill] sm:$0xff] }
 0x1fb   : > { %v1760_v59 = vadd.f32 %v1728_v41, %v4661_v48  ;;  %v1620_v24 = vadd.f32 %v1588_v1, %v1548_v42  ;;  %v2012_v26 = vmul.f32 %v3188_v16, %v1042_v10  ;;  %v1658_v18 = vmul.f32 %v3179_v14, %v1494_v12  ;;  %v1053_v41 = vpop.f32.mrf.mxu0 }
 0x1fc   : > { %v1758_v36 = vadd.f32 %v1726_v47, %v4660_v3  ;;  %v1970_v30 = vadd.f32 %v1938_v44, %v4662_v11  ;;  %v1618_v31 = vadd.f32 %v3699_v57, %v1546_v34  ;;  %v1972_v47 = vadd.f32 %v1940_v32, %v4663_v17  ;;  %v4665_v44 = vld [vmem:[#allocation11_spill] sm:$0xff]  ;;  %v4666_v57 = vld [vmem:[#allocation20_spill] sm:$0xff] }
 0x1fd   : > { %v2082_v39 = vmul.f32 %v4664_v49, %v1494_v12  ;;  %v1660_v7 = vmul.f32 %v3179_v14, %v1496_v60  ;;  %v1832_v48 = vadd.f32 %v1800_v46, %v1760_v59  ;;  %v1870_v11 = vmul.f32 %v4665_v44, %v1494_v12  ;;  %v1057_v59 = vpop.f32.mrf.mxu0 }
 0x1fe   : > { %v1830_v22 = vadd.f32 %v3733_v8, %v1758_v36  ;;  %v2042_v3 = vadd.f32 %v3739_v53, %v1970_v30  ;;  %v2214_v34 = vadd.f32 %v2213_v50, %v4666_v57  ;;  %v1872_v8 = vmul.f32 %v4665_v44, %v1496_v60  ;;  %v4667_v30 = vld [vmem:[#allocation34_spill] sm:$0xff] }
 0x1ff   : > { %v2044_v42 = vadd.f32 %v2012_v26, %v1972_v47  ;;  %v2084_v10 = vmul.f32 %v4664_v49, %v1496_v60  ;;  %v3830_v36 = vadd.f32 %v1658_v18, %v1618_v31  ;;  %v3832_v32 = vadd.f32 %v1660_v7, %v1620_v24 }
 0x200   : > { %v2114_v1 = vadd.f32 %v2082_v39, %v2042_v3  ;;  %v3834_v53 = vadd.f32 %v1870_v11, %v1830_v22  ;;  %v2215_v17 = vadd.f32 %v2214_v34, %v4667_v30  ;;  %v1275_v12 = vrot.slane %v3798_v43, 7 }
 0x201   : > { %v2116_v29 = vadd.f32 %v2084_v10, %v2044_v42  ;;  %v1402_v50 = vrot.slane %v3798_v43, 1  ;;  %v3840_v26 = vadd.f32 %v1872_v8, %v1832_v48  ;;  %v1589_v39 = vmul.f32 %v3155_v62, %v3798_v43 }
 0x202   : > { %v2158_v46 = vadd.f32 %v4604_v45, %v2114_v1  ;;  %v1801_v60 = vmul.f32 %v3157_v63, %v3798_v43  ;;  %v1052_v31 = vadd.f32 %v1051_v20, %v4658_v33  ;;  %v2013_v18 = vmul.f32 %v3186_v25, %v3798_v43  ;;  %v1059_v43 = vpop.f32.mrf.mxu0 }
 0x203   : > { %v2160_v24 = vadd.f32 %v4604_v45, %v2116_v29  ;;  %v3851_v47 = vadd.f32 %v1053_v41, %v3152_v0  ;;  %v1276_v3 = vrot.slane %v3804_v19, 7  ;;  %v1403_v7 = vrot.slane %v3804_v19, 1 }
 0x204   : > { %v2185_v22 = vmul.f32 %v2158_v46, %v2157_v35  ;;  %v1295_v48 = vrot.slane %v1052_v31, 7  ;;  %v1422_v11 = vrot.slane %v1052_v31, 1  ;;  %v1590_v29 = vmul.f32 %v3159_v27, %v3804_v19 }
 0x205   : > { %v2186_v57 = vmul.f32 %v2160_v24, %v2159_v40  ;;  %v3860_v20 = vmul.f32 %v3162_v28, %v3804_v19  ;;  %v1296_v30 = vrot.slane %v3851_v47, 7 }
 0x206   : > { %2201 = vst [vmem:[%s3613_s18 + $0x20] sm:$0xff] %v2185_v22  ;;  %v2216_v34 = vadd.f32 %v2215_v17, %v2185_v22  ;;  %v1318_v35 = vsel %vm1307_vm0, %v1275_v12, %v1295_v48  ;;  %v1338_v41 = vsel %vm1307_vm0, %v1295_v48, %v1275_v12  ;;  %v1443_v8 = vsel %vm1432_vm1, %v1402_v50, %v1422_v11  ;;  %v4670_v22 = vld [vmem:[#allocation7_spill] sm:$0xff] }
 0x207   : > { %v1463_v40 = vsel %vm1432_vm1, %v1422_v11, %v1402_v50  ;;  %2202 = vst [vmem:[%s3613_s18 + $0x28] sm:$0xff] %v2186_v57  ;;  %v1372_v10 = vmul.f32 %v4615_v54, %v1338_v41  ;;  %v1374_v1 = vmul.f32 %v4616_v9, %v1318_v35  ;;  %v3878_v17 = vmul.f32 %v3188_v16, %v3804_v19  ;;  %v4671_v35 = vld [vmem:[#allocation6_spill] sm:$0xff] }
 0x208   : > { %v3871_v42 = vadd.f32 %v2216_v34, %v2186_v57  ;;  %v1497_v46 = vmul.f32 %v4617_v37, %v1443_v8  ;;  %v3882_v12 = vadd.f32 %v1057_v59, %v4658_v33  ;;  %v3885_v50 = vadd.f32 %v1059_v43, %v3152_v0  ;;  %v4672_v8 = vld [vmem:[#allocation47_spill] sm:$0xff] }
 0x209   : > { %v1499_v24 = vmul.f32 %v4618_v38, %v1463_v40  ;;  %v1549_v54 = vmul.f32 %v4619_v21, %v1372_v10  ;;  %v1591_v9 = vmul.f32 %v3155_v62, %v1052_v31  ;;  %v1729_v48 = vmul.f32 %v4670_v22, %v1372_v10 }
 0x20a   : > { %4668 = vst [vmem:[#allocation14_spill] sm:$0xff] %v3871_v42  ;;  %4669 = vst [vmem:[#allocation15_spill] sm:$0xff] %v3885_v50  ;;  %v1551_v11 = vmul.f32 %v4619_v21, %v1374_v1  ;;  %v1731_v19 = vmul.f32 %v4670_v22, %v1374_v1  ;;  %v1803_v37 = vmul.f32 %v3157_v63, %v1052_v31  ;;  %v1423_v43 = vrot.slane %v3851_v47, 1 }
 0x20b   : > { %v2015_v59 = vmul.f32 %v3186_v25, %v1052_v31  ;;  %v1941_v57 = vmul.f32 %v3194_v51, %v1372_v10  ;;  %v1319_v34 = vsel %vm1307_vm0, %v1276_v3, %v1296_v30  ;;  %v1339_v38 = vsel %vm1307_vm0, %v1296_v30, %v1276_v3 }
 0x20c   : > { %v1661_v41 = vmul.f32 %v4671_v35, %v1497_v46  ;;  %v1761_v40 = vadd.f32 %v1729_v48, %v4672_v8  ;;  %v1763_v22 = vadd.f32 %v1731_v19, %v3753_v56  ;;  %v1943_v21 = vmul.f32 %v3194_v51, %v1374_v1 }
 0x20d   : > { %v1621_v42 = vadd.f32 %v1589_v39, %v1549_v54  ;;  %v1663_v31 = vmul.f32 %v4671_v35, %v1499_v24  ;;  %v1873_v10 = vmul.f32 %v3175_v6, %v1497_v46  ;;  %v1973_v45 = vadd.f32 %v1941_v57, %v3772_v5  ;;  %v1063_v57 = vpop.f32.mrf.mxu0 }
 0x20e   : > { %v1623_v50 = vadd.f32 %v1591_v9, %v1551_v11  ;;  %v1975_v3 = vadd.f32 %v1943_v21, %v3791_v23  ;;  %v1373_v30 = vmul.f32 %v3257_v58, %v1339_v38  ;;  %v1375_v25 = vmul.f32 %v3245_v13, %v1319_v34 }
 0x20f   : > { %v1875_v48 = vmul.f32 %v3175_v6, %v1499_v24  ;;  %v2045_v8 = vadd.f32 %v2013_v18, %v1973_v45  ;;  %v1444_v56 = vsel %vm1432_vm1, %v1403_v7, %v1423_v43  ;;  %v1464_v39 = vsel %vm1432_vm1, %v1423_v43, %v1403_v7  ;;  %v4673_v43 = vld [vmem:[#allocation13_spill] sm:$0xff] }
 0x210   : > { %v1833_v1 = vadd.f32 %v1801_v60, %v1761_v40  ;;  %v1835_v54 = vadd.f32 %v1803_v37, %v1763_v22  ;;  %v2047_v19 = vadd.f32 %v2015_v59, %v1975_v3  ;;  %v2085_v5 = vmul.f32 %v4653_v61, %v1497_v46 }
 0x211   : > { %v2087_v21 = vmul.f32 %v4653_v61, %v1499_v24  ;;  %v1498_v58 = vmul.f32 %v3269_v2, %v1444_v56  ;;  %v1550_v13 = vmul.f32 %v4597_v4, %v1373_v30  ;;  %v1552_v23 = vmul.f32 %v4597_v4, %v1375_v25 }
 0x212   : > { %v3921_v45 = vadd.f32 %v1661_v41, %v1621_v42  ;;  %v3923_v18 = vadd.f32 %v1663_v31, %v1623_v50  ;;  %v1500_v9 = vmul.f32 %v4659_v55, %v1464_v39  ;;  %v1730_v60 = vmul.f32 %v3181_v15, %v1373_v30 }
 0x213   : > { %v2117_v7 = vadd.f32 %v2085_v5, %v2045_v8  ;;  %v2119_v22 = vadd.f32 %v2087_v21, %v2047_v19  ;;  %v1592_v46 = vmul.f32 %v3159_v27, %v3851_v47  ;;  %v1732_v61 = vmul.f32 %v3181_v15, %v1375_v25 }
 0x214   : > { %v3930_v2 = vadd.f32 %v1873_v10, %v1833_v1  ;;  %v3932_v24 = vadd.f32 %v1875_v48, %v1835_v54  ;;  %v1622_v11 = vadd.f32 %v1590_v29, %v1550_v13  ;;  %v1762_v42 = vadd.f32 %v1730_v60, %v3830_v36  ;;  %v4674_v29 = vld [vmem:[#allocation16_spill] sm:$0xff]  ;;  %v1065_v1 = vpop.f32.mrf.mxu0 }
 0x215   : > { %v1624_v50 = vadd.f32 %v1592_v46, %v1552_v23  ;;  %v1662_v37 = vmul.f32 %v3179_v14, %v1498_v58  ;;  %v1764_v55 = vadd.f32 %v1732_v61, %v3832_v32  ;;  %v1804_v59 = vmul.f32 %v3162_v28, %v3851_v47 }
 0x216   : > { %v1664_v34 = vmul.f32 %v3179_v14, %v1500_v9  ;;  %v1834_v38 = vadd.f32 %v3860_v20, %v1762_v42  ;;  %v1942_v41 = vmul.f32 %v4673_v43, %v1373_v30  ;;  %v1944_v40 = vmul.f32 %v4673_v43, %v1375_v25  ;;  %v4677_v42 = vld [vmem:[#allocation17_spill] sm:$0xff] }
 0x217   : > { %v2161_v31 = vadd.f32 %v4674_v29, %v2117_v7  ;;  %v2163_v36 = vadd.f32 %v4674_v29, %v2119_v22  ;;  %v1836_v10 = vadd.f32 %v1804_v59, %v1764_v55  ;;  %v1874_v3 = vmul.f32 %v4665_v44, %v1498_v58  ;;  %v4676_v7 = vld [vmem:[#allocation15_spill] sm:$0xff] }
 0x218   : > { %v3946_v32 = vadd.f32 %v1662_v37, %v1622_v11  ;;  %v1974_v48 = vadd.f32 %v1942_v41, %v3834_v53  ;;  %v1976_v8 = vadd.f32 %v1944_v40, %v3840_v26  ;;  %v2016_v20 = vmul.f32 %v3188_v16, %v3851_v47  ;;  %v1069_v11 = vpop.f32.mrf.mxu0 }
 0x219   : > { %v3952_v56 = vadd.f32 %v1664_v34, %v1624_v50  ;;  %v1876_v25 = vmul.f32 %v4665_v44, %v1500_v9  ;;  %v2086_v30 = vmul.f32 %v4664_v49, %v1498_v58  ;;  %v2088_v39 = vmul.f32 %v4664_v49, %v1500_v9 }
 0x21a   : > { %v3957_v54 = vadd.f32 %v1874_v3, %v1834_v38  ;;  %v2046_v19 = vadd.f32 %v3878_v17, %v1974_v48  ;;  %v2048_v5 = vadd.f32 %v2016_v20, %v1976_v8  ;;  %v1277_v53 = vrot.slane %v3882_v12, 7  ;;  %v4675_v17 = vld [vmem:[#allocation12_spill] sm:$0xff]  ;;  %v3996_v48 = vld [vmem:[%s4469_s9 + $0x10] sm:$0xff] }
 0x21b   : > { %v3961_v26 = vadd.f32 %v1876_v25, %v1836_v10  ;;  %v1404_v47 = vrot.slane %v3882_v12, 1  ;;  %v1593_v21 = vmul.f32 %v3155_v62, %v3882_v12  ;;  %v1064_v13 = vadd.f32 %v1063_v57, %v4658_v33  ;;  %v3990_v10 = vld [vmem:[%s4469_s9] sm:$0xff] }
 0x21c   : > { %v2118_v58 = vadd.f32 %v2086_v30, %v2046_v19  ;;  %v2120_v23 = vadd.f32 %v2088_v39, %v2048_v5  ;;  %v1805_v49 = vmul.f32 %v3157_v63, %v3882_v12  ;;  %v3970_v9 = vadd.f32 %v1065_v1, %v3152_v0  ;;  %v4014_v25 = vld [vmem:[%s4470_s10] sm:$0xff]  ;;  %v4017_v39 = vpop.f32.mrf.mxu0  ;;  %v4679_v1 = vld [vmem:[#allocation14_spill] sm:$0xff] }
 0x21d   : > { %v2017_v60 = vmul.f32 %v4675_v17, %v3882_v12  ;;  %v1278_v22 = vrot.slane %v4676_v7, 7  ;;  %v1297_v46 = vrot.slane %v1064_v13, 7  ;;  %v1424_v61 = vrot.slane %v1064_v13, 1  ;;  %4678 = vst [vmem:[#allocation19_spill] sm:$0xff] %v4014_v25  ;;  %v4025_v5 = vld [vmem:[%s4470_s10 + $0x10] sm:$0xff] }
 0x21e   : > { %v2162_v50 = vadd.f32 %v4677_v42, %v2118_v58  ;;  %v2164_v37 = vadd.f32 %v4677_v42, %v2120_v23  ;;  %v1405_v55 = vrot.slane %v4676_v7, 1  ;;  %v1298_v59 = vrot.slane %v3970_v9, 7  ;;  %4680 = vst [vmem:[#allocation21_spill] sm:$0xff] %v4025_v5  ;;  %v4682_v23 = vld [vmem:[#allocation7_spill] sm:$0xff] }
 0x21f   : > { %v1320_v57 = vsel %vm1307_vm0, %v1277_v53, %v1297_v46  ;;  %v1340_v12 = vsel %vm1307_vm0, %v1297_v46, %v1277_v53  ;;  %v1445_v34 = vsel %vm1432_vm1, %v1404_v47, %v1424_v61  ;;  %v1465_v38 = vsel %vm1432_vm1, %v1424_v61, %v1404_v47  ;;  %v4681_v47 = vld [vmem:[#allocation5_spill] sm:$0xff] }
 0x220   : > { %v2187_v41 = vmul.f32 %v2162_v50, %v2161_v31  ;;  %v2188_v40 = vmul.f32 %v2164_v37, %v2163_v36  ;;  %v1376_v3 = vmul.f32 %v3990_v10, %v1340_v12  ;;  %v1378_v8 = vmul.f32 %v3996_v48, %v1320_v57 }
 0x221   : > { %v4001_v20 = vmul.f32 %v3159_v27, %v4676_v7  ;;  %v4005_v31 = vmul.f32 %v3162_v28, %v4676_v7  ;;  %v4009_v36 = vmul.f32 %v3188_v16, %v4676_v7  ;;  %v1501_v30 = vmul.f32 %v4014_v25, %v1445_v34 }
 0x222   : > { %2203 = vst [vmem:[%s3613_s18 + $0x30] sm:$0xff] %v2187_v41  ;;  %2204 = vst [vmem:[%s3613_s18 + $0x38] sm:$0xff] %v2188_v40  ;;  %v2218_v19 = vadd.f32 %v4679_v1, %v2187_v41  ;;  %v1503_v53 = vmul.f32 %v4025_v5, %v1465_v38  ;;  %v1553_v58 = vmul.f32 %v4681_v47, %v1376_v3 }
 0x223   : > { %v1733_v7 = vmul.f32 %v4682_v23, %v1376_v3  ;;  %v1555_v46 = vmul.f32 %v4681_v47, %v1378_v8  ;;  %v1595_v61 = vmul.f32 %v3155_v62, %v1064_v13  ;;  %v1735_v50 = vmul.f32 %v4682_v23, %v1378_v8 }
 0x224   : > { %v4034_v37 = vadd.f32 %v1069_v11, %v4658_v33  ;;  %v4036_v57 = vadd.f32 %v2218_v19, %v2188_v40  ;;  %v1807_v12 = vmul.f32 %v3157_v63, %v1064_v13  ;;  %v2019_v34 = vmul.f32 %v4675_v17, %v1064_v13  ;;  %v4047_v11 = vpop.f32.mrf.mxu0 }
 0x225   : > { %v1321_v38 = vsel %vm1307_vm0, %v1278_v22, %v1298_v59  ;;  %v1765_v41 = vadd.f32 %v1733_v7, %v3921_v45  ;;  %v1945_v1 = vmul.f32 %v3194_v51, %v1376_v3  ;;  %v1947_v47 = vmul.f32 %v3194_v51, %v1378_v8  ;;  %v4072_v7 = vld [vmem:[%s4467_s7 + $0x10] ss:$0 sm:$0xff] }
 0x226   : > { %4683 = vst [vmem:[#allocation48_spill] sm:$0xff] %v4036_v57  ;;  %v1341_v23 = vsel %vm1307_vm0, %v1298_v59, %v1278_v22  ;;  %v1625_v40 = vadd.f32 %v1593_v21, %v1553_v58  ;;  %v1665_v19 = vmul.f32 %v4671_v35, %v1501_v30  ;;  %v1667_v57 = vmul.f32 %v4671_v35, %v1503_v53  ;;  %v4059_v22 = vld [vmem:[%s4469_s9 + $0x8] sm:$0xff]  ;;  %v4065_v59 = vld [vmem:[%s4469_s9 + $0x18] sm:$0xff] }
 0x227   : > { %v1877_v13 = vmul.f32 %v3175_v6, %v1501_v30  ;;  %v1627_v5 = vadd.f32 %v1595_v61, %v1555_v46  ;;  %v1767_v25 = vadd.f32 %v1735_v50, %v3923_v18  ;;  %v1977_v45 = vadd.f32 %v1945_v1, %v3930_v2  ;;  %4684 = vst [vmem:[#allocation49_spill] sm:$0xff] %v4065_v59 }
 0x228   : > { %v1979_v3 = vadd.f32 %v1947_v47, %v3932_v24  ;;  %v1879_v8 = vmul.f32 %v3175_v6, %v1503_v53  ;;  %v1377_v21 = vmul.f32 %v4059_v22, %v1341_v23  ;;  %v1379_v18 = vmul.f32 %v4065_v59, %v1321_v38  ;;  %v1077_v23 = vpop.f32.mrf.mxu0 }
 0x229   : > { %v1425_v2 = vrot.slane %v3970_v9, 1  ;;  %v1837_v58 = vadd.f32 %v1805_v49, %v1765_v41  ;;  %v2049_v24 = vadd.f32 %v2017_v60, %v1977_v45  ;;  %v2089_v46 = vmul.f32 %v4072_v7, %v1501_v30  ;;  %v4087_v30 = vld [vmem:[%s4470_s10 + $0x8] sm:$0xff] }
 0x22a   : > { %v2051_v47 = vadd.f32 %v2019_v34, %v1979_v3  ;;  %v1554_v38 = vmul.f32 %v4597_v4, %v1377_v21  ;;  %v1556_v49 = vmul.f32 %v4597_v4, %v1379_v18  ;;  %v1839_v60 = vadd.f32 %v1807_v12, %v1767_v25  ;;  %4685 = vst [vmem:[#allocation24_spill] sm:$0xff] %v4087_v30  ;;  %v1081_v6 = vpop.f32.mrf.mxu0 }
 0x22b   : > { %v1446_v61 = vsel %vm1432_vm1, %v1405_v55, %v1425_v2  ;;  %v1466_v50 = vsel %vm1432_vm1, %v1425_v2, %v1405_v55  ;;  %v2091_v34 = vmul.f32 %v4072_v7, %v1503_v53  ;;  %v2121_v41 = vadd.f32 %v2089_v46, %v2049_v24  ;;  %v4093_v55 = vld [vmem:[%s4470_s10 + $0x18] sm:$0xff] }
 0x22c   : > { %v1596_v1 = vmul.f32 %v3159_v27, %v3970_v9  ;;  %v1502_v45 = vmul.f32 %v4087_v30, %v1446_v61  ;;  %4686 = vst [vmem:[#allocation27_spill] sm:$0xff] %v4093_v55  ;;  %v1504_v25 = vmul.f32 %v4093_v55, %v1466_v50  ;;  %v1734_v53 = vmul.f32 %v3181_v15, %v1377_v21 }
 0x22d   : > { %v1736_v12 = vmul.f32 %v3181_v15, %v1379_v18  ;;  %v4098_v3 = vadd.f32 %v1665_v19, %v1625_v40  ;;  %v4100_v2 = vadd.f32 %v1667_v57, %v1627_v5  ;;  %v4102_v24 = vadd.f32 %v1877_v13, %v1837_v58 }
 0x22e   : > { %v2123_v46 = vadd.f32 %v2091_v34, %v2051_v47  ;;  %v1626_v61 = vadd.f32 %v4001_v20, %v1554_v38  ;;  %v1628_v35 = vadd.f32 %v1596_v1, %v1556_v49  ;;  %v1766_v30 = vadd.f32 %v1734_v53, %v3946_v32  ;;  %v1083_v47 = vpop.f32.mrf.mxu0 }
 0x22f   : > { %v1768_v4 = vadd.f32 %v1736_v12, %v3952_v56  ;;  %v4107_v50 = vadd.f32 %v1879_v8, %v1839_v60  ;;  %v2165_v55 = vadd.f32 %v4674_v29, %v2121_v41  ;;  %v1808_v40 = vmul.f32 %v3162_v28, %v3970_v9 }
 0x230   : > { %v1946_v5 = vmul.f32 %v4673_v43, %v1377_v21  ;;  %v1666_v57 = vmul.f32 %v3179_v14, %v1502_v45  ;;  %v1668_v19 = vmul.f32 %v3179_v14, %v1504_v25  ;;  %v1838_v20 = vadd.f32 %v4005_v31, %v1766_v30  ;;  %v1087_v12 = vpop.f32.mrf.mxu0 }
 0x231   : > { %v1948_v13 = vmul.f32 %v4673_v43, %v1379_v18  ;;  %v2167_v32 = vadd.f32 %v4674_v29, %v2123_v46  ;;  %v1840_v56 = vadd.f32 %v1808_v40, %v1768_v4  ;;  %v1878_v8 = vmul.f32 %v4665_v44, %v1502_v45  ;;  %v4132_v4 = vld [vmem:[%s4467_s7 + $0x18] ss:$0 sm:$0xff] }
 0x232   : > { %v1978_v58 = vadd.f32 %v1946_v5, %v3957_v54  ;;  %v4120_v38 = vadd.f32 %v1666_v57, %v1626_v61  ;;  %v4122_v49 = vadd.f32 %v1668_v19, %v1628_v35  ;;  %v2020_v60 = vmul.f32 %v3188_v16, %v3970_v9 }
 0x233   : > { %v1980_v21 = vadd.f32 %v1948_v13, %v3961_v26  ;;  %v1880_v31 = vmul.f32 %v4665_v44, %v1504_v25  ;;  %v2090_v54 = vmul.f32 %v4132_v4, %v1502_v45  ;;  %v2092_v34 = vmul.f32 %v4132_v4, %v1504_v25 }
 0x234   : > { %4687 = vst [vmem:[#allocation50_spill] sm:$0xff] %v4120_v38  ;;  %v2050_v18 = vadd.f32 %v4009_v36, %v1978_v58  ;;  %v4136_v35 = vadd.f32 %v1878_v8, %v1838_v20  ;;  %v1279_v26 = vrot.slane %v4034_v37, 7  ;;  %v1076_v9 = vadd.f32 %v4047_v11, %v4658_v33 }
 0x235   : > { %v2052_v41 = vadd.f32 %v2020_v60, %v1980_v21  ;;  %v4141_v1 = vadd.f32 %v1880_v31, %v1840_v56  ;;  %v1406_v30 = vrot.slane %v4034_v37, 1  ;;  %v1072_v53 = vadd.f32 %v4017_v39, %v3152_v0 }
 0x236   : > { %v2122_v36 = vadd.f32 %v2090_v54, %v2050_v18  ;;  %v4148_v25 = vmul.f32 %v3155_v62, %v4034_v37  ;;  %v4152_v46 = vmul.f32 %v3157_v63, %v4034_v37  ;;  %v2021_v11 = vmul.f32 %v4675_v17, %v4034_v37 }
 0x237   : > { %v2124_v45 = vadd.f32 %v2092_v34, %v2052_v41  ;;  %v1299_v40 = vrot.slane %v1076_v9, 7  ;;  %v4158_v5 = vadd.f32 %v1077_v23, %v3152_v0  ;;  %v4161_v39 = vadd.f32 %v1081_v6, %v4658_v33  ;;  %v4690_v34 = vld [vmem:[#allocation19_spill] sm:$0xff] }
 0x238   : > { %v2166_v61 = vadd.f32 %v4677_v42, %v2122_v36  ;;  %v1426_v19 = vrot.slane %v1076_v9, 1  ;;  %v4165_v20 = vadd.f32 %v1083_v47, %v3152_v0  ;;  %v4168_v13 = vadd.f32 %v1087_v12, %v4658_v33  ;;  %v4691_v36 = vld [vmem:[#allocation21_spill] sm:$0xff] }
 0x239   : > { %v2168_v57 = vadd.f32 %v4677_v42, %v2124_v45  ;;  %v1280_v56 = vrot.slane %v1072_v53, 7  ;;  %v1322_v8 = vsel %vm1307_vm0, %v1279_v26, %v1299_v40  ;;  %v1342_v23 = vsel %vm1307_vm0, %v1299_v40, %v1279_v26  ;;  %v4692_v45 = vld [vmem:[#allocation7_spill] sm:$0xff] }
 0x23a   : > { %v2189_v37 = vmul.f32 %v2166_v61, %v2165_v55  ;;  %v1380_v58 = vmul.f32 %v3990_v10, %v1342_v23  ;;  %v1382_v21 = vmul.f32 %v3996_v48, %v1322_v8  ;;  %v1447_v47 = vsel %vm1432_vm1, %v1406_v30, %v1426_v19 }
 0x23b   : > { %v2190_v6 = vmul.f32 %v2168_v57, %v2167_v32  ;;  %v1407_v60 = vrot.slane %v1072_v53, 1  ;;  %v4180_v31 = vmul.f32 %v3159_v27, %v1072_v53  ;;  %v1467_v55 = vsel %vm1432_vm1, %v1426_v19, %v1406_v30  ;;  %v4693_v57 = vld [vmem:[#allocation48_spill] sm:$0xff] }
 0x23c   : > { %2205 = vst [vmem:[%s3613_s18 + $0x40] sm:$0xff] %v2189_v37  ;;  %v1300_v18 = vrot.slane %v4158_v5, 7  ;;  %v4187_v32 = vmul.f32 %v3162_v28, %v1072_v53  ;;  %v2022_v54 = vmul.f32 %v3188_v16, %v1072_v53  ;;  %v4191_v41 = vmul.f32 %v4690_v34, %v1447_v47  ;;  %v4694_v47 = vld [vmem:[#allocation5_spill] sm:$0xff] }
 0x23d   : > { %4688 = vst [vmem:[#allocation18_spill] sm:$0xff] %v4180_v31  ;;  %2206 = vst [vmem:[%s3613_s18 + $0x48] sm:$0xff] %v2190_v6  ;;  %v1599_v26 = vmul.f32 %v3155_v62, %v1076_v9  ;;  %v4195_v12 = vmul.f32 %v4691_v36, %v1467_v55  ;;  %v1739_v61 = vmul.f32 %v4692_v45, %v1382_v21 }
 0x23e   : > { %4689 = vst [vmem:[#allocation23_spill] sm:$0xff] %v4187_v32  ;;  %v1949_v30 = vmul.f32 %v3194_v51, %v1380_v58  ;;  %v1951_v40 = vmul.f32 %v3194_v51, %v1382_v21  ;;  %v2220_v19 = vadd.f32 %v4693_v57, %v2189_v37  ;;  %v1811_v8 = vmul.f32 %v3157_v63, %v1076_v9 }
 0x23f   : > { %v2023_v53 = vmul.f32 %v4675_v17, %v1076_v9  ;;  %v1323_v23 = vsel %vm1307_vm0, %v1280_v56, %v1300_v18  ;;  %v1559_v62 = vmul.f32 %v4694_v47, %v1382_v21  ;;  %v1343_v32 = vsel %vm1307_vm0, %v1300_v18, %v1280_v56 }
 0x240   : > { %v1981_v55 = vadd.f32 %v1949_v30, %v4102_v24  ;;  %v1983_v44 = vadd.f32 %v1951_v40, %v4107_v50  ;;  %v2093_v38 = vmul.f32 %v4072_v7, %v4191_v41  ;;  %v1381_v37 = vmul.f32 %v4059_v22, %v1343_v32  ;;  %v4695_v32 = vld [vmem:[#allocation9_spill] sm:$0xff] }
 0x241   : > { %v1383_v57 = vmul.f32 %v4065_v59, %v1323_v23  ;;  %v1427_v9 = vrot.slane %v4158_v5, 1  ;;  %v1771_v14 = vadd.f32 %v1739_v61, %v4100_v2  ;;  %v2095_v24 = vmul.f32 %v4072_v7, %v4195_v12  ;;  %v4696_v2 = vld [vmem:[#allocation24_spill] sm:$0xff]  ;;  %v4697_v61 = vld [vmem:[#allocation27_spill] sm:$0xff] }
 0x242   : > { %v2053_v31 = vadd.f32 %v2021_v11, %v1981_v55  ;;  %v2055_v21 = vadd.f32 %v2023_v53, %v1983_v44  ;;  %v1557_v50 = vmul.f32 %v4694_v47, %v1380_v58  ;;  %v1737_v40 = vmul.f32 %v4692_v45, %v1380_v58 }
 0x243   : > { %v1448_v56 = vsel %vm1432_vm1, %v1407_v60, %v1427_v9  ;;  %v1468_v18 = vsel %vm1432_vm1, %v1427_v9, %v1407_v60  ;;  %v1560_v30 = vmul.f32 %v4695_v32, %v1383_v57  ;;  %v1600_v44 = vmul.f32 %v3159_v27, %v4158_v5 }
 0x244   : > { %v2125_v23 = vadd.f32 %v2093_v38, %v2053_v31  ;;  %v2127_v59 = vadd.f32 %v2095_v24, %v2055_v21  ;;  %v4228_v11 = vmul.f32 %v4696_v2, %v1448_v56  ;;  %v4231_v53 = vmul.f32 %v4697_v61, %v1468_v18 }
 0x245   : > { %v1740_v47 = vmul.f32 %v3181_v15, %v1383_v57  ;;  %v1950_v55 = vmul.f32 %v4673_v43, %v1381_v37  ;;  %v4235_v60 = vadd.f32 %v2220_v19, %v2190_v6  ;;  %v1631_v9 = vadd.f32 %v1599_v26, %v1559_v62 }
 0x246   : > { %v1843_v58 = vadd.f32 %v1811_v8, %v1771_v14  ;;  %v1952_v38 = vmul.f32 %v4673_v43, %v1383_v57  ;;  %v4239_v31 = vmul.f32 %v4695_v32, %v1381_v37  ;;  %v4241_v27 = vadd.f32 %v1600_v44, %v1560_v30 }
 0x247   : > { %v1812_v21 = vmul.f32 %v3162_v28, %v4158_v5  ;;  %v1982_v24 = vadd.f32 %v1950_v55, %v4136_v35  ;;  %v4247_v56 = vmul.f32 %v3181_v15, %v1381_v37  ;;  %v1772_v6 = vadd.f32 %v1740_v47, %v4122_v49  ;;  %v4698_v47 = vld [vmem:[#allocation6_spill] sm:$0xff] }
 0x248   : > { %v1984_v26 = vadd.f32 %v1952_v38, %v4141_v1  ;;  %v2024_v14 = vmul.f32 %v3188_v16, %v4158_v5  ;;  %v4254_v19 = vadd.f32 %v4674_v29, %v2125_v23  ;;  %v2171_v8 = vadd.f32 %v4674_v29, %v2127_v59 }
 0x249   : > { %v2094_v62 = vmul.f32 %v4132_v4, %v4228_v11  ;;  %v2096_v35 = vmul.f32 %v4132_v4, %v4231_v53  ;;  %v1281_v49 = vrot.slane %v4161_v39, 7  ;;  %v1408_v1 = vrot.slane %v4161_v39, 1 }
 0x24a   : > { %v2056_v37 = vadd.f32 %v2024_v14, %v1984_v26  ;;  %v1813_v5 = vmul.f32 %v3157_v63, %v4161_v39  ;;  %v2054_v57 = vadd.f32 %v2022_v54, %v1982_v24  ;;  %v1301_v18 = vrot.slane %v4168_v13, 7 }
 0x24b   : > { %v1428_v59 = vrot.slane %v4168_v13, 1  ;;  %v1629_v32 = vadd.f32 %v4148_v25, %v1557_v50  ;;  %v4269_v30 = vadd.f32 %v1812_v21, %v1772_v6  ;;  %v2025_v44 = vmul.f32 %v4675_v17, %v4161_v39 }
 0x24c   : > { %v2128_v23 = vadd.f32 %v2096_v35, %v2056_v37  ;;  %v1669_v55 = vmul.f32 %v4698_v47, %v4191_v41  ;;  %v1324_v38 = vsel %vm1307_vm0, %v1281_v49, %v1301_v18  ;;  %v1344_v54 = vsel %vm1307_vm0, %v1301_v18, %v1281_v49 }
 0x24d   : > { %v1671_v24 = vmul.f32 %v4698_v47, %v4195_v12  ;;  %v1769_v25 = vadd.f32 %v1737_v40, %v4098_v3  ;;  %v1384_v39 = vmul.f32 %v3990_v10, %v1344_v54  ;;  %v1386_v21 = vmul.f32 %v3996_v48, %v1324_v38  ;;  %v4699_v38 = vld [vmem:[#allocation8_spill] sm:$0xff]  ;;  %v1089_v54 = vpop.f32.mrf.mxu0 }
 0x24e   : > { %v2172_v50 = vadd.f32 %v4677_v42, %v2128_v23  ;;  %v1449_v6 = vsel %vm1432_vm1, %v1408_v1, %v1428_v59  ;;  %v2126_v26 = vadd.f32 %v2094_v62, %v2054_v57  ;;  %v1282_v14 = vrot.slane %v4165_v20, 7 }
 0x24f   : > { %v1469_v3 = vsel %vm1432_vm1, %v1428_v59, %v1408_v1  ;;  %v1701_v40 = vadd.f32 %v1669_v55, %v1629_v32  ;;  %v1703_v37 = vadd.f32 %v1671_v24, %v1631_v9  ;;  %v1741_v49 = vmul.f32 %v4692_v45, %v1384_v39  ;;  %v1238_v59 = vpop.f32.mrf.mxu1 }
 0x250   : > { %v4294_v35 = vmul.f32 %v2172_v50, %v2171_v8  ;;  %v1743_v18 = vmul.f32 %v4692_v45, %v1386_v21  ;;  %v1509_v23 = vmul.f32 %v4690_v34, %v1449_v6  ;;  %v1841_v47 = vadd.f32 %v4152_v46, %v1769_v25 }
 0x251   : > { %v1881_v62 = vmul.f32 %v4699_v38, %v4191_v41  ;;  %v1883_v57 = vmul.f32 %v4699_v38, %v4195_v12  ;;  %v1773_v8 = vadd.f32 %v1741_v49, %v1701_v40  ;;  %v1815_v9 = vmul.f32 %v3157_v63, %v4168_v13 }
 0x252   : > { %2208 = vst [vmem:[%s3613_s18 + $0x58] sm:$0xff] %v4294_v35  ;;  %v1775_v1 = vadd.f32 %v1743_v18, %v1703_v37  ;;  %v1953_v45 = vmul.f32 %v3194_v51, %v1384_v39  ;;  %v1511_v32 = vmul.f32 %v4691_v36, %v1469_v3  ;;  %v1955_v41 = vmul.f32 %v3194_v51, %v1386_v21 }
 0x253   : > { %v1913_v46 = vadd.f32 %v1881_v62, %v1841_v47  ;;  %v1915_v55 = vadd.f32 %v1883_v57, %v1843_v58  ;;  %v1409_v12 = vrot.slane %v4165_v20, 1  ;;  %v1814_v24 = vmul.f32 %v3162_v28, %v4165_v20 }
 0x254   : > { %v1845_v25 = vadd.f32 %v1813_v5, %v1773_v8  ;;  %v1847_v50 = vadd.f32 %v1815_v9, %v1775_v1  ;;  %v1239_v63 = vadd.f32 %v1238_v59, %v4658_v33  ;;  %v4316_v39 = vstv %s1254_s14  ;;  %v4700_v9 = vld [vmem:[#allocation18_spill] sm:$0xff] }
 0x255   : > { %v1985_v6 = vadd.f32 %v1953_v45, %v1913_v46  ;;  %v1987_v40 = vadd.f32 %v1955_v41, %v1915_v55  ;;  %v2170_v3 = vadd.f32 %v4677_v42, %v2126_v26  ;;  %v2026_v58 = vmul.f32 %v3188_v16, %v4165_v20  ;;  %v4702_v46 = vld [vmem:[#allocation50_spill] sm:$0xff]  ;;  %v1240_v41 = vpop.f32.mrf.mxu1 }
 0x256   : > { %v2027_v21 = vmul.f32 %v4675_v17, %v4168_v13  ;;  %v1090_v37 = vadd.f32 %v1089_v54, %v3152_v0  ;;  %v1885_v49 = vmul.f32 %v4699_v38, %v1509_v23  ;;  %v1887_v5 = vmul.f32 %v4699_v38, %v1511_v32  ;;  %v4701_v38 = vld [vmem:[#allocation10_spill] sm:$0xff] }
 0x257   : > { %v2057_v18 = vadd.f32 %v2025_v44, %v1985_v6  ;;  %v2097_v47 = vmul.f32 %v4072_v7, %v1509_v23  ;;  %v4328_v57 = vmul.f32 %v4316_v39, %v1239_v63  ;;  %v2099_v13 = vmul.f32 %v4072_v7, %v1511_v32  ;;  %v4703_v32 = vld [vmem:[#allocation49_spill] sm:$0xff] }
 0x258   : > { %v2059_v62 = vadd.f32 %v2027_v21, %v1987_v40  ;;  %v1302_v26 = vrot.slane %v1090_v37, 7  ;;  %v1429_v8 = vrot.slane %v1090_v37, 1  ;;  %v4330_v1 = vadd.f32 %v1885_v49, %v1845_v25  ;;  %v1244_v21 = vpop.f32.mrf.mxu1 }
 0x259   : > { %v4332_v20 = vadd.f32 %v1887_v5, %v1847_v50  ;;  %v1630_v45 = vadd.f32 %v4700_v9, %v4239_v31  ;;  %v1670_v59 = vmul.f32 %v4701_v38, %v4228_v11  ;;  %v1770_v55 = vadd.f32 %v4247_v56, %v4702_v46 }
 0x25a   : > { %v1325_v44 = vsel %vm1307_vm0, %v1282_v14, %v1302_v26  ;;  %v1345_v23 = vsel %vm1307_vm0, %v1302_v26, %v1282_v14  ;;  %v2129_v54 = vadd.f32 %v2097_v47, %v2057_v18  ;;  %v1672_v31 = vmul.f32 %v4701_v38, %v4231_v53  ;;  %v4704_v26 = vld [vmem:[#allocation23_spill] sm:$0xff]  ;;  %v1246_v46 = vpop.f32.mrf.mxu1 }
 0x25b   : > { %v1385_v25 = vmul.f32 %v4059_v22, %v1345_v23  ;;  %v1387_v50 = vmul.f32 %v4703_v32, %v1325_v44  ;;  %v2131_v6 = vadd.f32 %v2099_v13, %v2059_v62  ;;  %v1283_v40 = vrot.slane %v4328_v57, 7  ;;  %v4705_v13 = vld [vmem:[#allocation11_spill] sm:$0xff] }
 0x25c   : > { %v1450_v14 = vsel %vm1432_vm1, %v1409_v12, %v1429_v8  ;;  %v1470_v63 = vsel %vm1432_vm1, %v1429_v8, %v1409_v12  ;;  %v1702_v56 = vadd.f32 %v1670_v59, %v1630_v45  ;;  %v1704_v49 = vadd.f32 %v1672_v31, %v4241_v27 }
 0x25d   : > { %v1742_v5 = vmul.f32 %v3181_v15, %v1385_v25  ;;  %v1744_v18 = vmul.f32 %v3181_v15, %v1387_v50  ;;  %v1410_v47 = vrot.slane %v4328_v57, 1  ;;  %v1842_v62 = vadd.f32 %v4704_v26, %v1770_v55 }
 0x25e   : > { %v1882_v9 = vmul.f32 %v4705_v13, %v4228_v11  ;;  %v1884_v44 = vmul.f32 %v4705_v13, %v4231_v53  ;;  %v1510_v12 = vmul.f32 %v4696_v2, %v1450_v14  ;;  %v1954_v27 = vmul.f32 %v4673_v43, %v1385_v25 }
 0x25f   : > { %v1774_v8 = vadd.f32 %v1742_v5, %v1702_v56  ;;  %v1776_v45 = vadd.f32 %v1744_v18, %v1704_v49  ;;  %v1512_v23 = vmul.f32 %v4697_v61, %v1470_v63  ;;  %v1956_v59 = vmul.f32 %v4673_v43, %v1387_v50 }
 0x260   : > { %v1914_v38 = vadd.f32 %v1882_v9, %v1842_v62  ;;  %v1916_v15 = vadd.f32 %v1884_v44, %v4269_v30  ;;  %v4370_v11 = vmul.f32 %v4675_v17, %v4328_v57  ;;  %v1816_v53 = vmul.f32 %v3162_v28, %v1090_v37 }
 0x261   : > { %v1846_v55 = vadd.f32 %v1814_v24, %v1774_v8  ;;  %v2028_v31 = vmul.f32 %v3188_v16, %v1090_v37  ;;  %v2191_v63 = vmul.f32 %v2170_v3, %v4254_v19  ;;  %v1241_v56 = vadd.f32 %v1240_v41, %v3152_v0 }
 0x262   : > { %v1986_v14 = vadd.f32 %v1954_v27, %v1914_v38  ;;  %v1988_v25 = vadd.f32 %v1956_v59, %v1916_v15  ;;  %v1848_v30 = vadd.f32 %v1816_v53, %v1776_v45  ;;  %v2098_v50 = vmul.f32 %v4132_v4, %v1510_v12 }
 0x263   : > { %v1245_v49 = vadd.f32 %v1244_v21, %v4658_v33  ;;  %v1247_v5 = vadd.f32 %v1246_v46, %v3152_v0  ;;  %v2100_v28 = vmul.f32 %v4132_v4, %v1512_v23  ;;  %2207 = vst [vmem:[%s3613_s18 + $0x50] sm:$0xff] %v2191_v63  ;;  %v1262_v24 = vmul.f32 %v4316_v39, %v1241_v56 }
 0x264   : > { %v2058_v57 = vadd.f32 %v2026_v58, %v1986_v14  ;;  %v2060_v18 = vadd.f32 %v2028_v31, %v1988_v25  ;;  %v1886_v37 = vmul.f32 %v4705_v13, %v1510_v12  ;;  %v1888_v19 = vmul.f32 %v4705_v13, %v1512_v23 }
 0x265   : > { %v1263_v3 = vmul.f32 %v4316_v39, %v1245_v49  ;;  %v1264_v41 = vmul.f32 %v4316_v39, %v1247_v5  ;;  %v2173_v26 = vadd.f32 %v4674_v29, %v2129_v54  ;;  %v2175_v33 = vadd.f32 %v4674_v29, %v2131_v6 }
 0x266   : > { %v2130_v0 = vadd.f32 %v2098_v50, %v2058_v57  ;;  %v2132_v58 = vadd.f32 %v2100_v28, %v2060_v18  ;;  %v1918_v21 = vadd.f32 %v1886_v37, %v1846_v55  ;;  %v1920_v62 = vadd.f32 %v1888_v19, %v1848_v30 }
 0x267   : > { %v1303_v9 = vrot.slane %v1263_v3, 7  ;;  %v1430_v44 = vrot.slane %v1263_v3, 1  ;;  %v1284_v13 = vrot.slane %v1262_v24, 7  ;;  %v1304_v45 = vrot.slane %v1264_v41, 7 }
 0x268   : > { %v2174_v8 = vadd.f32 %v4677_v42, %v2130_v0  ;;  %v2176_v12 = vadd.f32 %v4677_v42, %v2132_v58  ;;  %v1411_v14 = vrot.slane %v1262_v24, 1  ;;  %v1431_v25 = vrot.slane %v1264_v41, 1 }
 0x269   : > { %v1326_v39 = vsel %vm1307_vm0, %v1283_v40, %v1303_v9  ;;  %v1346_v54 = vsel %vm1307_vm0, %v1303_v9, %v1283_v40  ;;  %v1451_v6 = vsel %vm1432_vm1, %v1410_v47, %v1430_v44  ;;  %v1471_v27 = vsel %vm1432_vm1, %v1430_v44, %v1410_v47 }
 0x26a   : > { %v2193_v23 = vmul.f32 %v2174_v8, %v2173_v26  ;;  %v2194_v38 = vmul.f32 %v2176_v12, %v2175_v33  ;;  %v1388_v15 = vmul.f32 %v3990_v10, %v1346_v54  ;;  %v1390_v59 = vmul.f32 %v3996_v48, %v1326_v39 }
 0x26b   : > { %v1513_v46 = vmul.f32 %v4690_v34, %v1451_v6  ;;  %v1515_v53 = vmul.f32 %v4691_v36, %v1471_v27  ;;  %v1327_v55 = vsel %vm1307_vm0, %v1284_v13, %v1304_v45  ;;  %v1347_v40 = vsel %vm1307_vm0, %v1304_v45, %v1284_v13 }
 0x26c   : > { %2209 = vst [vmem:[%s3613_s18 + $0x60] sm:$0xff] %v2193_v23  ;;  %2210 = vst [vmem:[%s3613_s18 + $0x68] sm:$0xff] %v2194_v38  ;;  %v2222_v47 = vadd.f32 %v4235_v60, %v2191_v63  ;;  %v1957_v31 = vmul.f32 %v3194_v51, %v1388_v15  ;;  %v1959_v10 = vmul.f32 %v3194_v51, %v1390_v59 }
 0x26d   : > { %v1389_v48 = vmul.f32 %v4059_v22, %v1347_v40  ;;  %v2031_v34 = vmul.f32 %v4675_v17, %v1263_v3  ;;  %v1391_v36 = vmul.f32 %v4703_v32, %v1327_v55  ;;  %v2101_v50 = vmul.f32 %v4072_v7, %v1513_v46 }
 0x26e   : > { %v1989_v56 = vadd.f32 %v1957_v31, %v4330_v1  ;;  %v1991_v30 = vadd.f32 %v1959_v10, %v4332_v20  ;;  %v2103_v63 = vmul.f32 %v4072_v7, %v1515_v53  ;;  %v1452_v51 = vsel %vm1432_vm1, %v1411_v14, %v1431_v25 }
 0x26f   : > { %v1958_v60 = vmul.f32 %v4673_v43, %v1389_v48  ;;  %v1472_v22 = vsel %vm1432_vm1, %v1431_v25, %v1411_v14  ;;  %v1960_v17 = vmul.f32 %v4673_v43, %v1391_v36  ;;  %v1514_v1 = vmul.f32 %v4696_v2, %v1452_v51 }
 0x270   : > { %v2061_v32 = vadd.f32 %v4370_v11, %v1989_v56  ;;  %v2063_v49 = vadd.f32 %v2031_v34, %v1991_v30  ;;  %v1516_v20 = vmul.f32 %v4697_v61, %v1472_v22  ;;  %v2030_v5 = vmul.f32 %v3188_v16, %v1262_v24 }
 0x271   : > { %v1990_v57 = vadd.f32 %v1958_v60, %v1918_v21  ;;  %v1992_v18 = vadd.f32 %v1960_v17, %v1920_v62  ;;  %v2032_v7 = vmul.f32 %v3188_v16, %v1264_v41  ;;  %v2223_v28 = vadd.f32 %v2222_v47, %v4294_v35 }
 0x272   : > { %v2133_v37 = vadd.f32 %v2101_v50, %v2061_v32  ;;  %v2135_v52 = vadd.f32 %v2103_v63, %v2063_v49  ;;  %v2102_v11 = vmul.f32 %v4132_v4, %v1514_v1  ;;  %v2104_v2 = vmul.f32 %v4132_v4, %v1516_v20 }
 0x273   : > { %v2062_v43 = vadd.f32 %v2030_v5, %v1990_v57  ;;  %v2064_v19 = vadd.f32 %v2032_v7, %v1992_v18  ;;  %v2224_v61 = vadd.f32 %v2223_v28, %v2193_v23 }
 0x274   : > { %v2177_v16 = vadd.f32 %v4674_v29, %v2133_v37  ;;  %v2179_v35 = vadd.f32 %v4674_v29, %v2135_v52 }
 0x275   : > { %v2134_v24 = vadd.f32 %v2102_v11, %v2062_v43  ;;  %v2136_v3 = vadd.f32 %v2104_v2, %v2064_v19  ;;  %v2225_v33 = vadd.f32 %v2224_v61, %v2194_v38 }
 0x277   : > { %v2178_v41 = vadd.f32 %v4677_v42, %v2134_v24  ;;  %v2180_v26 = vadd.f32 %v4677_v42, %v2136_v3 }
 0x279   : > { %v2195_v0 = vmul.f32 %v2178_v41, %v2177_v16  ;;  %v2196_v58 = vmul.f32 %v2180_v26, %v2179_v35 }
 0x27b   : > { %2211 = vst [vmem:[%s3613_s18 + $0x70] sm:$0xff] %v2195_v0  ;;  %2212 = vst [vmem:[%s3613_s18 + $0x78] sm:$0xff] %v2196_v58  ;;  %v2226_v4 = vadd.f32 %v2225_v33, %v2195_v0 }
 0x27d   : > { %v2227_v21 = vadd.f32 %v2226_v4, %v2196_v58 }
 0x27f   : > { %v2228_v62 = vrot.slane %v2227_v21, 4 }
 0x281   : > { %v2229_v9 = vadd.f32 %v2228_v62, %v2227_v21 }
 0x283   : > { %v2230_v44 = vrot.slane %v2229_v9, 2 }
 0x285   : > { %v2231_v8 = vadd.f32 %v2230_v44, %v2229_v9 }
 0x287   : > { %v2232_v29 = vrot.slane %v2231_v8, 1 }
 0x289   : > { %v2233_v42 = vadd.f32 %v2232_v29, %v2231_v8 }
 0x28b   : > { %2234 = vst [vmem:[%s600_s15] sm:$0x1] %v2233_v42 }
 0x28c PF: > { %s23_s25 = sadd.s32 1, %s2591_s25   ;;  %s4706_s18 = sld [smem:[#allocation2_spill]] }
 0x28d   : > { %p20_p12 = scmp.ge.s32.totalorder %s23_s25, 6   ;;  %s4707_s20 = sld [smem:[#allocation3_spill]] }
 0x28e   : > { %s4708_s21 = smov %s2583_s23  ;;  %s4709_s22 = smov %s2587_s24 }
 0x28f   :  { %22 = sbr.rel (!%p20_p12) target bundleno = 3 (0x3), region = 112 }
 0x292   : > { %s4710_s23 = smov %s4706_s18 }
 0x293   : > { %s4711_s24 = smov %s4707_s20 }

</bundles_post_ra>
